<compile_context>
chip_gen: v7x
topology: tpu7x:2x2x1
jax: 0.10.0
libtpu: 0.0.40
codegen_flags: <defaults>
</compile_context>

<pallas_src>
import functools

import jax
import jax.numpy as jnp
import numpy as np
from jax.experimental import pallas as pl
from jax.experimental.pallas import tpu as pltpu


def _fused_local_attn_kernel(w_ref, xpad_ref, o_ref, *, kH, kW, dilate,
                             H, W, Cin, Cout, rH, rW):
    # w_ref:    SMEM (3, Cout, Cin)   [0]=w_q, [1]=w_k, [2]=w_v
    # xpad_ref: VMEM (1, Cin, Hp, Wp) zero-padded input planes, one batch elt
    # o_ref:    VMEM (1, Cout, H, W)
    # All compute is (H, W)-plane elementwise work: W on lanes, H on sublanes.

    # Padded input channel planes and their (unpadded) centers.
    xp = [xpad_ref[0, ci] for ci in range(Cin)]               # Cin x (Hp, Wp)
    xc = [p[rH:rH + H, rW:rW + W] for p in xp]                # Cin x (H,  W)

    # 1x1 conv == per-plane scalar multiply-accumulate over Cin (VPU).
    def project(slot, planes):
        out = []
        for co in range(Cout):
            acc = w_ref[slot, co, 0] * planes[0]
            for ci in range(1, Cin):
                acc = acc + w_ref[slot, co, ci] * planes[ci]
            out.append(acc)
        return out

    q = project(0, xc)     # Cout x (H,  W)   queries
    k = project(1, xp)     # Cout x (Hp, Wp)  keys   (zero in the halo)
    v = project(2, xp)     # Cout x (Hp, Wp)  values (zero in the halo)

    offs = [(i * dilate, j * dilate) for i in range(kH) for j in range(kW)]

    # Similarity: one (H, W) plane per window offset, reduced over channels
    # with plain VPU adds (no cross-lane reductions).
    sims = []
    for (dh, dw) in offs:
        s = q[0] * k[0][dh:dh + H, dw:dw + W]
        for co in range(1, Cout):
            s = s + q[co] * k[co][dh:dh + H, dw:dw + W]
        sims.append(s)

    # Softmax over the window dimension, elementwise across planes.
    m = sims[0]
    for s in sims[1:]:
        m = jnp.maximum(m, s)
    es = [jnp.exp(s - m) for s in sims]
    den = es[0]
    for e in es[1:]:
        den = den + e
    inv = 1.0 / den
    wgt = [e * inv for e in es]

    # Weighting: out[co] = sum_k wgt[k] * v_shift[co, k]
    for co in range(Cout):
        dh0, dw0 = offs[0]
        acc = wgt[0] * v[co][dh0:dh0 + H, dw0:dw0 + W]
        for kk in range(1, len(offs)):
            dh, dw = offs[kk]
            acc = acc + wgt[kk] * v[co][dh:dh + H, dw:dw + W]
        o_ref[0, co] = acc.astype(o_ref.dtype)


def local_attention_forward(x, w1, w2, w3, kH, kW, dilate=1):
    """x: (N, Cin, H, W) NCHW.  w*: (Cout, Cin, 1, 1).  Returns (N, Cout, H, W)."""
    N, Cin, H, W = x.shape
    Cout = w1.shape[0]
    rH = (kH // 2) * dilate
    rW = (kW // 2) * dilate
    Hp, Wp = H + 2 * rH, W + 2 * rW

    # Zero-pad only the (small) input once.  Bias-free 1x1 convs turn the
    # padded region into zero keys/values inside the kernel, matching the
    # CUDA similar/weighting zero-padding semantics.
    xpad = jnp.pad(x, ((0, 0), (0, 0), (rH, rH), (rW, rW)))

    # All three conv weights as one small SMEM-resident scalar table.
    w_all = jnp.stack([w1.reshape(Cout, Cin),
                       w2.reshape(Cout, Cin),
                       w3.reshape(Cout, Cin)], axis=0).astype(jnp.float32)

    kernel = functools.partial(
        _fused_local_attn_kernel, kH=kH, kW=kW, dilate=dilate,
        H=H, W=W, Cin=Cin, Cout=Cout, rH=rH, rW=rW)

    return pl.pallas_call(
        kernel,
        grid=(N,),
        in_specs=[
            pl.BlockSpec(memory_space=pltpu.MemorySpace.SMEM),
            pl.BlockSpec((1, Cin, Hp, Wp), lambda n: (n, 0, 0, 0)),
        ],
        out_specs=pl.BlockSpec((1, Cout, H, W), lambda n: (n, 0, 0, 0)),
        out_shape=jax.ShapeDtypeStruct((N, Cout, H, W), jnp.float32),
        compiler_params=pltpu.CompilerParams(
            dimension_semantics=("parallel",)),
    )(w_all, xpad)


def _reference(x, w1, w2, w3, kH, kW, dilate):
    """Pure-JAX reference with the same zero-pad window semantics."""
    N, Cin, H, W = x.shape
    Cout = w1.shape[0]
    rH = (kH // 2) * dilate
    rW = (kW // 2) * dilate
    q = jnp.einsum('oc,nchw->nohw', w1.reshape(Cout, Cin), x)
    k = jnp.einsum('oc,nchw->nohw', w2.reshape(Cout, Cin), x)
    v = jnp.einsum('oc,nchw->nohw', w3.reshape(Cout, Cin), x)
    kp = jnp.pad(k, ((0, 0), (0, 0), (rH, rH), (rW, rW)))
    vp = jnp.pad(v, ((0, 0), (0, 0), (rH, rH), (rW, rW)))
    sims = []
    for i in range(kH):
        for j in range(kW):
            dh, dw = i * dilate, j * dilate
            sims.append(jnp.sum(q * kp[:, :, dh:dh + H, dw:dw + W], axis=1))
    wgt = jax.nn.softmax(jnp.stack(sims, axis=-1), axis=-1)   # (N, H, W, kk)
    out = jnp.zeros((N, Cout, H, W), jnp.float32)
    idx = 0
    for i in range(kH):
        for j in range(kW):
            dh, dw = i * dilate, j * dilate
            out = out + wgt[:, None, :, :, idx] * vp[:, :, dh:dh + H, dw:dw + W]
            idx += 1
    return out


if __name__ == "__main__":
    # Small deterministic setup consistent with the module's __init__.
    inp_channels, out_channels = 4, 8
    kH, kW, dilate = 3, 3, 1
    N, H, W = 2, 16, 16

    key = jax.random.PRNGKey(0)
    kx, k1, k2, k3 = jax.random.split(key, 4)
    x = jax.random.normal(kx, (N, inp_channels, H, W), dtype=jnp.float32)
    # nn.Conv2d weights: (out_channels, inp_channels, 1, 1), no bias.
    w1 = jax.random.normal(k1, (out_channels, inp_channels, 1, 1), jnp.float32) * 0.1
    w2 = jax.random.normal(k2, (out_channels, inp_channels, 1, 1), jnp.float32) * 0.1
    w3 = jax.random.normal(k3, (out_channels, inp_channels, 1, 1), jnp.float32) * 0.1

    out = local_attention_forward(x, w1, w2, w3, kH, kW, dilate)
    jax.block_until_ready(out)
    assert out.shape == (N, out_channels, H, W), out.shape

    ref = _reference(x, w1, w2, w3, kH, kW, dilate)
    np.testing.assert_allclose(np.asarray(out), np.asarray(ref),
                               rtol=1e-3, atol=1e-4)
    print("KERNEL_OK")
</pallas_src>

<mosaic_0001>
module attributes {stable_mosaic.version = 11 : i64} {
  func.func @_fused_local_attn_kernel(%arg0: i32, %arg1: memref<3x8x4xf32, #tpu.memory_space<smem>>, %arg2: memref<1x4x18x18xf32, #tpu.memory_space<vmem>>, %arg3: memref<1x8x16x16xf32, #tpu.memory_space<vmem>>) attributes {dimension_semantics = [#tpu.dimension_semantics<parallel>], iteration_bounds = array<i64: 2>, scalar_prefetch = 0 : i64, scratch_operands = 0 : i64, tpu.core_type = #tpu.core_type<tc>, window_params = [{transform_indices = @transform_0, window_bounds = array<i64: 3, 8, 4>}, {transform_indices = @transform_1, window_bounds = array<i64: 1, 4, 18, 18>}, {transform_indices = @transform_2, window_bounds = array<i64: 1, 8, 16, 16>}]} {
    %c0 = arith.constant 0 : index
    %c0_0 = arith.constant 0 : index
    %c0_1 = arith.constant 0 : index
    %c0_2 = arith.constant 0 : index
    %0 = vector.load %arg2[%c0, %c0_0, %c0_1, %c0_2] : memref<1x4x18x18xf32, #tpu.memory_space<vmem>>, vector<1x1x18x18xf32>
    %1 = vector.shape_cast %0 : vector<1x1x18x18xf32> to vector<18x18xf32>
    %c0_3 = arith.constant 0 : index
    %c1 = arith.constant 1 : index
    %c0_4 = arith.constant 0 : index
    %c0_5 = arith.constant 0 : index
    %2 = vector.load %arg2[%c0_3, %c1, %c0_4, %c0_5] : memref<1x4x18x18xf32, #tpu.memory_space<vmem>>, vector<1x1x18x18xf32>
    %3 = vector.shape_cast %2 : vector<1x1x18x18xf32> to vector<18x18xf32>
    %c0_6 = arith.constant 0 : index
    %c2 = arith.constant 2 : index
    %c0_7 = arith.constant 0 : index
    %c0_8 = arith.constant 0 : index
    %4 = vector.load %arg2[%c0_6, %c2, %c0_7, %c0_8] : memref<1x4x18x18xf32, #tpu.memory_space<vmem>>, vector<1x1x18x18xf32>
    %5 = vector.shape_cast %4 : vector<1x1x18x18xf32> to vector<18x18xf32>
    %c0_9 = arith.constant 0 : index
    %c3 = arith.constant 3 : index
    %c0_10 = arith.constant 0 : index
    %c0_11 = arith.constant 0 : index
    %6 = vector.load %arg2[%c0_9, %c3, %c0_10, %c0_11] : memref<1x4x18x18xf32, #tpu.memory_space<vmem>>, vector<1x1x18x18xf32>
    %7 = vector.shape_cast %6 : vector<1x1x18x18xf32> to vector<18x18xf32>
    %8 = vector.extract_strided_slice %1 {offsets = [1, 1], sizes = [16, 16], strides = [1, 1]} : vector<18x18xf32> to vector<16x16xf32>
    %9 = vector.extract_strided_slice %3 {offsets = [1, 1], sizes = [16, 16], strides = [1, 1]} : vector<18x18xf32> to vector<16x16xf32>
    %10 = vector.extract_strided_slice %5 {offsets = [1, 1], sizes = [16, 16], strides = [1, 1]} : vector<18x18xf32> to vector<16x16xf32>
    %11 = vector.extract_strided_slice %7 {offsets = [1, 1], sizes = [16, 16], strides = [1, 1]} : vector<18x18xf32> to vector<16x16xf32>
    %c0_12 = arith.constant 0 : index
    %c0_13 = arith.constant 0 : index
    %c0_14 = arith.constant 0 : index
    %12 = memref.load %arg1[%c0_12, %c0_13, %c0_14] : memref<3x8x4xf32, #tpu.memory_space<smem>>
    %13 = vector.broadcast %12 : f32 to vector<16x16xf32>
    %14 = arith.mulf %13, %8 : vector<16x16xf32>
    %c0_15 = arith.constant 0 : index
    %c0_16 = arith.constant 0 : index
    %c1_17 = arith.constant 1 : index
    %15 = memref.load %arg1[%c0_15, %c0_16, %c1_17] : memref<3x8x4xf32, #tpu.memory_space<smem>>
    %16 = vector.broadcast %15 : f32 to vector<16x16xf32>
    %17 = arith.mulf %16, %9 : vector<16x16xf32>
    %18 = arith.addf %14, %17 : vector<16x16xf32>
    %c0_18 = arith.constant 0 : index
    %c0_19 = arith.constant 0 : index
    %c2_20 = arith.constant 2 : index
    %19 = memref.load %arg1[%c0_18, %c0_19, %c2_20] : memref<3x8x4xf32, #tpu.memory_space<smem>>
    %20 = vector.broadcast %19 : f32 to vector<16x16xf32>
    %21 = arith.mulf %20, %10 : vector<16x16xf32>
    %22 = arith.addf %18, %21 : vector<16x16xf32>
    %c0_21 = arith.constant 0 : index
    %c0_22 = arith.constant 0 : index
    %c3_23 = arith.constant 3 : index
    %23 = memref.load %arg1[%c0_21, %c0_22, %c3_23] : memref<3x8x4xf32, #tpu.memory_space<smem>>
    %24 = vector.broadcast %23 : f32 to vector<16x16xf32>
    %25 = arith.mulf %24, %11 : vector<16x16xf32>
    %26 = arith.addf %22, %25 : vector<16x16xf32>
    %c0_24 = arith.constant 0 : index
    %c1_25 = arith.constant 1 : index
    %c0_26 = arith.constant 0 : index
    %27 = memref.load %arg1[%c0_24, %c1_25, %c0_26] : memref<3x8x4xf32, #tpu.memory_space<smem>>
    %28 = vector.broadcast %27 : f32 to vector<16x16xf32>
    %29 = arith.mulf %28, %8 : vector<16x16xf32>
    %c0_27 = arith.constant 0 : index
    %c1_28 = arith.constant 1 : index
    %c1_29 = arith.constant 1 : index
    %30 = memref.load %arg1[%c0_27, %c1_28, %c1_29] : memref<3x8x4xf32, #tpu.memory_space<smem>>
    %31 = vector.broadcast %30 : f32 to vector<16x16xf32>
    %32 = arith.mulf %31, %9 : vector<16x16xf32>
    %33 = arith.addf %29, %32 : vector<16x16xf32>
    %c0_30 = arith.constant 0 : index
    %c1_31 = arith.constant 1 : index
    %c2_32 = arith.constant 2 : index
    %34 = memref.load %arg1[%c0_30, %c1_31, %c2_32] : memref<3x8x4xf32, #tpu.memory_space<smem>>
    %35 = vector.broadcast %34 : f32 to vector<16x16xf32>
    %36 = arith.mulf %35, %10 : vector<16x16xf32>
    %37 = arith.addf %33, %36 : vector<16x16xf32>
    %c0_33 = arith.constant 0 : index
    %c1_34 = arith.constant 1 : index
    %c3_35 = arith.constant 3 : index
    %38 = memref.load %arg1[%c0_33, %c1_34, %c3_35] : memref<3x8x4xf32, #tpu.memory_space<smem>>
    %39 = vector.broadcast %38 : f32 to vector<16x16xf32>
    %40 = arith.mulf %39, %11 : vector<16x16xf32>
    %41 = arith.addf %37, %40 : vector<16x16xf32>
    %c0_36 = arith.constant 0 : index
    %c2_37 = arith.constant 2 : index
    %c0_38 = arith.constant 0 : index
    %42 = memref.load %arg1[%c0_36, %c2_37, %c0_38] : memref<3x8x4xf32, #tpu.memory_space<smem>>
    %43 = vector.broadcast %42 : f32 to vector<16x16xf32>
    %44 = arith.mulf %43, %8 : vector<16x16xf32>
    %c0_39 = arith.constant 0 : index
    %c2_40 = arith.constant 2 : index
    %c1_41 = arith.constant 1 : index
    %45 = memref.load %arg1[%c0_39, %c2_40, %c1_41] : memref<3x8x4xf32, #tpu.memory_space<smem>>
    %46 = vector.broadcast %45 : f32 to vector<16x16xf32>
    %47 = arith.mulf %46, %9 : vector<16x16xf32>
    %48 = arith.addf %44, %47 : vector<16x16xf32>
    %c0_42 = arith.constant 0 : index
    %c2_43 = arith.constant 2 : index
    %c2_44 = arith.constant 2 : index
    %49 = memref.load %arg1[%c0_42, %c2_43, %c2_44] : memref<3x8x4xf32, #tpu.memory_space<smem>>
    %50 = vector.broadcast %49 : f32 to vector<16x16xf32>
    %51 = arith.mulf %50, %10 : vector<16x16xf32>
    %52 = arith.addf %48, %51 : vector<16x16xf32>
    %c0_45 = arith.constant 0 : index
    %c2_46 = arith.constant 2 : index
    %c3_47 = arith.constant 3 : index
    %53 = memref.load %arg1[%c0_45, %c2_46, %c3_47] : memref<3x8x4xf32, #tpu.memory_space<smem>>
    %54 = vector.broadcast %53 : f32 to vector<16x16xf32>
    %55 = arith.mulf %54, %11 : vector<16x16xf32>
    %56 = arith.addf %52, %55 : vector<16x16xf32>
    %c0_48 = arith.constant 0 : index
    %c3_49 = arith.constant 3 : index
    %c0_50 = arith.constant 0 : index
    %57 = memref.load %arg1[%c0_48, %c3_49, %c0_50] : memref<3x8x4xf32, #tpu.memory_space<smem>>
    %58 = vector.broadcast %57 : f32 to vector<16x16xf32>
    %59 = arith.mulf %58, %8 : vector<16x16xf32>
    %c0_51 = arith.constant 0 : index
    %c3_52 = arith.constant 3 : index
    %c1_53 = arith.constant 1 : index
    %60 = memref.load %arg1[%c0_51, %c3_52, %c1_53] : memref<3x8x4xf32, #tpu.memory_space<smem>>
    %61 = vector.broadcast %60 : f32 to vector<16x16xf32>
    %62 = arith.mulf %61, %9 : vector<16x16xf32>
    %63 = arith.addf %59, %62 : vector<16x16xf32>
    %c0_54 = arith.constant 0 : index
    %c3_55 = arith.constant 3 : index
    %c2_56 = arith.constant 2 : index
    %64 = memref.load %arg1[%c0_54, %c3_55, %c2_56] : memref<3x8x4xf32, #tpu.memory_space<smem>>
    %65 = vector.broadcast %64 : f32 to vector<16x16xf32>
    %66 = arith.mulf %65, %10 : vector<16x16xf32>
    %67 = arith.addf %63, %66 : vector<16x16xf32>
    %c0_57 = arith.constant 0 : index
    %c3_58 = arith.constant 3 : index
    %c3_59 = arith.constant 3 : index
    %68 = memref.load %arg1[%c0_57, %c3_58, %c3_59] : memref<3x8x4xf32, #tpu.memory_space<smem>>
    %69 = vector.broadcast %68 : f32 to vector<16x16xf32>
    %70 = arith.mulf %69, %11 : vector<16x16xf32>
    %71 = arith.addf %67, %70 : vector<16x16xf32>
    %c0_60 = arith.constant 0 : index
    %c4 = arith.constant 4 : index
    %c0_61 = arith.constant 0 : index
    %72 = memref.load %arg1[%c0_60, %c4, %c0_61] : memref<3x8x4xf32, #tpu.memory_space<smem>>
    %73 = vector.broadcast %72 : f32 to vector<16x16xf32>
    %74 = arith.mulf %73, %8 : vector<16x16xf32>
    %c0_62 = arith.constant 0 : index
    %c4_63 = arith.constant 4 : index
    %c1_64 = arith.constant 1 : index
    %75 = memref.load %arg1[%c0_62, %c4_63, %c1_64] : memref<3x8x4xf32, #tpu.memory_space<smem>>
    %76 = vector.broadcast %75 : f32 to vector<16x16xf32>
    %77 = arith.mulf %76, %9 : vector<16x16xf32>
    %78 = arith.addf %74, %77 : vector<16x16xf32>
    %c0_65 = arith.constant 0 : index
    %c4_66 = arith.constant 4 : index
    %c2_67 = arith.constant 2 : index
    %79 = memref.load %arg1[%c0_65, %c4_66, %c2_67] : memref<3x8x4xf32, #tpu.memory_space<smem>>
    %80 = vector.broadcast %79 : f32 to vector<16x16xf32>
    %81 = arith.mulf %80, %10 : vector<16x16xf32>
    %82 = arith.addf %78, %81 : vector<16x16xf32>
    %c0_68 = arith.constant 0 : index
    %c4_69 = arith.constant 4 : index
    %c3_70 = arith.constant 3 : index
    %83 = memref.load %arg1[%c0_68, %c4_69, %c3_70] : memref<3x8x4xf32, #tpu.memory_space<smem>>
    %84 = vector.broadcast %83 : f32 to vector<16x16xf32>
    %85 = arith.mulf %84, %11 : vector<16x16xf32>
    %86 = arith.addf %82, %85 : vector<16x16xf32>
    %c0_71 = arith.constant 0 : index
    %c5 = arith.constant 5 : index
    %c0_72 = arith.constant 0 : index
    %87 = memref.load %arg1[%c0_71, %c5, %c0_72] : memref<3x8x4xf32, #tpu.memory_space<smem>>
    %88 = vector.broadcast %87 : f32 to vector<16x16xf32>
    %89 = arith.mulf %88, %8 : vector<16x16xf32>
    %c0_73 = arith.constant 0 : index
    %c5_74 = arith.constant 5 : index
    %c1_75 = arith.constant 1 : index
    %90 = memref.load %arg1[%c0_73, %c5_74, %c1_75] : memref<3x8x4xf32, #tpu.memory_space<smem>>
    %91 = vector.broadcast %90 : f32 to vector<16x16xf32>
    %92 = arith.mulf %91, %9 : vector<16x16xf32>
    %93 = arith.addf %89, %92 : vector<16x16xf32>
    %c0_76 = arith.constant 0 : index
    %c5_77 = arith.constant 5 : index
    %c2_78 = arith.constant 2 : index
    %94 = memref.load %arg1[%c0_76, %c5_77, %c2_78] : memref<3x8x4xf32, #tpu.memory_space<smem>>
    %95 = vector.broadcast %94 : f32 to vector<16x16xf32>
    %96 = arith.mulf %95, %10 : vector<16x16xf32>
    %97 = arith.addf %93, %96 : vector<16x16xf32>
    %c0_79 = arith.constant 0 : index
    %c5_80 = arith.constant 5 : index
    %c3_81 = arith.constant 3 : index
    %98 = memref.load %arg1[%c0_79, %c5_80, %c3_81] : memref<3x8x4xf32, #tpu.memory_space<smem>>
    %99 = vector.broadcast %98 : f32 to vector<16x16xf32>
    %100 = arith.mulf %99, %11 : vector<16x16xf32>
    %101 = arith.addf %97, %100 : vector<16x16xf32>
    %c0_82 = arith.constant 0 : index
    %c6 = arith.constant 6 : index
    %c0_83 = arith.constant 0 : index
    %102 = memref.load %arg1[%c0_82, %c6, %c0_83] : memref<3x8x4xf32, #tpu.memory_space<smem>>
    %103 = vector.broadcast %102 : f32 to vector<16x16xf32>
    %104 = arith.mulf %103, %8 : vector<16x16xf32>
    %c0_84 = arith.constant 0 : index
    %c6_85 = arith.constant 6 : index
    %c1_86 = arith.constant 1 : index
    %105 = memref.load %arg1[%c0_84, %c6_85, %c1_86] : memref<3x8x4xf32, #tpu.memory_space<smem>>
    %106 = vector.broadcast %105 : f32 to vector<16x16xf32>
    %107 = arith.mulf %106, %9 : vector<16x16xf32>
    %108 = arith.addf %104, %107 : vector<16x16xf32>
    %c0_87 = arith.constant 0 : index
    %c6_88 = arith.constant 6 : index
    %c2_89 = arith.constant 2 : index
    %109 = memref.load %arg1[%c0_87, %c6_88, %c2_89] : memref<3x8x4xf32, #tpu.memory_space<smem>>
    %110 = vector.broadcast %109 : f32 to vector<16x16xf32>
    %111 = arith.mulf %110, %10 : vector<16x16xf32>
    %112 = arith.addf %108, %111 : vector<16x16xf32>
    %c0_90 = arith.constant 0 : index
    %c6_91 = arith.constant 6 : index
    %c3_92 = arith.constant 3 : index
    %113 = memref.load %arg1[%c0_90, %c6_91, %c3_92] : memref<3x8x4xf32, #tpu.memory_space<smem>>
    %114 = vector.broadcast %113 : f32 to vector<16x16xf32>
    %115 = arith.mulf %114, %11 : vector<16x16xf32>
    %116 = arith.addf %112, %115 : vector<16x16xf32>
    %c0_93 = arith.constant 0 : index
    %c7 = arith.constant 7 : index
    %c0_94 = arith.constant 0 : index
    %117 = memref.load %arg1[%c0_93, %c7, %c0_94] : memref<3x8x4xf32, #tpu.memory_space<smem>>
    %118 = vector.broadcast %117 : f32 to vector<16x16xf32>
    %119 = arith.mulf %118, %8 : vector<16x16xf32>
    %c0_95 = arith.constant 0 : index
    %c7_96 = arith.constant 7 : index
    %c1_97 = arith.constant 1 : index
    %120 = memref.load %arg1[%c0_95, %c7_96, %c1_97] : memref<3x8x4xf32, #tpu.memory_space<smem>>
    %121 = vector.broadcast %120 : f32 to vector<16x16xf32>
    %122 = arith.mulf %121, %9 : vector<16x16xf32>
    %123 = arith.addf %119, %122 : vector<16x16xf32>
    %c0_98 = arith.constant 0 : index
    %c7_99 = arith.constant 7 : index
    %c2_100 = arith.constant 2 : index
    %124 = memref.load %arg1[%c0_98, %c7_99, %c2_100] : memref<3x8x4xf32, #tpu.memory_space<smem>>
    %125 = vector.broadcast %124 : f32 to vector<16x16xf32>
    %126 = arith.mulf %125, %10 : vector<16x16xf32>
    %127 = arith.addf %123, %126 : vector<16x16xf32>
    %c0_101 = arith.constant 0 : index
    %c7_102 = arith.constant 7 : index
    %c3_103 = arith.constant 3 : index
    %128 = memref.load %arg1[%c0_101, %c7_102, %c3_103] : memref<3x8x4xf32, #tpu.memory_space<smem>>
    %129 = vector.broadcast %128 : f32 to vector<16x16xf32>
    %130 = arith.mulf %129, %11 : vector<16x16xf32>
    %131 = arith.addf %127, %130 : vector<16x16xf32>
    %c1_104 = arith.constant 1 : index
    %c0_105 = arith.constant 0 : index
    %c0_106 = arith.constant 0 : index
    %132 = memref.load %arg1[%c1_104, %c0_105, %c0_106] : memref<3x8x4xf32, #tpu.memory_space<smem>>
    %133 = vector.broadcast %132 : f32 to vector<18x18xf32>
    %134 = arith.mulf %133, %1 : vector<18x18xf32>
    %c1_107 = arith.constant 1 : index
    %c0_108 = arith.constant 0 : index
    %c1_109 = arith.constant 1 : index
    %135 = memref.load %arg1[%c1_107, %c0_108, %c1_109] : memref<3x8x4xf32, #tpu.memory_space<smem>>
    %136 = vector.broadcast %135 : f32 to vector<18x18xf32>
    %137 = arith.mulf %136, %3 : vector<18x18xf32>
    %138 = arith.addf %134, %137 : vector<18x18xf32>
    %c1_110 = arith.constant 1 : index
    %c0_111 = arith.constant 0 : index
    %c2_112 = arith.constant 2 : index
    %139 = memref.load %arg1[%c1_110, %c0_111, %c2_112] : memref<3x8x4xf32, #tpu.memory_space<smem>>
    %140 = vector.broadcast %139 : f32 to vector<18x18xf32>
    %141 = arith.mulf %140, %5 : vector<18x18xf32>
    %142 = arith.addf %138, %141 : vector<18x18xf32>
    %c1_113 = arith.constant 1 : index
    %c0_114 = arith.constant 0 : index
    %c3_115 = arith.constant 3 : index
    %143 = memref.load %arg1[%c1_113, %c0_114, %c3_115] : memref<3x8x4xf32, #tpu.memory_space<smem>>
    %144 = vector.broadcast %143 : f32 to vector<18x18xf32>
    %145 = arith.mulf %144, %7 : vector<18x18xf32>
    %146 = arith.addf %142, %145 : vector<18x18xf32>
    %c1_116 = arith.constant 1 : index
    %c1_117 = arith.constant 1 : index
    %c0_118 = arith.constant 0 : index
    %147 = memref.load %arg1[%c1_116, %c1_117, %c0_118] : memref<3x8x4xf32, #tpu.memory_space<smem>>
    %148 = vector.broadcast %147 : f32 to vector<18x18xf32>
    %149 = arith.mulf %148, %1 : vector<18x18xf32>
    %c1_119 = arith.constant 1 : index
    %c1_120 = arith.constant 1 : index
    %c1_121 = arith.constant 1 : index
    %150 = memref.load %arg1[%c1_119, %c1_120, %c1_121] : memref<3x8x4xf32, #tpu.memory_space<smem>>
    %151 = vector.broadcast %150 : f32 to vector<18x18xf32>
    %152 = arith.mulf %151, %3 : vector<18x18xf32>
    %153 = arith.addf %149, %152 : vector<18x18xf32>
    %c1_122 = arith.constant 1 : index
    %c1_123 = arith.constant 1 : index
    %c2_124 = arith.constant 2 : index
    %154 = memref.load %arg1[%c1_122, %c1_123, %c2_124] : memref<3x8x4xf32, #tpu.memory_space<smem>>
    %155 = vector.broadcast %154 : f32 to vector<18x18xf32>
    %156 = arith.mulf %155, %5 : vector<18x18xf32>
    %157 = arith.addf %153, %156 : vector<18x18xf32>
    %c1_125 = arith.constant 1 : index
    %c1_126 = arith.constant 1 : index
    %c3_127 = arith.constant 3 : index
    %158 = memref.load %arg1[%c1_125, %c1_126, %c3_127] : memref<3x8x4xf32, #tpu.memory_space<smem>>
    %159 = vector.broadcast %158 : f32 to vector<18x18xf32>
    %160 = arith.mulf %159, %7 : vector<18x18xf32>
    %161 = arith.addf %157, %160 : vector<18x18xf32>
    %c1_128 = arith.constant 1 : index
    %c2_129 = arith.constant 2 : index
    %c0_130 = arith.constant 0 : index
    %162 = memref.load %arg1[%c1_128, %c2_129, %c0_130] : memref<3x8x4xf32, #tpu.memory_space<smem>>
    %163 = vector.broadcast %162 : f32 to vector<18x18xf32>
    %164 = arith.mulf %163, %1 : vector<18x18xf32>
    %c1_131 = arith.constant 1 : index
    %c2_132 = arith.constant 2 : index
    %c1_133 = arith.constant 1 : index
    %165 = memref.load %arg1[%c1_131, %c2_132, %c1_133] : memref<3x8x4xf32, #tpu.memory_space<smem>>
    %166 = vector.broadcast %165 : f32 to vector<18x18xf32>
    %167 = arith.mulf %166, %3 : vector<18x18xf32>
    %168 = arith.addf %164, %167 : vector<18x18xf32>
    %c1_134 = arith.constant 1 : index
    %c2_135 = arith.constant 2 : index
    %c2_136 = arith.constant 2 : index
    %169 = memref.load %arg1[%c1_134, %c2_135, %c2_136] : memref<3x8x4xf32, #tpu.memory_space<smem>>
    %170 = vector.broadcast %169 : f32 to vector<18x18xf32>
    %171 = arith.mulf %170, %5 : vector<18x18xf32>
    %172 = arith.addf %168, %171 : vector<18x18xf32>
    %c1_137 = arith.constant 1 : index
    %c2_138 = arith.constant 2 : index
    %c3_139 = arith.constant 3 : index
    %173 = memref.load %arg1[%c1_137, %c2_138, %c3_139] : memref<3x8x4xf32, #tpu.memory_space<smem>>
    %174 = vector.broadcast %173 : f32 to vector<18x18xf32>
    %175 = arith.mulf %174, %7 : vector<18x18xf32>
    %176 = arith.addf %172, %175 : vector<18x18xf32>
    %c1_140 = arith.constant 1 : index
    %c3_141 = arith.constant 3 : index
    %c0_142 = arith.constant 0 : index
    %177 = memref.load %arg1[%c1_140, %c3_141, %c0_142] : memref<3x8x4xf32, #tpu.memory_space<smem>>
    %178 = vector.broadcast %177 : f32 to vector<18x18xf32>
    %179 = arith.mulf %178, %1 : vector<18x18xf32>
    %c1_143 = arith.constant 1 : index
    %c3_144 = arith.constant 3 : index
    %c1_145 = arith.constant 1 : index
    %180 = memref.load %arg1[%c1_143, %c3_144, %c1_145] : memref<3x8x4xf32, #tpu.memory_space<smem>>
    %181 = vector.broadcast %180 : f32 to vector<18x18xf32>
    %182 = arith.mulf %181, %3 : vector<18x18xf32>
    %183 = arith.addf %179, %182 : vector<18x18xf32>
    %c1_146 = arith.constant 1 : index
    %c3_147 = arith.constant 3 : index
    %c2_148 = arith.constant 2 : index
    %184 = memref.load %arg1[%c1_146, %c3_147, %c2_148] : memref<3x8x4xf32, #tpu.memory_space<smem>>
    %185 = vector.broadcast %184 : f32 to vector<18x18xf32>
    %186 = arith.mulf %185, %5 : vector<18x18xf32>
    %187 = arith.addf %183, %186 : vector<18x18xf32>
    %c1_149 = arith.constant 1 : index
    %c3_150 = arith.constant 3 : index
    %c3_151 = arith.constant 3 : index
    %188 = memref.load %arg1[%c1_149, %c3_150, %c3_151] : memref<3x8x4xf32, #tpu.memory_space<smem>>
    %189 = vector.broadcast %188 : f32 to vector<18x18xf32>
    %190 = arith.mulf %189, %7 : vector<18x18xf32>
    %191 = arith.addf %187, %190 : vector<18x18xf32>
    %c1_152 = arith.constant 1 : index
    %c4_153 = arith.constant 4 : index
    %c0_154 = arith.constant 0 : index
    %192 = memref.load %arg1[%c1_152, %c4_153, %c0_154] : memref<3x8x4xf32, #tpu.memory_space<smem>>
    %193 = vector.broadcast %192 : f32 to vector<18x18xf32>
    %194 = arith.mulf %193, %1 : vector<18x18xf32>
    %c1_155 = arith.constant 1 : index
    %c4_156 = arith.constant 4 : index
    %c1_157 = arith.constant 1 : index
    %195 = memref.load %arg1[%c1_155, %c4_156, %c1_157] : memref<3x8x4xf32, #tpu.memory_space<smem>>
    %196 = vector.broadcast %195 : f32 to vector<18x18xf32>
    %197 = arith.mulf %196, %3 : vector<18x18xf32>
    %198 = arith.addf %194, %197 : vector<18x18xf32>
    %c1_158 = arith.constant 1 : index
    %c4_159 = arith.constant 4 : index
    %c2_160 = arith.constant 2 : index
    %199 = memref.load %arg1[%c1_158, %c4_159, %c2_160] : memref<3x8x4xf32, #tpu.memory_space<smem>>
    %200 = vector.broadcast %199 : f32 to vector<18x18xf32>
    %201 = arith.mulf %200, %5 : vector<18x18xf32>
    %202 = arith.addf %198, %201 : vector<18x18xf32>
    %c1_161 = arith.constant 1 : index
    %c4_162 = arith.constant 4 : index
    %c3_163 = arith.constant 3 : index
    %203 = memref.load %arg1[%c1_161, %c4_162, %c3_163] : memref<3x8x4xf32, #tpu.memory_space<smem>>
    %204 = vector.broadcast %203 : f32 to vector<18x18xf32>
    %205 = arith.mulf %204, %7 : vector<18x18xf32>
    %206 = arith.addf %202, %205 : vector<18x18xf32>
    %c1_164 = arith.constant 1 : index
    %c5_165 = arith.constant 5 : index
    %c0_166 = arith.constant 0 : index
    %207 = memref.load %arg1[%c1_164, %c5_165, %c0_166] : memref<3x8x4xf32, #tpu.memory_space<smem>>
    %208 = vector.broadcast %207 : f32 to vector<18x18xf32>
    %209 = arith.mulf %208, %1 : vector<18x18xf32>
    %c1_167 = arith.constant 1 : index
    %c5_168 = arith.constant 5 : index
    %c1_169 = arith.constant 1 : index
    %210 = memref.load %arg1[%c1_167, %c5_168, %c1_169] : memref<3x8x4xf32, #tpu.memory_space<smem>>
    %211 = vector.broadcast %210 : f32 to vector<18x18xf32>
    %212 = arith.mulf %211, %3 : vector<18x18xf32>
    %213 = arith.addf %209, %212 : vector<18x18xf32>
    %c1_170 = arith.constant 1 : index
    %c5_171 = arith.constant 5 : index
    %c2_172 = arith.constant 2 : index
    %214 = memref.load %arg1[%c1_170, %c5_171, %c2_172] : memref<3x8x4xf32, #tpu.memory_space<smem>>
    %215 = vector.broadcast %214 : f32 to vector<18x18xf32>
    %216 = arith.mulf %215, %5 : vector<18x18xf32>
    %217 = arith.addf %213, %216 : vector<18x18xf32>
    %c1_173 = arith.constant 1 : index
    %c5_174 = arith.constant 5 : index
    %c3_175 = arith.constant 3 : index
    %218 = memref.load %arg1[%c1_173, %c5_174, %c3_175] : memref<3x8x4xf32, #tpu.memory_space<smem>>
    %219 = vector.broadcast %218 : f32 to vector<18x18xf32>
    %220 = arith.mulf %219, %7 : vector<18x18xf32>
    %221 = arith.addf %217, %220 : vector<18x18xf32>
    %c1_176 = arith.constant 1 : index
    %c6_177 = arith.constant 6 : index
    %c0_178 = arith.constant 0 : index
    %222 = memref.load %arg1[%c1_176, %c6_177, %c0_178] : memref<3x8x4xf32, #tpu.memory_space<smem>>
    %223 = vector.broadcast %222 : f32 to vector<18x18xf32>
    %224 = arith.mulf %223, %1 : vector<18x18xf32>
    %c1_179 = arith.constant 1 : index
    %c6_180 = arith.constant 6 : index
    %c1_181 = arith.constant 1 : index
    %225 = memref.load %arg1[%c1_179, %c6_180, %c1_181] : memref<3x8x4xf32, #tpu.memory_space<smem>>
    %226 = vector.broadcast %225 : f32 to vector<18x18xf32>
    %227 = arith.mulf %226, %3 : vector<18x18xf32>
    %228 = arith.addf %224, %227 : vector<18x18xf32>
    %c1_182 = arith.constant 1 : index
    %c6_183 = arith.constant 6 : index
    %c2_184 = arith.constant 2 : index
    %229 = memref.load %arg1[%c1_182, %c6_183, %c2_184] : memref<3x8x4xf32, #tpu.memory_space<smem>>
    %230 = vector.broadcast %229 : f32 to vector<18x18xf32>
    %231 = arith.mulf %230, %5 : vector<18x18xf32>
    %232 = arith.addf %228, %231 : vector<18x18xf32>
    %c1_185 = arith.constant 1 : index
    %c6_186 = arith.constant 6 : index
    %c3_187 = arith.constant 3 : index
    %233 = memref.load %arg1[%c1_185, %c6_186, %c3_187] : memref<3x8x4xf32, #tpu.memory_space<smem>>
    %234 = vector.broadcast %233 : f32 to vector<18x18xf32>
    %235 = arith.mulf %234, %7 : vector<18x18xf32>
    %236 = arith.addf %232, %235 : vector<18x18xf32>
    %c1_188 = arith.constant 1 : index
    %c7_189 = arith.constant 7 : index
    %c0_190 = arith.constant 0 : index
    %237 = memref.load %arg1[%c1_188, %c7_189, %c0_190] : memref<3x8x4xf32, #tpu.memory_space<smem>>
    %238 = vector.broadcast %237 : f32 to vector<18x18xf32>
    %239 = arith.mulf %238, %1 : vector<18x18xf32>
    %c1_191 = arith.constant 1 : index
    %c7_192 = arith.constant 7 : index
    %c1_193 = arith.constant 1 : index
    %240 = memref.load %arg1[%c1_191, %c7_192, %c1_193] : memref<3x8x4xf32, #tpu.memory_space<smem>>
    %241 = vector.broadcast %240 : f32 to vector<18x18xf32>
    %242 = arith.mulf %241, %3 : vector<18x18xf32>
    %243 = arith.addf %239, %242 : vector<18x18xf32>
    %c1_194 = arith.constant 1 : index
    %c7_195 = arith.constant 7 : index
    %c2_196 = arith.constant 2 : index
    %244 = memref.load %arg1[%c1_194, %c7_195, %c2_196] : memref<3x8x4xf32, #tpu.memory_space<smem>>
    %245 = vector.broadcast %244 : f32 to vector<18x18xf32>
    %246 = arith.mulf %245, %5 : vector<18x18xf32>
    %247 = arith.addf %243, %246 : vector<18x18xf32>
    %c1_197 = arith.constant 1 : index
    %c7_198 = arith.constant 7 : index
    %c3_199 = arith.constant 3 : index
    %248 = memref.load %arg1[%c1_197, %c7_198, %c3_199] : memref<3x8x4xf32, #tpu.memory_space<smem>>
    %249 = vector.broadcast %248 : f32 to vector<18x18xf32>
    %250 = arith.mulf %249, %7 : vector<18x18xf32>
    %251 = arith.addf %247, %250 : vector<18x18xf32>
    %c2_200 = arith.constant 2 : index
    %c0_201 = arith.constant 0 : index
    %c0_202 = arith.constant 0 : index
    %252 = memref.load %arg1[%c2_200, %c0_201, %c0_202] : memref<3x8x4xf32, #tpu.memory_space<smem>>
    %253 = vector.broadcast %252 : f32 to vector<18x18xf32>
    %254 = arith.mulf %253, %1 : vector<18x18xf32>
    %c2_203 = arith.constant 2 : index
    %c0_204 = arith.constant 0 : index
    %c1_205 = arith.constant 1 : index
    %255 = memref.load %arg1[%c2_203, %c0_204, %c1_205] : memref<3x8x4xf32, #tpu.memory_space<smem>>
    %256 = vector.broadcast %255 : f32 to vector<18x18xf32>
    %257 = arith.mulf %256, %3 : vector<18x18xf32>
    %258 = arith.addf %254, %257 : vector<18x18xf32>
    %c2_206 = arith.constant 2 : index
    %c0_207 = arith.constant 0 : index
    %c2_208 = arith.constant 2 : index
    %259 = memref.load %arg1[%c2_206, %c0_207, %c2_208] : memref<3x8x4xf32, #tpu.memory_space<smem>>
    %260 = vector.broadcast %259 : f32 to vector<18x18xf32>
    %261 = arith.mulf %260, %5 : vector<18x18xf32>
    %262 = arith.addf %258, %261 : vector<18x18xf32>
    %c2_209 = arith.constant 2 : index
    %c0_210 = arith.constant 0 : index
    %c3_211 = arith.constant 3 : index
    %263 = memref.load %arg1[%c2_209, %c0_210, %c3_211] : memref<3x8x4xf32, #tpu.memory_space<smem>>
    %264 = vector.broadcast %263 : f32 to vector<18x18xf32>
    %265 = arith.mulf %264, %7 : vector<18x18xf32>
    %266 = arith.addf %262, %265 : vector<18x18xf32>
    %c2_212 = arith.constant 2 : index
    %c1_213 = arith.constant 1 : index
    %c0_214 = arith.constant 0 : index
    %267 = memref.load %arg1[%c2_212, %c1_213, %c0_214] : memref<3x8x4xf32, #tpu.memory_space<smem>>
    %268 = vector.broadcast %267 : f32 to vector<18x18xf32>
    %269 = arith.mulf %268, %1 : vector<18x18xf32>
    %c2_215 = arith.constant 2 : index
    %c1_216 = arith.constant 1 : index
    %c1_217 = arith.constant 1 : index
    %270 = memref.load %arg1[%c2_215, %c1_216, %c1_217] : memref<3x8x4xf32, #tpu.memory_space<smem>>
    %271 = vector.broadcast %270 : f32 to vector<18x18xf32>
    %272 = arith.mulf %271, %3 : vector<18x18xf32>
    %273 = arith.addf %269, %272 : vector<18x18xf32>
    %c2_218 = arith.constant 2 : index
    %c1_219 = arith.constant 1 : index
    %c2_220 = arith.constant 2 : index
    %274 = memref.load %arg1[%c2_218, %c1_219, %c2_220] : memref<3x8x4xf32, #tpu.memory_space<smem>>
    %275 = vector.broadcast %274 : f32 to vector<18x18xf32>
    %276 = arith.mulf %275, %5 : vector<18x18xf32>
    %277 = arith.addf %273, %276 : vector<18x18xf32>
    %c2_221 = arith.constant 2 : index
    %c1_222 = arith.constant 1 : index
    %c3_223 = arith.constant 3 : index
    %278 = memref.load %arg1[%c2_221, %c1_222, %c3_223] : memref<3x8x4xf32, #tpu.memory_space<smem>>
    %279 = vector.broadcast %278 : f32 to vector<18x18xf32>
    %280 = arith.mulf %279, %7 : vector<18x18xf32>
    %281 = arith.addf %277, %280 : vector<18x18xf32>
    %c2_224 = arith.constant 2 : index
    %c2_225 = arith.constant 2 : index
    %c0_226 = arith.constant 0 : index
    %282 = memref.load %arg1[%c2_224, %c2_225, %c0_226] : memref<3x8x4xf32, #tpu.memory_space<smem>>
    %283 = vector.broadcast %282 : f32 to vector<18x18xf32>
    %284 = arith.mulf %283, %1 : vector<18x18xf32>
    %c2_227 = arith.constant 2 : index
    %c2_228 = arith.constant 2 : index
    %c1_229 = arith.constant 1 : index
    %285 = memref.load %arg1[%c2_227, %c2_228, %c1_229] : memref<3x8x4xf32, #tpu.memory_space<smem>>
    %286 = vector.broadcast %285 : f32 to vector<18x18xf32>
    %287 = arith.mulf %286, %3 : vector<18x18xf32>
    %288 = arith.addf %284, %287 : vector<18x18xf32>
    %c2_230 = arith.constant 2 : index
    %c2_231 = arith.constant 2 : index
    %c2_232 = arith.constant 2 : index
    %289 = memref.load %arg1[%c2_230, %c2_231, %c2_232] : memref<3x8x4xf32, #tpu.memory_space<smem>>
    %290 = vector.broadcast %289 : f32 to vector<18x18xf32>
    %291 = arith.mulf %290, %5 : vector<18x18xf32>
    %292 = arith.addf %288, %291 : vector<18x18xf32>
    %c2_233 = arith.constant 2 : index
    %c2_234 = arith.constant 2 : index
    %c3_235 = arith.constant 3 : index
    %293 = memref.load %arg1[%c2_233, %c2_234, %c3_235] : memref<3x8x4xf32, #tpu.memory_space<smem>>
    %294 = vector.broadcast %293 : f32 to vector<18x18xf32>
    %295 = arith.mulf %294, %7 : vector<18x18xf32>
    %296 = arith.addf %292, %295 : vector<18x18xf32>
    %c2_236 = arith.constant 2 : index
    %c3_237 = arith.constant 3 : index
    %c0_238 = arith.constant 0 : index
    %297 = memref.load %arg1[%c2_236, %c3_237, %c0_238] : memref<3x8x4xf32, #tpu.memory_space<smem>>
    %298 = vector.broadcast %297 : f32 to vector<18x18xf32>
    %299 = arith.mulf %298, %1 : vector<18x18xf32>
    %c2_239 = arith.constant 2 : index
    %c3_240 = arith.constant 3 : index
    %c1_241 = arith.constant 1 : index
    %300 = memref.load %arg1[%c2_239, %c3_240, %c1_241] : memref<3x8x4xf32, #tpu.memory_space<smem>>
    %301 = vector.broadcast %300 : f32 to vector<18x18xf32>
    %302 = arith.mulf %301, %3 : vector<18x18xf32>
    %303 = arith.addf %299, %302 : vector<18x18xf32>
    %c2_242 = arith.constant 2 : index
    %c3_243 = arith.constant 3 : index
    %c2_244 = arith.constant 2 : index
    %304 = memref.load %arg1[%c2_242, %c3_243, %c2_244] : memref<3x8x4xf32, #tpu.memory_space<smem>>
    %305 = vector.broadcast %304 : f32 to vector<18x18xf32>
    %306 = arith.mulf %305, %5 : vector<18x18xf32>
    %307 = arith.addf %303, %306 : vector<18x18xf32>
    %c2_245 = arith.constant 2 : index
    %c3_246 = arith.constant 3 : index
    %c3_247 = arith.constant 3 : index
    %308 = memref.load %arg1[%c2_245, %c3_246, %c3_247] : memref<3x8x4xf32, #tpu.memory_space<smem>>
    %309 = vector.broadcast %308 : f32 to vector<18x18xf32>
    %310 = arith.mulf %309, %7 : vector<18x18xf32>
    %311 = arith.addf %307, %310 : vector<18x18xf32>
    %c2_248 = arith.constant 2 : index
    %c4_249 = arith.constant 4 : index
    %c0_250 = arith.constant 0 : index
    %312 = memref.load %arg1[%c2_248, %c4_249, %c0_250] : memref<3x8x4xf32, #tpu.memory_space<smem>>
    %313 = vector.broadcast %312 : f32 to vector<18x18xf32>
    %314 = arith.mulf %313, %1 : vector<18x18xf32>
    %c2_251 = arith.constant 2 : index
    %c4_252 = arith.constant 4 : index
    %c1_253 = arith.constant 1 : index
    %315 = memref.load %arg1[%c2_251, %c4_252, %c1_253] : memref<3x8x4xf32, #tpu.memory_space<smem>>
    %316 = vector.broadcast %315 : f32 to vector<18x18xf32>
    %317 = arith.mulf %316, %3 : vector<18x18xf32>
    %318 = arith.addf %314, %317 : vector<18x18xf32>
    %c2_254 = arith.constant 2 : index
    %c4_255 = arith.constant 4 : index
    %c2_256 = arith.constant 2 : index
    %319 = memref.load %arg1[%c2_254, %c4_255, %c2_256] : memref<3x8x4xf32, #tpu.memory_space<smem>>
    %320 = vector.broadcast %319 : f32 to vector<18x18xf32>
    %321 = arith.mulf %320, %5 : vector<18x18xf32>
    %322 = arith.addf %318, %321 : vector<18x18xf32>
    %c2_257 = arith.constant 2 : index
    %c4_258 = arith.constant 4 : index
    %c3_259 = arith.constant 3 : index
    %323 = memref.load %arg1[%c2_257, %c4_258, %c3_259] : memref<3x8x4xf32, #tpu.memory_space<smem>>
    %324 = vector.broadcast %323 : f32 to vector<18x18xf32>
    %325 = arith.mulf %324, %7 : vector<18x18xf32>
    %326 = arith.addf %322, %325 : vector<18x18xf32>
    %c2_260 = arith.constant 2 : index
    %c5_261 = arith.constant 5 : index
    %c0_262 = arith.constant 0 : index
    %327 = memref.load %arg1[%c2_260, %c5_261, %c0_262] : memref<3x8x4xf32, #tpu.memory_space<smem>>
    %328 = vector.broadcast %327 : f32 to vector<18x18xf32>
    %329 = arith.mulf %328, %1 : vector<18x18xf32>
    %c2_263 = arith.constant 2 : index
    %c5_264 = arith.constant 5 : index
    %c1_265 = arith.constant 1 : index
    %330 = memref.load %arg1[%c2_263, %c5_264, %c1_265] : memref<3x8x4xf32, #tpu.memory_space<smem>>
    %331 = vector.broadcast %330 : f32 to vector<18x18xf32>
    %332 = arith.mulf %331, %3 : vector<18x18xf32>
    %333 = arith.addf %329, %332 : vector<18x18xf32>
    %c2_266 = arith.constant 2 : index
    %c5_267 = arith.constant 5 : index
    %c2_268 = arith.constant 2 : index
    %334 = memref.load %arg1[%c2_266, %c5_267, %c2_268] : memref<3x8x4xf32, #tpu.memory_space<smem>>
    %335 = vector.broadcast %334 : f32 to vector<18x18xf32>
    %336 = arith.mulf %335, %5 : vector<18x18xf32>
    %337 = arith.addf %333, %336 : vector<18x18xf32>
    %c2_269 = arith.constant 2 : index
    %c5_270 = arith.constant 5 : index
    %c3_271 = arith.constant 3 : index
    %338 = memref.load %arg1[%c2_269, %c5_270, %c3_271] : memref<3x8x4xf32, #tpu.memory_space<smem>>
    %339 = vector.broadcast %338 : f32 to vector<18x18xf32>
    %340 = arith.mulf %339, %7 : vector<18x18xf32>
    %341 = arith.addf %337, %340 : vector<18x18xf32>
    %c2_272 = arith.constant 2 : index
    %c6_273 = arith.constant 6 : index
    %c0_274 = arith.constant 0 : index
    %342 = memref.load %arg1[%c2_272, %c6_273, %c0_274] : memref<3x8x4xf32, #tpu.memory_space<smem>>
    %343 = vector.broadcast %342 : f32 to vector<18x18xf32>
    %344 = arith.mulf %343, %1 : vector<18x18xf32>
    %c2_275 = arith.constant 2 : index
    %c6_276 = arith.constant 6 : index
    %c1_277 = arith.constant 1 : index
    %345 = memref.load %arg1[%c2_275, %c6_276, %c1_277] : memref<3x8x4xf32, #tpu.memory_space<smem>>
    %346 = vector.broadcast %345 : f32 to vector<18x18xf32>
    %347 = arith.mulf %346, %3 : vector<18x18xf32>
    %348 = arith.addf %344, %347 : vector<18x18xf32>
    %c2_278 = arith.constant 2 : index
    %c6_279 = arith.constant 6 : index
    %c2_280 = arith.constant 2 : index
    %349 = memref.load %arg1[%c2_278, %c6_279, %c2_280] : memref<3x8x4xf32, #tpu.memory_space<smem>>
    %350 = vector.broadcast %349 : f32 to vector<18x18xf32>
    %351 = arith.mulf %350, %5 : vector<18x18xf32>
    %352 = arith.addf %348, %351 : vector<18x18xf32>
    %c2_281 = arith.constant 2 : index
    %c6_282 = arith.constant 6 : index
    %c3_283 = arith.constant 3 : index
    %353 = memref.load %arg1[%c2_281, %c6_282, %c3_283] : memref<3x8x4xf32, #tpu.memory_space<smem>>
    %354 = vector.broadcast %353 : f32 to vector<18x18xf32>
    %355 = arith.mulf %354, %7 : vector<18x18xf32>
    %356 = arith.addf %352, %355 : vector<18x18xf32>
    %c2_284 = arith.constant 2 : index
    %c7_285 = arith.constant 7 : index
    %c0_286 = arith.constant 0 : index
    %357 = memref.load %arg1[%c2_284, %c7_285, %c0_286] : memref<3x8x4xf32, #tpu.memory_space<smem>>
    %358 = vector.broadcast %357 : f32 to vector<18x18xf32>
    %359 = arith.mulf %358, %1 : vector<18x18xf32>
    %c2_287 = arith.constant 2 : index
    %c7_288 = arith.constant 7 : index
    %c1_289 = arith.constant 1 : index
    %360 = memref.load %arg1[%c2_287, %c7_288, %c1_289] : memref<3x8x4xf32, #tpu.memory_space<smem>>
    %361 = vector.broadcast %360 : f32 to vector<18x18xf32>
    %362 = arith.mulf %361, %3 : vector<18x18xf32>
    %363 = arith.addf %359, %362 : vector<18x18xf32>
    %c2_290 = arith.constant 2 : index
    %c7_291 = arith.constant 7 : index
    %c2_292 = arith.constant 2 : index
    %364 = memref.load %arg1[%c2_290, %c7_291, %c2_292] : memref<3x8x4xf32, #tpu.memory_space<smem>>
    %365 = vector.broadcast %364 : f32 to vector<18x18xf32>
    %366 = arith.mulf %365, %5 : vector<18x18xf32>
    %367 = arith.addf %363, %366 : vector<18x18xf32>
    %c2_293 = arith.constant 2 : index
    %c7_294 = arith.constant 7 : index
    %c3_295 = arith.constant 3 : index
    %368 = memref.load %arg1[%c2_293, %c7_294, %c3_295] : memref<3x8x4xf32, #tpu.memory_space<smem>>
    %369 = vector.broadcast %368 : f32 to vector<18x18xf32>
    %370 = arith.mulf %369, %7 : vector<18x18xf32>
    %371 = arith.addf %367, %370 : vector<18x18xf32>
    %372 = vector.extract_strided_slice %146 {offsets = [0, 0], sizes = [16, 16], strides = [1, 1]} : vector<18x18xf32> to vector<16x16xf32>
    %373 = arith.mulf %26, %372 : vector<16x16xf32>
    %374 = vector.extract_strided_slice %161 {offsets = [0, 0], sizes = [16, 16], strides = [1, 1]} : vector<18x18xf32> to vector<16x16xf32>
    %375 = arith.mulf %41, %374 : vector<16x16xf32>
    %376 = arith.addf %373, %375 : vector<16x16xf32>
    %377 = vector.extract_strided_slice %176 {offsets = [0, 0], sizes = [16, 16], strides = [1, 1]} : vector<18x18xf32> to vector<16x16xf32>
    %378 = arith.mulf %56, %377 : vector<16x16xf32>
    %379 = arith.addf %376, %378 : vector<16x16xf32>
    %380 = vector.extract_strided_slice %191 {offsets = [0, 0], sizes = [16, 16], strides = [1, 1]} : vector<18x18xf32> to vector<16x16xf32>
    %381 = arith.mulf %71, %380 : vector<16x16xf32>
    %382 = arith.addf %379, %381 : vector<16x16xf32>
    %383 = vector.extract_strided_slice %206 {offsets = [0, 0], sizes = [16, 16], strides = [1, 1]} : vector<18x18xf32> to vector<16x16xf32>
    %384 = arith.mulf %86, %383 : vector<16x16xf32>
    %385 = arith.addf %382, %384 : vector<16x16xf32>
    %386 = vector.extract_strided_slice %221 {offsets = [0, 0], sizes = [16, 16], strides = [1, 1]} : vector<18x18xf32> to vector<16x16xf32>
    %387 = arith.mulf %101, %386 : vector<16x16xf32>
    %388 = arith.addf %385, %387 : vector<16x16xf32>
    %389 = vector.extract_strided_slice %236 {offsets = [0, 0], sizes = [16, 16], strides = [1, 1]} : vector<18x18xf32> to vector<16x16xf32>
    %390 = arith.mulf %116, %389 : vector<16x16xf32>
    %391 = arith.addf %388, %390 : vector<16x16xf32>
    %392 = vector.extract_strided_slice %251 {offsets = [0, 0], sizes = [16, 16], strides = [1, 1]} : vector<18x18xf32> to vector<16x16xf32>
    %393 = arith.mulf %131, %392 : vector<16x16xf32>
    %394 = arith.addf %391, %393 : vector<16x16xf32>
    %395 = vector.extract_strided_slice %146 {offsets = [0, 1], sizes = [16, 16], strides = [1, 1]} : vector<18x18xf32> to vector<16x16xf32>
    %396 = arith.mulf %26, %395 : vector<16x16xf32>
    %397 = vector.extract_strided_slice %161 {offsets = [0, 1], sizes = [16, 16], strides = [1, 1]} : vector<18x18xf32> to vector<16x16xf32>
    %398 = arith.mulf %41, %397 : vector<16x16xf32>
    %399 = arith.addf %396, %398 : vector<16x16xf32>
    %400 = vector.extract_strided_slice %176 {offsets = [0, 1], sizes = [16, 16], strides = [1, 1]} : vector<18x18xf32> to vector<16x16xf32>
    %401 = arith.mulf %56, %400 : vector<16x16xf32>
    %402 = arith.addf %399, %401 : vector<16x16xf32>
    %403 = vector.extract_strided_slice %191 {offsets = [0, 1], sizes = [16, 16], strides = [1, 1]} : vector<18x18xf32> to vector<16x16xf32>
    %404 = arith.mulf %71, %403 : vector<16x16xf32>
    %405 = arith.addf %402, %404 : vector<16x16xf32>
    %406 = vector.extract_strided_slice %206 {offsets = [0, 1], sizes = [16, 16], strides = [1, 1]} : vector<18x18xf32> to vector<16x16xf32>
    %407 = arith.mulf %86, %406 : vector<16x16xf32>
    %408 = arith.addf %405, %407 : vector<16x16xf32>
    %409 = vector.extract_strided_slice %221 {offsets = [0, 1], sizes = [16, 16], strides = [1, 1]} : vector<18x18xf32> to vector<16x16xf32>
    %410 = arith.mulf %101, %409 : vector<16x16xf32>
    %411 = arith.addf %408, %410 : vector<16x16xf32>
    %412 = vector.extract_strided_slice %236 {offsets = [0, 1], sizes = [16, 16], strides = [1, 1]} : vector<18x18xf32> to vector<16x16xf32>
    %413 = arith.mulf %116, %412 : vector<16x16xf32>
    %414 = arith.addf %411, %413 : vector<16x16xf32>
    %415 = vector.extract_strided_slice %251 {offsets = [0, 1], sizes = [16, 16], strides = [1, 1]} : vector<18x18xf32> to vector<16x16xf32>
    %416 = arith.mulf %131, %415 : vector<16x16xf32>
    %417 = arith.addf %414, %416 : vector<16x16xf32>
    %418 = vector.extract_strided_slice %146 {offsets = [0, 2], sizes = [16, 16], strides = [1, 1]} : vector<18x18xf32> to vector<16x16xf32>
    %419 = arith.mulf %26, %418 : vector<16x16xf32>
    %420 = vector.extract_strided_slice %161 {offsets = [0, 2], sizes = [16, 16], strides = [1, 1]} : vector<18x18xf32> to vector<16x16xf32>
    %421 = arith.mulf %41, %420 : vector<16x16xf32>
    %422 = arith.addf %419, %421 : vector<16x16xf32>
    %423 = vector.extract_strided_slice %176 {offsets = [0, 2], sizes = [16, 16], strides = [1, 1]} : vector<18x18xf32> to vector<16x16xf32>
    %424 = arith.mulf %56, %423 : vector<16x16xf32>
    %425 = arith.addf %422, %424 : vector<16x16xf32>
    %426 = vector.extract_strided_slice %191 {offsets = [0, 2], sizes = [16, 16], strides = [1, 1]} : vector<18x18xf32> to vector<16x16xf32>
    %427 = arith.mulf %71, %426 : vector<16x16xf32>
    %428 = arith.addf %425, %427 : vector<16x16xf32>
    %429 = vector.extract_strided_slice %206 {offsets = [0, 2], sizes = [16, 16], strides = [1, 1]} : vector<18x18xf32> to vector<16x16xf32>
    %430 = arith.mulf %86, %429 : vector<16x16xf32>
    %431 = arith.addf %428, %430 : vector<16x16xf32>
    %432 = vector.extract_strided_slice %221 {offsets = [0, 2], sizes = [16, 16], strides = [1, 1]} : vector<18x18xf32> to vector<16x16xf32>
    %433 = arith.mulf %101, %432 : vector<16x16xf32>
    %434 = arith.addf %431, %433 : vector<16x16xf32>
    %435 = vector.extract_strided_slice %236 {offsets = [0, 2], sizes = [16, 16], strides = [1, 1]} : vector<18x18xf32> to vector<16x16xf32>
    %436 = arith.mulf %116, %435 : vector<16x16xf32>
    %437 = arith.addf %434, %436 : vector<16x16xf32>
    %438 = vector.extract_strided_slice %251 {offsets = [0, 2], sizes = [16, 16], strides = [1, 1]} : vector<18x18xf32> to vector<16x16xf32>
    %439 = arith.mulf %131, %438 : vector<16x16xf32>
    %440 = arith.addf %437, %439 : vector<16x16xf32>
    %441 = vector.extract_strided_slice %146 {offsets = [1, 0], sizes = [16, 16], strides = [1, 1]} : vector<18x18xf32> to vector<16x16xf32>
    %442 = arith.mulf %26, %441 : vector<16x16xf32>
    %443 = vector.extract_strided_slice %161 {offsets = [1, 0], sizes = [16, 16], strides = [1, 1]} : vector<18x18xf32> to vector<16x16xf32>
    %444 = arith.mulf %41, %443 : vector<16x16xf32>
    %445 = arith.addf %442, %444 : vector<16x16xf32>
    %446 = vector.extract_strided_slice %176 {offsets = [1, 0], sizes = [16, 16], strides = [1, 1]} : vector<18x18xf32> to vector<16x16xf32>
    %447 = arith.mulf %56, %446 : vector<16x16xf32>
    %448 = arith.addf %445, %447 : vector<16x16xf32>
    %449 = vector.extract_strided_slice %191 {offsets = [1, 0], sizes = [16, 16], strides = [1, 1]} : vector<18x18xf32> to vector<16x16xf32>
    %450 = arith.mulf %71, %449 : vector<16x16xf32>
    %451 = arith.addf %448, %450 : vector<16x16xf32>
    %452 = vector.extract_strided_slice %206 {offsets = [1, 0], sizes = [16, 16], strides = [1, 1]} : vector<18x18xf32> to vector<16x16xf32>
    %453 = arith.mulf %86, %452 : vector<16x16xf32>
    %454 = arith.addf %451, %453 : vector<16x16xf32>
    %455 = vector.extract_strided_slice %221 {offsets = [1, 0], sizes = [16, 16], strides = [1, 1]} : vector<18x18xf32> to vector<16x16xf32>
    %456 = arith.mulf %101, %455 : vector<16x16xf32>
    %457 = arith.addf %454, %456 : vector<16x16xf32>
    %458 = vector.extract_strided_slice %236 {offsets = [1, 0], sizes = [16, 16], strides = [1, 1]} : vector<18x18xf32> to vector<16x16xf32>
    %459 = arith.mulf %116, %458 : vector<16x16xf32>
    %460 = arith.addf %457, %459 : vector<16x16xf32>
    %461 = vector.extract_strided_slice %251 {offsets = [1, 0], sizes = [16, 16], strides = [1, 1]} : vector<18x18xf32> to vector<16x16xf32>
    %462 = arith.mulf %131, %461 : vector<16x16xf32>
    %463 = arith.addf %460, %462 : vector<16x16xf32>
    %464 = vector.extract_strided_slice %146 {offsets = [1, 1], sizes = [16, 16], strides = [1, 1]} : vector<18x18xf32> to vector<16x16xf32>
    %465 = arith.mulf %26, %464 : vector<16x16xf32>
    %466 = vector.extract_strided_slice %161 {offsets = [1, 1], sizes = [16, 16], strides = [1, 1]} : vector<18x18xf32> to vector<16x16xf32>
    %467 = arith.mulf %41, %466 : vector<16x16xf32>
    %468 = arith.addf %465, %467 : vector<16x16xf32>
    %469 = vector.extract_strided_slice %176 {offsets = [1, 1], sizes = [16, 16], strides = [1, 1]} : vector<18x18xf32> to vector<16x16xf32>
    %470 = arith.mulf %56, %469 : vector<16x16xf32>
    %471 = arith.addf %468, %470 : vector<16x16xf32>
    %472 = vector.extract_strided_slice %191 {offsets = [1, 1], sizes = [16, 16], strides = [1, 1]} : vector<18x18xf32> to vector<16x16xf32>
    %473 = arith.mulf %71, %472 : vector<16x16xf32>
    %474 = arith.addf %471, %473 : vector<16x16xf32>
    %475 = vector.extract_strided_slice %206 {offsets = [1, 1], sizes = [16, 16], strides = [1, 1]} : vector<18x18xf32> to vector<16x16xf32>
    %476 = arith.mulf %86, %475 : vector<16x16xf32>
    %477 = arith.addf %474, %476 : vector<16x16xf32>
    %478 = vector.extract_strided_slice %221 {offsets = [1, 1], sizes = [16, 16], strides = [1, 1]} : vector<18x18xf32> to vector<16x16xf32>
    %479 = arith.mulf %101, %478 : vector<16x16xf32>
    %480 = arith.addf %477, %479 : vector<16x16xf32>
    %481 = vector.extract_strided_slice %236 {offsets = [1, 1], sizes = [16, 16], strides = [1, 1]} : vector<18x18xf32> to vector<16x16xf32>
    %482 = arith.mulf %116, %481 : vector<16x16xf32>
    %483 = arith.addf %480, %482 : vector<16x16xf32>
    %484 = vector.extract_strided_slice %251 {offsets = [1, 1], sizes = [16, 16], strides = [1, 1]} : vector<18x18xf32> to vector<16x16xf32>
    %485 = arith.mulf %131, %484 : vector<16x16xf32>
    %486 = arith.addf %483, %485 : vector<16x16xf32>
    %487 = vector.extract_strided_slice %146 {offsets = [1, 2], sizes = [16, 16], strides = [1, 1]} : vector<18x18xf32> to vector<16x16xf32>
    %488 = arith.mulf %26, %487 : vector<16x16xf32>
    %489 = vector.extract_strided_slice %161 {offsets = [1, 2], sizes = [16, 16], strides = [1, 1]} : vector<18x18xf32> to vector<16x16xf32>
    %490 = arith.mulf %41, %489 : vector<16x16xf32>
    %491 = arith.addf %488, %490 : vector<16x16xf32>
    %492 = vector.extract_strided_slice %176 {offsets = [1, 2], sizes = [16, 16], strides = [1, 1]} : vector<18x18xf32> to vector<16x16xf32>
    %493 = arith.mulf %56, %492 : vector<16x16xf32>
    %494 = arith.addf %491, %493 : vector<16x16xf32>
    %495 = vector.extract_strided_slice %191 {offsets = [1, 2], sizes = [16, 16], strides = [1, 1]} : vector<18x18xf32> to vector<16x16xf32>
    %496 = arith.mulf %71, %495 : vector<16x16xf32>
    %497 = arith.addf %494, %496 : vector<16x16xf32>
    %498 = vector.extract_strided_slice %206 {offsets = [1, 2], sizes = [16, 16], strides = [1, 1]} : vector<18x18xf32> to vector<16x16xf32>
    %499 = arith.mulf %86, %498 : vector<16x16xf32>
    %500 = arith.addf %497, %499 : vector<16x16xf32>
    %501 = vector.extract_strided_slice %221 {offsets = [1, 2], sizes = [16, 16], strides = [1, 1]} : vector<18x18xf32> to vector<16x16xf32>
    %502 = arith.mulf %101, %501 : vector<16x16xf32>
    %503 = arith.addf %500, %502 : vector<16x16xf32>
    %504 = vector.extract_strided_slice %236 {offsets = [1, 2], sizes = [16, 16], strides = [1, 1]} : vector<18x18xf32> to vector<16x16xf32>
    %505 = arith.mulf %116, %504 : vector<16x16xf32>
    %506 = arith.addf %503, %505 : vector<16x16xf32>
    %507 = vector.extract_strided_slice %251 {offsets = [1, 2], sizes = [16, 16], strides = [1, 1]} : vector<18x18xf32> to vector<16x16xf32>
    %508 = arith.mulf %131, %507 : vector<16x16xf32>
    %509 = arith.addf %506, %508 : vector<16x16xf32>
    %510 = vector.extract_strided_slice %146 {offsets = [2, 0], sizes = [16, 16], strides = [1, 1]} : vector<18x18xf32> to vector<16x16xf32>
    %511 = arith.mulf %26, %510 : vector<16x16xf32>
    %512 = vector.extract_strided_slice %161 {offsets = [2, 0], sizes = [16, 16], strides = [1, 1]} : vector<18x18xf32> to vector<16x16xf32>
    %513 = arith.mulf %41, %512 : vector<16x16xf32>
    %514 = arith.addf %511, %513 : vector<16x16xf32>
    %515 = vector.extract_strided_slice %176 {offsets = [2, 0], sizes = [16, 16], strides = [1, 1]} : vector<18x18xf32> to vector<16x16xf32>
    %516 = arith.mulf %56, %515 : vector<16x16xf32>
    %517 = arith.addf %514, %516 : vector<16x16xf32>
    %518 = vector.extract_strided_slice %191 {offsets = [2, 0], sizes = [16, 16], strides = [1, 1]} : vector<18x18xf32> to vector<16x16xf32>
    %519 = arith.mulf %71, %518 : vector<16x16xf32>
    %520 = arith.addf %517, %519 : vector<16x16xf32>
    %521 = vector.extract_strided_slice %206 {offsets = [2, 0], sizes = [16, 16], strides = [1, 1]} : vector<18x18xf32> to vector<16x16xf32>
    %522 = arith.mulf %86, %521 : vector<16x16xf32>
    %523 = arith.addf %520, %522 : vector<16x16xf32>
    %524 = vector.extract_strided_slice %221 {offsets = [2, 0], sizes = [16, 16], strides = [1, 1]} : vector<18x18xf32> to vector<16x16xf32>
    %525 = arith.mulf %101, %524 : vector<16x16xf32>
    %526 = arith.addf %523, %525 : vector<16x16xf32>
    %527 = vector.extract_strided_slice %236 {offsets = [2, 0], sizes = [16, 16], strides = [1, 1]} : vector<18x18xf32> to vector<16x16xf32>
    %528 = arith.mulf %116, %527 : vector<16x16xf32>
    %529 = arith.addf %526, %528 : vector<16x16xf32>
    %530 = vector.extract_strided_slice %251 {offsets = [2, 0], sizes = [16, 16], strides = [1, 1]} : vector<18x18xf32> to vector<16x16xf32>
    %531 = arith.mulf %131, %530 : vector<16x16xf32>
    %532 = arith.addf %529, %531 : vector<16x16xf32>
    %533 = vector.extract_strided_slice %146 {offsets = [2, 1], sizes = [16, 16], strides = [1, 1]} : vector<18x18xf32> to vector<16x16xf32>
    %534 = arith.mulf %26, %533 : vector<16x16xf32>
    %535 = vector.extract_strided_slice %161 {offsets = [2, 1], sizes = [16, 16], strides = [1, 1]} : vector<18x18xf32> to vector<16x16xf32>
    %536 = arith.mulf %41, %535 : vector<16x16xf32>
    %537 = arith.addf %534, %536 : vector<16x16xf32>
    %538 = vector.extract_strided_slice %176 {offsets = [2, 1], sizes = [16, 16], strides = [1, 1]} : vector<18x18xf32> to vector<16x16xf32>
    %539 = arith.mulf %56, %538 : vector<16x16xf32>
    %540 = arith.addf %537, %539 : vector<16x16xf32>
    %541 = vector.extract_strided_slice %191 {offsets = [2, 1], sizes = [16, 16], strides = [1, 1]} : vector<18x18xf32> to vector<16x16xf32>
    %542 = arith.mulf %71, %541 : vector<16x16xf32>
    %543 = arith.addf %540, %542 : vector<16x16xf32>
    %544 = vector.extract_strided_slice %206 {offsets = [2, 1], sizes = [16, 16], strides = [1, 1]} : vector<18x18xf32> to vector<16x16xf32>
    %545 = arith.mulf %86, %544 : vector<16x16xf32>
    %546 = arith.addf %543, %545 : vector<16x16xf32>
    %547 = vector.extract_strided_slice %221 {offsets = [2, 1], sizes = [16, 16], strides = [1, 1]} : vector<18x18xf32> to vector<16x16xf32>
    %548 = arith.mulf %101, %547 : vector<16x16xf32>
    %549 = arith.addf %546, %548 : vector<16x16xf32>
    %550 = vector.extract_strided_slice %236 {offsets = [2, 1], sizes = [16, 16], strides = [1, 1]} : vector<18x18xf32> to vector<16x16xf32>
    %551 = arith.mulf %116, %550 : vector<16x16xf32>
    %552 = arith.addf %549, %551 : vector<16x16xf32>
    %553 = vector.extract_strided_slice %251 {offsets = [2, 1], sizes = [16, 16], strides = [1, 1]} : vector<18x18xf32> to vector<16x16xf32>
    %554 = arith.mulf %131, %553 : vector<16x16xf32>
    %555 = arith.addf %552, %554 : vector<16x16xf32>
    %556 = vector.extract_strided_slice %146 {offsets = [2, 2], sizes = [16, 16], strides = [1, 1]} : vector<18x18xf32> to vector<16x16xf32>
    %557 = arith.mulf %26, %556 : vector<16x16xf32>
    %558 = vector.extract_strided_slice %161 {offsets = [2, 2], sizes = [16, 16], strides = [1, 1]} : vector<18x18xf32> to vector<16x16xf32>
    %559 = arith.mulf %41, %558 : vector<16x16xf32>
    %560 = arith.addf %557, %559 : vector<16x16xf32>
    %561 = vector.extract_strided_slice %176 {offsets = [2, 2], sizes = [16, 16], strides = [1, 1]} : vector<18x18xf32> to vector<16x16xf32>
    %562 = arith.mulf %56, %561 : vector<16x16xf32>
    %563 = arith.addf %560, %562 : vector<16x16xf32>
    %564 = vector.extract_strided_slice %191 {offsets = [2, 2], sizes = [16, 16], strides = [1, 1]} : vector<18x18xf32> to vector<16x16xf32>
    %565 = arith.mulf %71, %564 : vector<16x16xf32>
    %566 = arith.addf %563, %565 : vector<16x16xf32>
    %567 = vector.extract_strided_slice %206 {offsets = [2, 2], sizes = [16, 16], strides = [1, 1]} : vector<18x18xf32> to vector<16x16xf32>
    %568 = arith.mulf %86, %567 : vector<16x16xf32>
    %569 = arith.addf %566, %568 : vector<16x16xf32>
    %570 = vector.extract_strided_slice %221 {offsets = [2, 2], sizes = [16, 16], strides = [1, 1]} : vector<18x18xf32> to vector<16x16xf32>
    %571 = arith.mulf %101, %570 : vector<16x16xf32>
    %572 = arith.addf %569, %571 : vector<16x16xf32>
    %573 = vector.extract_strided_slice %236 {offsets = [2, 2], sizes = [16, 16], strides = [1, 1]} : vector<18x18xf32> to vector<16x16xf32>
    %574 = arith.mulf %116, %573 : vector<16x16xf32>
    %575 = arith.addf %572, %574 : vector<16x16xf32>
    %576 = vector.extract_strided_slice %251 {offsets = [2, 2], sizes = [16, 16], strides = [1, 1]} : vector<18x18xf32> to vector<16x16xf32>
    %577 = arith.mulf %131, %576 : vector<16x16xf32>
    %578 = arith.addf %575, %577 : vector<16x16xf32>
    %579 = arith.maximumf %394, %417 : vector<16x16xf32>
    %580 = arith.maximumf %579, %440 : vector<16x16xf32>
    %581 = arith.maximumf %580, %463 : vector<16x16xf32>
    %582 = arith.maximumf %581, %486 : vector<16x16xf32>
    %583 = arith.maximumf %582, %509 : vector<16x16xf32>
    %584 = arith.maximumf %583, %532 : vector<16x16xf32>
    %585 = arith.maximumf %584, %555 : vector<16x16xf32>
    %586 = arith.maximumf %585, %578 : vector<16x16xf32>
    %587 = arith.subf %394, %586 : vector<16x16xf32>
    %588 = math.exp %587 : vector<16x16xf32>
    %589 = arith.subf %417, %586 : vector<16x16xf32>
    %590 = math.exp %589 : vector<16x16xf32>
    %591 = arith.subf %440, %586 : vector<16x16xf32>
    %592 = math.exp %591 : vector<16x16xf32>
    %593 = arith.subf %463, %586 : vector<16x16xf32>
    %594 = math.exp %593 : vector<16x16xf32>
    %595 = arith.subf %486, %586 : vector<16x16xf32>
    %596 = math.exp %595 : vector<16x16xf32>
    %597 = arith.subf %509, %586 : vector<16x16xf32>
    %598 = math.exp %597 : vector<16x16xf32>
    %599 = arith.subf %532, %586 : vector<16x16xf32>
    %600 = math.exp %599 : vector<16x16xf32>
    %601 = arith.subf %555, %586 : vector<16x16xf32>
    %602 = math.exp %601 : vector<16x16xf32>
    %603 = arith.subf %578, %586 : vector<16x16xf32>
    %604 = math.exp %603 : vector<16x16xf32>
    %605 = arith.addf %588, %590 : vector<16x16xf32>
    %606 = arith.addf %605, %592 : vector<16x16xf32>
    %607 = arith.addf %606, %594 : vector<16x16xf32>
    %608 = arith.addf %607, %596 : vector<16x16xf32>
    %609 = arith.addf %608, %598 : vector<16x16xf32>
    %610 = arith.addf %609, %600 : vector<16x16xf32>
    %611 = arith.addf %610, %602 : vector<16x16xf32>
    %612 = arith.addf %611, %604 : vector<16x16xf32>
    %cst = arith.constant 1.000000e+00 : f32
    %613 = vector.broadcast %cst : f32 to vector<16x16xf32>
    %614 = arith.divf %613, %612 : vector<16x16xf32>
    %615 = arith.mulf %588, %614 : vector<16x16xf32>
    %616 = arith.mulf %590, %614 : vector<16x16xf32>
    %617 = arith.mulf %592, %614 : vector<16x16xf32>
    %618 = arith.mulf %594, %614 : vector<16x16xf32>
    %619 = arith.mulf %596, %614 : vector<16x16xf32>
    %620 = arith.mulf %598, %614 : vector<16x16xf32>
    %621 = arith.mulf %600, %614 : vector<16x16xf32>
    %622 = arith.mulf %602, %614 : vector<16x16xf32>
    %623 = arith.mulf %604, %614 : vector<16x16xf32>
    %624 = vector.extract_strided_slice %266 {offsets = [0, 0], sizes = [16, 16], strides = [1, 1]} : vector<18x18xf32> to vector<16x16xf32>
    %625 = arith.mulf %615, %624 : vector<16x16xf32>
    %626 = vector.extract_strided_slice %266 {offsets = [0, 1], sizes = [16, 16], strides = [1, 1]} : vector<18x18xf32> to vector<16x16xf32>
    %627 = arith.mulf %616, %626 : vector<16x16xf32>
    %628 = arith.addf %625, %627 : vector<16x16xf32>
    %629 = vector.extract_strided_slice %266 {offsets = [0, 2], sizes = [16, 16], strides = [1, 1]} : vector<18x18xf32> to vector<16x16xf32>
    %630 = arith.mulf %617, %629 : vector<16x16xf32>
    %631 = arith.addf %628, %630 : vector<16x16xf32>
    %632 = vector.extract_strided_slice %266 {offsets = [1, 0], sizes = [16, 16], strides = [1, 1]} : vector<18x18xf32> to vector<16x16xf32>
    %633 = arith.mulf %618, %632 : vector<16x16xf32>
    %634 = arith.addf %631, %633 : vector<16x16xf32>
    %635 = vector.extract_strided_slice %266 {offsets = [1, 1], sizes = [16, 16], strides = [1, 1]} : vector<18x18xf32> to vector<16x16xf32>
    %636 = arith.mulf %619, %635 : vector<16x16xf32>
    %637 = arith.addf %634, %636 : vector<16x16xf32>
    %638 = vector.extract_strided_slice %266 {offsets = [1, 2], sizes = [16, 16], strides = [1, 1]} : vector<18x18xf32> to vector<16x16xf32>
    %639 = arith.mulf %620, %638 : vector<16x16xf32>
    %640 = arith.addf %637, %639 : vector<16x16xf32>
    %641 = vector.extract_strided_slice %266 {offsets = [2, 0], sizes = [16, 16], strides = [1, 1]} : vector<18x18xf32> to vector<16x16xf32>
    %642 = arith.mulf %621, %641 : vector<16x16xf32>
    %643 = arith.addf %640, %642 : vector<16x16xf32>
    %644 = vector.extract_strided_slice %266 {offsets = [2, 1], sizes = [16, 16], strides = [1, 1]} : vector<18x18xf32> to vector<16x16xf32>
    %645 = arith.mulf %622, %644 : vector<16x16xf32>
    %646 = arith.addf %643, %645 : vector<16x16xf32>
    %647 = vector.extract_strided_slice %266 {offsets = [2, 2], sizes = [16, 16], strides = [1, 1]} : vector<18x18xf32> to vector<16x16xf32>
    %648 = arith.mulf %623, %647 : vector<16x16xf32>
    %649 = arith.addf %646, %648 : vector<16x16xf32>
    %c0_296 = arith.constant 0 : index
    %c0_297 = arith.constant 0 : index
    %c0_298 = arith.constant 0 : index
    %c0_299 = arith.constant 0 : index
    %650 = vector.load %arg3[%c0_296, %c0_297, %c0_298, %c0_299] : memref<1x8x16x16xf32, #tpu.memory_space<vmem>>, vector<1x1x16x16xf32>
    %651 = vector.shape_cast %650 : vector<1x1x16x16xf32> to vector<16x16xf32>
    %652 = vector.shape_cast %649 : vector<16x16xf32> to vector<1x1x16x16xf32>
    tpu.vector_store %arg3[%c0_296, %c0_297, %c0_298, %c0_299], %652 {strides = array<i32>} : memref<1x8x16x16xf32, #tpu.memory_space<vmem>>, vector<1x1x16x16xf32>,
    %653 = vector.extract_strided_slice %281 {offsets = [0, 0], sizes = [16, 16], strides = [1, 1]} : vector<18x18xf32> to vector<16x16xf32>
    %654 = arith.mulf %615, %653 : vector<16x16xf32>
    %655 = vector.extract_strided_slice %281 {offsets = [0, 1], sizes = [16, 16], strides = [1, 1]} : vector<18x18xf32> to vector<16x16xf32>
    %656 = arith.mulf %616, %655 : vector<16x16xf32>
    %657 = arith.addf %654, %656 : vector<16x16xf32>
    %658 = vector.extract_strided_slice %281 {offsets = [0, 2], sizes = [16, 16], strides = [1, 1]} : vector<18x18xf32> to vector<16x16xf32>
    %659 = arith.mulf %617, %658 : vector<16x16xf32>
    %660 = arith.addf %657, %659 : vector<16x16xf32>
    %661 = vector.extract_strided_slice %281 {offsets = [1, 0], sizes = [16, 16], strides = [1, 1]} : vector<18x18xf32> to vector<16x16xf32>
    %662 = arith.mulf %618, %661 : vector<16x16xf32>
    %663 = arith.addf %660, %662 : vector<16x16xf32>
    %664 = vector.extract_strided_slice %281 {offsets = [1, 1], sizes = [16, 16], strides = [1, 1]} : vector<18x18xf32> to vector<16x16xf32>
    %665 = arith.mulf %619, %664 : vector<16x16xf32>
    %666 = arith.addf %663, %665 : vector<16x16xf32>
    %667 = vector.extract_strided_slice %281 {offsets = [1, 2], sizes = [16, 16], strides = [1, 1]} : vector<18x18xf32> to vector<16x16xf32>
    %668 = arith.mulf %620, %667 : vector<16x16xf32>
    %669 = arith.addf %666, %668 : vector<16x16xf32>
    %670 = vector.extract_strided_slice %281 {offsets = [2, 0], sizes = [16, 16], strides = [1, 1]} : vector<18x18xf32> to vector<16x16xf32>
    %671 = arith.mulf %621, %670 : vector<16x16xf32>
    %672 = arith.addf %669, %671 : vector<16x16xf32>
    %673 = vector.extract_strided_slice %281 {offsets = [2, 1], sizes = [16, 16], strides = [1, 1]} : vector<18x18xf32> to vector<16x16xf32>
    %674 = arith.mulf %622, %673 : vector<16x16xf32>
    %675 = arith.addf %672, %674 : vector<16x16xf32>
    %676 = vector.extract_strided_slice %281 {offsets = [2, 2], sizes = [16, 16], strides = [1, 1]} : vector<18x18xf32> to vector<16x16xf32>
    %677 = arith.mulf %623, %676 : vector<16x16xf32>
    %678 = arith.addf %675, %677 : vector<16x16xf32>
    %c0_300 = arith.constant 0 : index
    %c1_301 = arith.constant 1 : index
    %c0_302 = arith.constant 0 : index
    %c0_303 = arith.constant 0 : index
    %679 = vector.load %arg3[%c0_300, %c1_301, %c0_302, %c0_303] : memref<1x8x16x16xf32, #tpu.memory_space<vmem>>, vector<1x1x16x16xf32>
    %680 = vector.shape_cast %679 : vector<1x1x16x16xf32> to vector<16x16xf32>
    %681 = vector.shape_cast %678 : vector<16x16xf32> to vector<1x1x16x16xf32>
    tpu.vector_store %arg3[%c0_300, %c1_301, %c0_302, %c0_303], %681 {strides = array<i32>} : memref<1x8x16x16xf32, #tpu.memory_space<vmem>>, vector<1x1x16x16xf32>,
    %682 = vector.extract_strided_slice %296 {offsets = [0, 0], sizes = [16, 16], strides = [1, 1]} : vector<18x18xf32> to vector<16x16xf32>
    %683 = arith.mulf %615, %682 : vector<16x16xf32>
    %684 = vector.extract_strided_slice %296 {offsets = [0, 1], sizes = [16, 16], strides = [1, 1]} : vector<18x18xf32> to vector<16x16xf32>
    %685 = arith.mulf %616, %684 : vector<16x16xf32>
    %686 = arith.addf %683, %685 : vector<16x16xf32>
    %687 = vector.extract_strided_slice %296 {offsets = [0, 2], sizes = [16, 16], strides = [1, 1]} : vector<18x18xf32> to vector<16x16xf32>
    %688 = arith.mulf %617, %687 : vector<16x16xf32>
    %689 = arith.addf %686, %688 : vector<16x16xf32>
    %690 = vector.extract_strided_slice %296 {offsets = [1, 0], sizes = [16, 16], strides = [1, 1]} : vector<18x18xf32> to vector<16x16xf32>
    %691 = arith.mulf %618, %690 : vector<16x16xf32>
    %692 = arith.addf %689, %691 : vector<16x16xf32>
    %693 = vector.extract_strided_slice %296 {offsets = [1, 1], sizes = [16, 16], strides = [1, 1]} : vector<18x18xf32> to vector<16x16xf32>
    %694 = arith.mulf %619, %693 : vector<16x16xf32>
    %695 = arith.addf %692, %694 : vector<16x16xf32>
    %696 = vector.extract_strided_slice %296 {offsets = [1, 2], sizes = [16, 16], strides = [1, 1]} : vector<18x18xf32> to vector<16x16xf32>
    %697 = arith.mulf %620, %696 : vector<16x16xf32>
    %698 = arith.addf %695, %697 : vector<16x16xf32>
    %699 = vector.extract_strided_slice %296 {offsets = [2, 0], sizes = [16, 16], strides = [1, 1]} : vector<18x18xf32> to vector<16x16xf32>
    %700 = arith.mulf %621, %699 : vector<16x16xf32>
    %701 = arith.addf %698, %700 : vector<16x16xf32>
    %702 = vector.extract_strided_slice %296 {offsets = [2, 1], sizes = [16, 16], strides = [1, 1]} : vector<18x18xf32> to vector<16x16xf32>
    %703 = arith.mulf %622, %702 : vector<16x16xf32>
    %704 = arith.addf %701, %703 : vector<16x16xf32>
    %705 = vector.extract_strided_slice %296 {offsets = [2, 2], sizes = [16, 16], strides = [1, 1]} : vector<18x18xf32> to vector<16x16xf32>
    %706 = arith.mulf %623, %705 : vector<16x16xf32>
    %707 = arith.addf %704, %706 : vector<16x16xf32>
    %c0_304 = arith.constant 0 : index
    %c2_305 = arith.constant 2 : index
    %c0_306 = arith.constant 0 : index
    %c0_307 = arith.constant 0 : index
    %708 = vector.load %arg3[%c0_304, %c2_305, %c0_306, %c0_307] : memref<1x8x16x16xf32, #tpu.memory_space<vmem>>, vector<1x1x16x16xf32>
    %709 = vector.shape_cast %708 : vector<1x1x16x16xf32> to vector<16x16xf32>
    %710 = vector.shape_cast %707 : vector<16x16xf32> to vector<1x1x16x16xf32>
    tpu.vector_store %arg3[%c0_304, %c2_305, %c0_306, %c0_307], %710 {strides = array<i32>} : memref<1x8x16x16xf32, #tpu.memory_space<vmem>>, vector<1x1x16x16xf32>,
    %711 = vector.extract_strided_slice %311 {offsets = [0, 0], sizes = [16, 16], strides = [1, 1]} : vector<18x18xf32> to vector<16x16xf32>
    %712 = arith.mulf %615, %711 : vector<16x16xf32>
    %713 = vector.extract_strided_slice %311 {offsets = [0, 1], sizes = [16, 16], strides = [1, 1]} : vector<18x18xf32> to vector<16x16xf32>
    %714 = arith.mulf %616, %713 : vector<16x16xf32>
    %715 = arith.addf %712, %714 : vector<16x16xf32>
    %716 = vector.extract_strided_slice %311 {offsets = [0, 2], sizes = [16, 16], strides = [1, 1]} : vector<18x18xf32> to vector<16x16xf32>
    %717 = arith.mulf %617, %716 : vector<16x16xf32>
    %718 = arith.addf %715, %717 : vector<16x16xf32>
    %719 = vector.extract_strided_slice %311 {offsets = [1, 0], sizes = [16, 16], strides = [1, 1]} : vector<18x18xf32> to vector<16x16xf32>
    %720 = arith.mulf %618, %719 : vector<16x16xf32>
    %721 = arith.addf %718, %720 : vector<16x16xf32>
    %722 = vector.extract_strided_slice %311 {offsets = [1, 1], sizes = [16, 16], strides = [1, 1]} : vector<18x18xf32> to vector<16x16xf32>
    %723 = arith.mulf %619, %722 : vector<16x16xf32>
    %724 = arith.addf %721, %723 : vector<16x16xf32>
    %725 = vector.extract_strided_slice %311 {offsets = [1, 2], sizes = [16, 16], strides = [1, 1]} : vector<18x18xf32> to vector<16x16xf32>
    %726 = arith.mulf %620, %725 : vector<16x16xf32>
    %727 = arith.addf %724, %726 : vector<16x16xf32>
    %728 = vector.extract_strided_slice %311 {offsets = [2, 0], sizes = [16, 16], strides = [1, 1]} : vector<18x18xf32> to vector<16x16xf32>
    %729 = arith.mulf %621, %728 : vector<16x16xf32>
    %730 = arith.addf %727, %729 : vector<16x16xf32>
    %731 = vector.extract_strided_slice %311 {offsets = [2, 1], sizes = [16, 16], strides = [1, 1]} : vector<18x18xf32> to vector<16x16xf32>
    %732 = arith.mulf %622, %731 : vector<16x16xf32>
    %733 = arith.addf %730, %732 : vector<16x16xf32>
    %734 = vector.extract_strided_slice %311 {offsets = [2, 2], sizes = [16, 16], strides = [1, 1]} : vector<18x18xf32> to vector<16x16xf32>
    %735 = arith.mulf %623, %734 : vector<16x16xf32>
    %736 = arith.addf %733, %735 : vector<16x16xf32>
    %c0_308 = arith.constant 0 : index
    %c3_309 = arith.constant 3 : index
    %c0_310 = arith.constant 0 : index
    %c0_311 = arith.constant 0 : index
    %737 = vector.load %arg3[%c0_308, %c3_309, %c0_310, %c0_311] : memref<1x8x16x16xf32, #tpu.memory_space<vmem>>, vector<1x1x16x16xf32>
    %738 = vector.shape_cast %737 : vector<1x1x16x16xf32> to vector<16x16xf32>
    %739 = vector.shape_cast %736 : vector<16x16xf32> to vector<1x1x16x16xf32>
    tpu.vector_store %arg3[%c0_308, %c3_309, %c0_310, %c0_311], %739 {strides = array<i32>} : memref<1x8x16x16xf32, #tpu.memory_space<vmem>>, vector<1x1x16x16xf32>,
    %740 = vector.extract_strided_slice %326 {offsets = [0, 0], sizes = [16, 16], strides = [1, 1]} : vector<18x18xf32> to vector<16x16xf32>
    %741 = arith.mulf %615, %740 : vector<16x16xf32>
    %742 = vector.extract_strided_slice %326 {offsets = [0, 1], sizes = [16, 16], strides = [1, 1]} : vector<18x18xf32> to vector<16x16xf32>
    %743 = arith.mulf %616, %742 : vector<16x16xf32>
    %744 = arith.addf %741, %743 : vector<16x16xf32>
    %745 = vector.extract_strided_slice %326 {offsets = [0, 2], sizes = [16, 16], strides = [1, 1]} : vector<18x18xf32> to vector<16x16xf32>
    %746 = arith.mulf %617, %745 : vector<16x16xf32>
    %747 = arith.addf %744, %746 : vector<16x16xf32>
    %748 = vector.extract_strided_slice %326 {offsets = [1, 0], sizes = [16, 16], strides = [1, 1]} : vector<18x18xf32> to vector<16x16xf32>
    %749 = arith.mulf %618, %748 : vector<16x16xf32>
    %750 = arith.addf %747, %749 : vector<16x16xf32>
    %751 = vector.extract_strided_slice %326 {offsets = [1, 1], sizes = [16, 16], strides = [1, 1]} : vector<18x18xf32> to vector<16x16xf32>
    %752 = arith.mulf %619, %751 : vector<16x16xf32>
    %753 = arith.addf %750, %752 : vector<16x16xf32>
    %754 = vector.extract_strided_slice %326 {offsets = [1, 2], sizes = [16, 16], strides = [1, 1]} : vector<18x18xf32> to vector<16x16xf32>
    %755 = arith.mulf %620, %754 : vector<16x16xf32>
    %756 = arith.addf %753, %755 : vector<16x16xf32>
    %757 = vector.extract_strided_slice %326 {offsets = [2, 0], sizes = [16, 16], strides = [1, 1]} : vector<18x18xf32> to vector<16x16xf32>
    %758 = arith.mulf %621, %757 : vector<16x16xf32>
    %759 = arith.addf %756, %758 : vector<16x16xf32>
    %760 = vector.extract_strided_slice %326 {offsets = [2, 1], sizes = [16, 16], strides = [1, 1]} : vector<18x18xf32> to vector<16x16xf32>
    %761 = arith.mulf %622, %760 : vector<16x16xf32>
    %762 = arith.addf %759, %761 : vector<16x16xf32>
    %763 = vector.extract_strided_slice %326 {offsets = [2, 2], sizes = [16, 16], strides = [1, 1]} : vector<18x18xf32> to vector<16x16xf32>
    %764 = arith.mulf %623, %763 : vector<16x16xf32>
    %765 = arith.addf %762, %764 : vector<16x16xf32>
    %c0_312 = arith.constant 0 : index
    %c4_313 = arith.constant 4 : index
    %c0_314 = arith.constant 0 : index
    %c0_315 = arith.constant 0 : index
    %766 = vector.load %arg3[%c0_312, %c4_313, %c0_314, %c0_315] : memref<1x8x16x16xf32, #tpu.memory_space<vmem>>, vector<1x1x16x16xf32>
    %767 = vector.shape_cast %766 : vector<1x1x16x16xf32> to vector<16x16xf32>
    %768 = vector.shape_cast %765 : vector<16x16xf32> to vector<1x1x16x16xf32>
    tpu.vector_store %arg3[%c0_312, %c4_313, %c0_314, %c0_315], %768 {strides = array<i32>} : memref<1x8x16x16xf32, #tpu.memory_space<vmem>>, vector<1x1x16x16xf32>,
    %769 = vector.extract_strided_slice %341 {offsets = [0, 0], sizes = [16, 16], strides = [1, 1]} : vector<18x18xf32> to vector<16x16xf32>
    %770 = arith.mulf %615, %769 : vector<16x16xf32>
    %771 = vector.extract_strided_slice %341 {offsets = [0, 1], sizes = [16, 16], strides = [1, 1]} : vector<18x18xf32> to vector<16x16xf32>
    %772 = arith.mulf %616, %771 : vector<16x16xf32>
    %773 = arith.addf %770, %772 : vector<16x16xf32>
    %774 = vector.extract_strided_slice %341 {offsets = [0, 2], sizes = [16, 16], strides = [1, 1]} : vector<18x18xf32> to vector<16x16xf32>
    %775 = arith.mulf %617, %774 : vector<16x16xf32>
    %776 = arith.addf %773, %775 : vector<16x16xf32>
    %777 = vector.extract_strided_slice %341 {offsets = [1, 0], sizes = [16, 16], strides = [1, 1]} : vector<18x18xf32> to vector<16x16xf32>
    %778 = arith.mulf %618, %777 : vector<16x16xf32>
    %779 = arith.addf %776, %778 : vector<16x16xf32>
    %780 = vector.extract_strided_slice %341 {offsets = [1, 1], sizes = [16, 16], strides = [1, 1]} : vector<18x18xf32> to vector<16x16xf32>
    %781 = arith.mulf %619, %780 : vector<16x16xf32>
    %782 = arith.addf %779, %781 : vector<16x16xf32>
    %783 = vector.extract_strided_slice %341 {offsets = [1, 2], sizes = [16, 16], strides = [1, 1]} : vector<18x18xf32> to vector<16x16xf32>
    %784 = arith.mulf %620, %783 : vector<16x16xf32>
    %785 = arith.addf %782, %784 : vector<16x16xf32>
    %786 = vector.extract_strided_slice %341 {offsets = [2, 0], sizes = [16, 16], strides = [1, 1]} : vector<18x18xf32> to vector<16x16xf32>
    %787 = arith.mulf %621, %786 : vector<16x16xf32>
    %788 = arith.addf %785, %787 : vector<16x16xf32>
    %789 = vector.extract_strided_slice %341 {offsets = [2, 1], sizes = [16, 16], strides = [1, 1]} : vector<18x18xf32> to vector<16x16xf32>
    %790 = arith.mulf %622, %789 : vector<16x16xf32>
    %791 = arith.addf %788, %790 : vector<16x16xf32>
    %792 = vector.extract_strided_slice %341 {offsets = [2, 2], sizes = [16, 16], strides = [1, 1]} : vector<18x18xf32> to vector<16x16xf32>
    %793 = arith.mulf %623, %792 : vector<16x16xf32>
    %794 = arith.addf %791, %793 : vector<16x16xf32>
    %c0_316 = arith.constant 0 : index
    %c5_317 = arith.constant 5 : index
    %c0_318 = arith.constant 0 : index
    %c0_319 = arith.constant 0 : index
    %795 = vector.load %arg3[%c0_316, %c5_317, %c0_318, %c0_319] : memref<1x8x16x16xf32, #tpu.memory_space<vmem>>, vector<1x1x16x16xf32>
    %796 = vector.shape_cast %795 : vector<1x1x16x16xf32> to vector<16x16xf32>
    %797 = vector.shape_cast %794 : vector<16x16xf32> to vector<1x1x16x16xf32>
    tpu.vector_store %arg3[%c0_316, %c5_317, %c0_318, %c0_319], %797 {strides = array<i32>} : memref<1x8x16x16xf32, #tpu.memory_space<vmem>>, vector<1x1x16x16xf32>,
    %798 = vector.extract_strided_slice %356 {offsets = [0, 0], sizes = [16, 16], strides = [1, 1]} : vector<18x18xf32> to vector<16x16xf32>
    %799 = arith.mulf %615, %798 : vector<16x16xf32>
    %800 = vector.extract_strided_slice %356 {offsets = [0, 1], sizes = [16, 16], strides = [1, 1]} : vector<18x18xf32> to vector<16x16xf32>
    %801 = arith.mulf %616, %800 : vector<16x16xf32>
    %802 = arith.addf %799, %801 : vector<16x16xf32>
    %803 = vector.extract_strided_slice %356 {offsets = [0, 2], sizes = [16, 16], strides = [1, 1]} : vector<18x18xf32> to vector<16x16xf32>
    %804 = arith.mulf %617, %803 : vector<16x16xf32>
    %805 = arith.addf %802, %804 : vector<16x16xf32>
    %806 = vector.extract_strided_slice %356 {offsets = [1, 0], sizes = [16, 16], strides = [1, 1]} : vector<18x18xf32> to vector<16x16xf32>
    %807 = arith.mulf %618, %806 : vector<16x16xf32>
    %808 = arith.addf %805, %807 : vector<16x16xf32>
    %809 = vector.extract_strided_slice %356 {offsets = [1, 1], sizes = [16, 16], strides = [1, 1]} : vector<18x18xf32> to vector<16x16xf32>
    %810 = arith.mulf %619, %809 : vector<16x16xf32>
    %811 = arith.addf %808, %810 : vector<16x16xf32>
    %812 = vector.extract_strided_slice %356 {offsets = [1, 2], sizes = [16, 16], strides = [1, 1]} : vector<18x18xf32> to vector<16x16xf32>
    %813 = arith.mulf %620, %812 : vector<16x16xf32>
    %814 = arith.addf %811, %813 : vector<16x16xf32>
    %815 = vector.extract_strided_slice %356 {offsets = [2, 0], sizes = [16, 16], strides = [1, 1]} : vector<18x18xf32> to vector<16x16xf32>
    %816 = arith.mulf %621, %815 : vector<16x16xf32>
    %817 = arith.addf %814, %816 : vector<16x16xf32>
    %818 = vector.extract_strided_slice %356 {offsets = [2, 1], sizes = [16, 16], strides = [1, 1]} : vector<18x18xf32> to vector<16x16xf32>
    %819 = arith.mulf %622, %818 : vector<16x16xf32>
    %820 = arith.addf %817, %819 : vector<16x16xf32>
    %821 = vector.extract_strided_slice %356 {offsets = [2, 2], sizes = [16, 16], strides = [1, 1]} : vector<18x18xf32> to vector<16x16xf32>
    %822 = arith.mulf %623, %821 : vector<16x16xf32>
    %823 = arith.addf %820, %822 : vector<16x16xf32>
    %c0_320 = arith.constant 0 : index
    %c6_321 = arith.constant 6 : index
    %c0_322 = arith.constant 0 : index
    %c0_323 = arith.constant 0 : index
    %824 = vector.load %arg3[%c0_320, %c6_321, %c0_322, %c0_323] : memref<1x8x16x16xf32, #tpu.memory_space<vmem>>, vector<1x1x16x16xf32>
    %825 = vector.shape_cast %824 : vector<1x1x16x16xf32> to vector<16x16xf32>
    %826 = vector.shape_cast %823 : vector<16x16xf32> to vector<1x1x16x16xf32>
    tpu.vector_store %arg3[%c0_320, %c6_321, %c0_322, %c0_323], %826 {strides = array<i32>} : memref<1x8x16x16xf32, #tpu.memory_space<vmem>>, vector<1x1x16x16xf32>,
    %827 = vector.extract_strided_slice %371 {offsets = [0, 0], sizes = [16, 16], strides = [1, 1]} : vector<18x18xf32> to vector<16x16xf32>
    %828 = arith.mulf %615, %827 : vector<16x16xf32>
    %829 = vector.extract_strided_slice %371 {offsets = [0, 1], sizes = [16, 16], strides = [1, 1]} : vector<18x18xf32> to vector<16x16xf32>
    %830 = arith.mulf %616, %829 : vector<16x16xf32>
    %831 = arith.addf %828, %830 : vector<16x16xf32>
    %832 = vector.extract_strided_slice %371 {offsets = [0, 2], sizes = [16, 16], strides = [1, 1]} : vector<18x18xf32> to vector<16x16xf32>
    %833 = arith.mulf %617, %832 : vector<16x16xf32>
    %834 = arith.addf %831, %833 : vector<16x16xf32>
    %835 = vector.extract_strided_slice %371 {offsets = [1, 0], sizes = [16, 16], strides = [1, 1]} : vector<18x18xf32> to vector<16x16xf32>
    %836 = arith.mulf %618, %835 : vector<16x16xf32>
    %837 = arith.addf %834, %836 : vector<16x16xf32>
    %838 = vector.extract_strided_slice %371 {offsets = [1, 1], sizes = [16, 16], strides = [1, 1]} : vector<18x18xf32> to vector<16x16xf32>
    %839 = arith.mulf %619, %838 : vector<16x16xf32>
    %840 = arith.addf %837, %839 : vector<16x16xf32>
    %841 = vector.extract_strided_slice %371 {offsets = [1, 2], sizes = [16, 16], strides = [1, 1]} : vector<18x18xf32> to vector<16x16xf32>
    %842 = arith.mulf %620, %841 : vector<16x16xf32>
    %843 = arith.addf %840, %842 : vector<16x16xf32>
    %844 = vector.extract_strided_slice %371 {offsets = [2, 0], sizes = [16, 16], strides = [1, 1]} : vector<18x18xf32> to vector<16x16xf32>
    %845 = arith.mulf %621, %844 : vector<16x16xf32>
    %846 = arith.addf %843, %845 : vector<16x16xf32>
    %847 = vector.extract_strided_slice %371 {offsets = [2, 1], sizes = [16, 16], strides = [1, 1]} : vector<18x18xf32> to vector<16x16xf32>
    %848 = arith.mulf %622, %847 : vector<16x16xf32>
    %849 = arith.addf %846, %848 : vector<16x16xf32>
    %850 = vector.extract_strided_slice %371 {offsets = [2, 2], sizes = [16, 16], strides = [1, 1]} : vector<18x18xf32> to vector<16x16xf32>
    %851 = arith.mulf %623, %850 : vector<16x16xf32>
    %852 = arith.addf %849, %851 : vector<16x16xf32>
    %c0_324 = arith.constant 0 : index
    %c7_325 = arith.constant 7 : index
    %c0_326 = arith.constant 0 : index
    %c0_327 = arith.constant 0 : index
    %853 = vector.load %arg3[%c0_324, %c7_325, %c0_326, %c0_327] : memref<1x8x16x16xf32, #tpu.memory_space<vmem>>, vector<1x1x16x16xf32>
    %854 = vector.shape_cast %853 : vector<1x1x16x16xf32> to vector<16x16xf32>
    %855 = vector.shape_cast %852 : vector<16x16xf32> to vector<1x1x16x16xf32>
    tpu.vector_store %arg3[%c0_324, %c7_325, %c0_326, %c0_327], %855 {strides = array<i32>} : memref<1x8x16x16xf32, #tpu.memory_space<vmem>>, vector<1x1x16x16xf32>,
    return
  }
  func.func @transform_0(%arg0: i32) -> (i32, i32, i32) {
    %c0_i32 = arith.constant 0 : i32
    %c0_i32_0 = arith.constant 0 : i32
    %c0_i32_1 = arith.constant 0 : i32
    %c0_i32_2 = arith.constant 0 : i32
    return %c0_i32, %c0_i32_0, %c0_i32_1 : i32, i32, i32
  }
  func.func @transform_1(%arg0: i32) -> (i32, i32, i32, i32) {
    %c0_i32 = arith.constant 0 : i32
    %c0_i32_0 = arith.constant 0 : i32
    %c0_i32_1 = arith.constant 0 : i32
    %c0_i32_2 = arith.constant 0 : i32
    return %arg0, %c0_i32, %c0_i32_0, %c0_i32_1 : i32, i32, i32, i32
  }
  func.func @transform_2(%arg0: i32) -> (i32, i32, i32, i32) {
    %c0_i32 = arith.constant 0 : i32
    %c0_i32_0 = arith.constant 0 : i32
    %c0_i32_1 = arith.constant 0 : i32
    %c0_i32_2 = arith.constant 0 : i32
    return %arg0, %c0_i32, %c0_i32_0, %c0_i32_1 : i32, i32, i32, i32
  }
}

</mosaic_0001>

<bundles_post_ra>
// kernel: tpu_custom_call.1
= control target key start
LH: loop header
LB: loop body
LE: loop exit
PB: predicated region body
PF: predicated region fallthrough
CT: control target
= control target key end

     0   :  { %7 = vsyncpa [#allocation4], 0  ;;  %s7204_s0 = inlined_call_operand.vmem [shape: f32[3,8,4], index: 0, kind: input, shape index: {}]   ;;  %s7205_s1 = inlined_call_operand.vmem [shape: f32[2,4,18,18], index: 1, kind: input, shape index: {}]   ;;  %s7206_s2 = inlined_call_operand.hbm [shape: f32[2,8,16,16], index: 2, kind: output, shape index: {}]  }
   0x1   :  { %8 = vsyncpa [#allocation3], 0 }
   0x2   :  { %10 = vsyncpa [#allocation3 + $0x1], 0  ;;  %s3598_s9 = smov 0   ;;  %s3600_s10 = smov 0  }
   0x3   :  { %s3602_s11 = smov 0   ;;  %s3604_s12 = smov 0  }
   0x4 LB: > { %s3619_s13 = sadd.s32 4294967295, %s3573_s12   ;;  %s3200_s14 = sadd.s32 4294967294, %s3573_s12   ;;  %s3573_s12 = sphi %s3604_s12, %s7976_s12   ;;  %s3569_s11 = sphi %s3602_s11, %s7975_s11   ;;  %s3565_s10 = sphi %s3600_s10, %s7974_s10   ;;  %s3561_s9 = sphi %s3598_s9, %s7973_s9  }
   0x5   : > { %s3623_s15 = sadd.s32 1, %s3573_s12   ;;  %s70_s16 = sadd.s32 1, %s3569_s11 }
   0x6   : > { %s67_s17 = ssub.s32 %s3573_s12, %s3623_s15  ;;  %p80_p0 = scmp.ne.s32.totalorder %s3569_s11, %s3565_s10 }
   0x7   : > { %p68_p1 = scmp.eq.s32.totalorder %s67_s17, 0  ;;  %p81_p2 = scmp.eq.s32.totalorder %s3619_s13, 1 }
   0x8   : > { %p86_p3 = scmp.ne.s32.totalorder %s3565_s10, %s3561_s9  ;;  %p87_p4 = scmp.eq.s32.totalorder %s3200_s14, 1 }
   0x9   : > { %s3634_s18 = scalar_select %p68_p1, %s3569_s11, %s70_s16  }
   0xa   : > { %p3636_p5 = por %p81_p2, %p80_p0  ;;  %p3640_p6 = por %p87_p4, %p86_p3 }
   0xb   : > { %p3201_p7 = scmp.ge.s32.totalorder %s3573_s12, 1  ;;  %p94_p8 = scmp.lt.s32.totalorder %s3573_s12, 3 }
   0xc   : > { %p3354_p9 = scmp.eq.s32.totalorder %s3619_s13, 0  ;;  %s106_s24 = sshll.u32 %s7204_s0, 4  ;;  %s107_s24 = int_to_ptr.vmem [resolvable:$true] %s106_s24 }
   0xd   : > { %p3647_p10 = pnand %p3201_p7, %p94_p8  ;;  %s3492_s26 = scalar_lea.vmem %s107_s24, 384 }
   0xe   : > { %p3493_p13 = scmp.ne.s32.totalorder %s107_s24, %s3492_s26  ;;  %p3500_p3 = scmp.lt.s32.totalorder %s107_s24, %s107_s24 }
   0xf   : > { %p3346_p11 = pneg %p3647_p10  ;;  %p3501_p4 = scmp.lt.s32.totalorder %s3492_s26, %s3492_s26 }
  0x11   : > { %p3658_p12 = pnand %p3354_p9, %p3346_p11  ;;  %p3502_p7 = por %p3501_p4, %p3500_p3 }
  0x13   : > { %p3494_p0 = pneg %p3658_p12 }
  0x15   : > { %p3495_p1 = pnand %p3494_p0, %p3493_p13 }
  0x17   : > { %p3496_p2 = pneg %p3495_p1 }
  0x19   : > { %p3503_p8 = pnand %p3502_p7, %p3496_p2 }
  0x1b   : > { %3506 = shalt.err (!%p3503_p8)
}
  0x1c   : > { %s3575_s27 = smov [#allocation2]   ;;  %s3576_s28 = smov 128  }
  0x1d   : > { %s3577_s29 = smov 8   ;;  %130 = sbr.rel (%p3647_p10) target bundleno = 1428 (0x594), region = 28 }
  0x1e   : > { %3349 = dma.vmem_to_smem (!%p3658_p12), %s107_s24, 384, %s3575_s27, [#allocation4], %s3576_s28, %s3576_s28, %s3577_s29  }
  0x24   : > { %3552 = dma.done.wait (%p3354_p9), [#allocation4], 384  }
  0x25   : > { %3554 = vsyncadd (%p3354_p9), [#allocation4], 4294966912 }
  0x26   : > { %136 = sfence }
  0x27   : > { %p153_p11 = scmp.lt.s32.totalorder %s3619_s13, 1  ;;  %s3248_s3 = sld [smem:[#allocation2 + $0x400]]  ;;  %vm871_vm0 = vcmask 1040384   ;;  %vm1500_vm1 = vcmask 1046528   ;;  %vm2140_vm2 = vcmask 130049   ;;  %vm2144_vm3 = vcmask 122880  }
  0x28   : > { %s3249_s5 = sld [smem:[#allocation2 + $0x401]]  ;;  %s3250_s6 = sld [smem:[#allocation2 + $0x402]]  ;;  %vm2142_vm4 = vcmask 130048  }
  0x29   : > { %s154_s30 = scalar_select %p153_p11, %s3619_s13, 1 }
  0x2a   : > { %s3251_s7 = sld [smem:[#allocation2 + $0x403]]  ;;  %s3693_s17 = sld [smem:[#allocation2]] }
  0x2b   : > { %s3339_s4 = smul.u32 96, %s154_s30  ;;  %s3702_s21 = sld [smem:[#allocation2 + $0x1]] }
  0x2c   : > { %s3252_s22 = sld [smem:[#allocation2 + $0x480]]  ;;  %s3253_s23 = sld [smem:[#allocation2 + $0x481]] }
  0x2d   : > { %s3677_s16 = scalar_lea.vmem %s7205_s1, %s3339_s4  ;;  %v3688_v3 = vstv %s3248_s3  ;;  %s3254_s24 = sld [smem:[#allocation2 + $0x482]] }
  0x2e   : > { %v3680_v0 = vld [vmem:[%s3677_s16 + $0x8] sm:$0xff]  ;;  %v3683_v1 = vld [vmem:[%s3677_s16 + $0x20] sm:$0xff]  ;;  %v3686_v2 = vld [vmem:[%s3677_s16 + $0x38] sm:$0xff]  ;;  %7429 = vst [vmem:[#allocation8_spill] sm:$0xff] %v3688_v3  ;;  %v3697_v6 = vstv %s3249_s5  ;;  %s3725_s25 = sld [smem:[#allocation2 + $0x81]]  ;;  %s3255_s26 = sld [smem:[#allocation2 + $0x483]] }
  0x2f   : > { %v3691_v4 = vld [vmem:[%s3677_s16 + $0x50] sm:$0xff]  ;;  %v408_v5 = vmul.f32 %v3688_v3, %v3680_v0  ;;  %7430 = vst [vmem:[#allocation9_spill] sm:$0xff] %v3697_v6  ;;  %v3700_v7 = vld [vmem:[%s3677_s16] sm:$0xff]  ;;  %v413_v8 = vmul.f32 %v3683_v1, %v3697_v6  ;;  %v3706_v9 = vstv %s3250_s6  ;;  %v3711_v11 = vld [vmem:[%s3677_s16 + $0x18] sm:$0xff]  ;;  %s3220_s27 = sld [smem:[#allocation2 + $0x80]]  ;;  %s3731_s28 = sld [smem:[#allocation2 + $0x2]] }
  0x30   : > { %7431 = vst [vmem:[#allocation10_spill] sm:$0xff] %v3706_v9  ;;  %v3708_v10 = vstv %s3251_s7  ;;  %v3714_v12 = vld [vmem:[%s3677_s16 + $0x30] sm:$0xff]  ;;  %v421_v13 = vmul.f32 %v3686_v2, %v3706_v9  ;;  %v3721_v16 = vld [vmem:[%s3677_s16 + $0x48] sm:$0xff]  ;;  %v407_v17 = vmul.f32 %v3688_v3, %v3700_v7  ;;  %v412_v18 = vmul.f32 %v3711_v11, %v3697_v6  ;;  %s3735_s29 = sld [smem:[#allocation2 + $0x82]]  ;;  %s3737_s30 = sld [smem:[#allocation2 + $0x500]] }
  0x31   : > { %7432 = vst [vmem:[#allocation11_spill] sm:$0xff] %v3708_v10  ;;  %v416_v14 = vadd.f32 %v413_v8, %v408_v5  ;;  %v429_v15 = vmul.f32 %v3691_v4, %v3708_v10  ;;  %v420_v19 = vmul.f32 %v3714_v12, %v3706_v9  ;;  %v428_v22 = vmul.f32 %v3721_v16, %v3708_v10  ;;  %s3743_s3 = sld [smem:[#allocation2 + $0x501]]  ;;  %s3745_s4 = sld [smem:[#allocation2 + $0x502]]  ;;  %v3776_v37 = vld [vmem:[%s3677_s16 + $0x10] sm:$0x3] }
  0x32   : > { %v415_v21 = vadd.f32 %v412_v18, %v407_v17  ;;  %v3741_v24 = vstv %s3252_s22  ;;  %v174_v25 = vstv %s3693_s17  ;;  %s3750_s5 = sld [smem:[#allocation2 + $0x503]]  ;;  %v3757_v29 = vstv %s3253_s23  ;;  %s3578_s7 = smov 1   ;;  %v3818_v54 = vld [vmem:[%s3677_s16 + $0x28] sm:$0x3] }
  0x33   : > { %v424_v20 = vadd.f32 %v421_v13, %v416_v14  ;;  %7434 = vst [vmem:[#allocation13_spill] sm:$0xff] %v3741_v24  ;;  %v436_v27 = vmul.f32 %v3741_v24, %v3700_v7  ;;  %s3752_s6 = sld [smem:[#allocation2 + $0x3]]  ;;  %7435 = vst [vmem:[#allocation14_spill] sm:$0xff] %v3757_v29  ;;  %v3759_v30 = vstv %s3254_s24  ;;  %v179_v32 = vstv %s3702_s21  ;;  %s3805_s14 = sld [smem:[#allocation2 + $0x100]] }
  0x34   : > { %v423_v26 = vadd.f32 %v420_v19, %v415_v21  ;;  %7436 = vst [vmem:[#allocation15_spill] sm:$0xff] %v3759_v30  ;;  %v3761_v31 = vstv %s3255_s26  ;;  %v441_v34 = vmul.f32 %v3711_v11, %v3757_v29  ;;  %v449_v35 = vmul.f32 %v3714_v12, %v3759_v30  ;;  %s3783_s8 = sld [smem:[#allocation2 + $0x83]]  ;;  %s3807_s17 = sld [smem:[#allocation2 + $0x101]]  ;;  %v3853_v19 = vld [vmem:[%s3677_s16 + $0x40] sm:$0x3] }
  0x35   : > { %v3739_v23 = vadd.f32 %v429_v15, %v424_v20  ;;  %7437 = vst [vmem:[#allocation16_spill] sm:$0xff] %v3761_v31  ;;  %v3773_v36 = vstv %s3725_s25  ;;  %v3781_v39 = vstv %s3220_s27  ;;  %v457_v41 = vmul.f32 %v3721_v16, %v3761_v31  ;;  %s3822_s21 = sld [smem:[#allocation2 + $0x102]]  ;;  %s3837_s22 = sld [smem:[#allocation2 + $0x103]]  ;;  %v3856_v20 = vld [vmem:[%s3677_s16 + $0x58] sm:$0x3] }
  0x36   : > { %v3764_v33 = vadd.f32 %v428_v22, %v423_v26  ;;  %v444_v40 = vadd.f32 %v441_v34, %v436_v27  ;;  %v177_v42 = vmul.f32 %v174_v25, %v3776_v37  ;;  %v3789_v43 = vstv %s3731_s28  ;;  %s3873_s23 = sld [smem:[#allocation2 + $0x580]]  ;;  %s3875_s24 = sld [smem:[#allocation2 + $0x581]] }
  0x37   : > { %7433 = vst [vmem:[#allocation12_spill] sm:$0xff] %v3739_v23  ;;  %v3755_v28 = vrot.slane %v3739_v23, 7  ;;  %v180_v44 = vmul.f32 %v3711_v11, %v179_v32  ;;  %v175_v45 = vmul.f32 %v174_v25, %v3700_v7  ;;  %v209_v46 = vmul.f32 %v3711_v11, %v3773_v36  ;;  %s3881_s25 = sld [smem:[#allocation2 + $0x582]]  ;;  %s3883_s26 = sld [smem:[#allocation2 + $0x583]] }
  0x38   : > { %7438 = vst [vmem:[#allocation17_spill] sm:$0xff] %v3764_v33  ;;  %v3779_v38 = vrot.slane %v3764_v33, 7  ;;  %v3798_v47 = vstv %s3735_s29  ;;  %v452_v48 = vadd.f32 %v449_v35, %v444_v40  ;;  %v3801_v49 = vstv %s3737_s30  ;;  %s3937_s27 = sld [smem:[#allocation2 + $0x180]]  ;;  %s3952_s28 = sld [smem:[#allocation2 + $0x181]] }
  0x39   : > { %879 = vrot.lane.b32.xlu1 %v3755_v28, %s3578_s7  ;;  %7439 = vst [vmem:[#allocation18_spill] sm:$0xff] %v3801_v49  ;;  %v204_v50 = vmul.f32 %v3781_v39, %v3700_v7  ;;  %v465_v51 = vmul.f32 %v3801_v49, %v3700_v7  ;;  %v3812_v52 = vstv %s3743_s3  ;;  %v3815_v53 = vstv %s3745_s4  ;;  %s3970_s29 = sld [smem:[#allocation2 + $0x182]]  ;;  %s3972_s30 = sld [smem:[#allocation2 + $0x183]] }
  0x3a   : > { %875 = vrot.lane.b32.xlu0 %v3779_v38, %s3578_s7  ;;  %7440 = vst [vmem:[#allocation19_spill] sm:$0xff] %v3812_v52  ;;  %7441 = vst [vmem:[#allocation20_spill] sm:$0xff] %v3815_v53  ;;  %v3820_v55 = vadd.f32 %v457_v41, %v452_v48  ;;  %v470_v56 = vmul.f32 %v3711_v11, %v3812_v52  ;;  %v478_v57 = vmul.f32 %v3714_v12, %v3815_v53  ;;  %s4001_s3 = sld [smem:[#allocation2 + $0x200]]  ;;  %s4012_s4 = sld [smem:[#allocation2 + $0x201]] }
  0x3b   : > { %v3829_v58 = vstv %s3750_s5  ;;  %v182_v59 = vmul.f32 %v3818_v54, %v179_v32  ;;  %v3833_v60 = vstv %s3752_s6  ;;  %v188_v61 = vmul.f32 %v3714_v12, %v3789_v43  ;;  %s4021_s5 = sld [smem:[#allocation2 + $0x202]]  ;;  %s4023_s6 = sld [smem:[#allocation2 + $0x203]] }
  0x3c   : > { %7442 = vst [vmem:[#allocation21_spill] sm:$0xff] %v3820_v55  ;;  %7443 = vst [vmem:[#allocation22_spill] sm:$0xff] %v3829_v58  ;;  %v176_v62 = vmul.f32 %v174_v25, %v3680_v0  ;;  %v183_v63 = vadd.f32 %v180_v44, %v175_v45  ;;  %v3841_v5 = vrot.slane %v3820_v55, 7  ;;  %v473_v8 = vadd.f32 %v470_v56, %v465_v51 }
  0x3d   : > { %v486_v13 = vmul.f32 %v3721_v16, %v3829_v58  ;;  %v217_v14 = vmul.f32 %v3714_v12, %v3798_v47  ;;  %v437_v15 = vmul.f32 %v3741_v24, %v3680_v0  ;;  %v442_v17 = vmul.f32 %v3683_v1, %v3757_v29 }
  0x3e   : > { %7444 = vst [vmem:[#allocation23_spill] sm:$0xff] %v3841_v5  ;;  %v181_v18 = vmul.f32 %v3683_v1, %v179_v32  ;;  %v3859_v21 = vstv %s3783_s8  ;;  %892 = vrot.lane.b32.xlu1 %v3841_v5, %s3578_s7  ;;  %v212_v22 = vadd.f32 %v209_v46, %v204_v50  ;;  %v481_v25 = vadd.f32 %v478_v57, %v473_v8  ;;  %s4048_s8 = sld [smem:[#allocation2 + $0x600]] }
  0x3f   : > { %v450_v26 = vmul.f32 %v3686_v2, %v3759_v30  ;;  %v190_v27 = vmul.f32 %v3853_v19, %v3789_v43  ;;  %v3869_v32 = vmul.f32 %v3856_v20, %v3833_v60  ;;  %v445_v34 = vadd.f32 %v442_v17, %v437_v15 }
  0x40   : > { %v458_v35 = vmul.f32 %v3691_v4, %v3761_v31  ;;  %v185_v40 = vadd.f32 %v182_v59, %v177_v42  ;;  %v196_v41 = vmul.f32 %v3721_v16, %v3833_v60  ;;  %v191_v44 = vadd.f32 %v188_v61, %v183_v63 }
  0x41   : > { %v3879_v45 = vadd.f32 %v486_v13, %v481_v25  ;;  %v225_v46 = vmul.f32 %v3721_v16, %v3859_v21  ;;  %v232_v48 = vstv %s3805_s14  ;;  %v237_v50 = vstv %s3807_s17  ;;  %s4050_s14 = sld [smem:[#allocation2 + $0x601]]  ;;  %s4079_s17 = sld [smem:[#allocation2 + $0x602]] }
  0x42   : > { %v453_v51 = vadd.f32 %v450_v26, %v445_v34  ;;  %v220_v56 = vadd.f32 %v217_v14, %v212_v22  ;;  %v245_v57 = vstv %s3822_s21  ;;  %v466_v59 = vmul.f32 %v3801_v49, %v3680_v0  ;;  %s4096_s21 = sld [smem:[#allocation2 + $0x603]] }
  0x43   : > { %7445 = vst [vmem:[#allocation24_spill] sm:$0xff] %v3879_v45  ;;  %v3891_v42 = vrot.slane %v3879_v45, 7  ;;  %v3896_v61 = vstv %s3837_s22  ;;  %v471_v8 = vmul.f32 %v3683_v1, %v3812_v52  ;;  %v479_v13 = vmul.f32 %v3686_v2, %v3815_v53  ;;  %s4098_s22 = sld [smem:[#allocation2 + $0x680]] }
  0x44   : > { %v3898_v63 = vadd.f32 %v458_v35, %v453_v51  ;;  %v3904_v15 = vadd.f32 %v190_v27, %v185_v40  ;;  %v3906_v14 = vadd.f32 %v196_v41, %v191_v44  ;;  %v238_v17 = vmul.f32 %v3711_v11, %v237_v50 }
  0x45   : > { %912 = vrot.lane.b32.xlu0 %v3891_v42, %s3578_s7  ;;  %v184_v22 = vadd.f32 %v181_v18, %v176_v62  ;;  %v233_v25 = vmul.f32 %v232_v48, %v3700_v7  ;;  %v474_v34 = vadd.f32 %v471_v8, %v466_v59  ;;  %v487_v27 = vmul.f32 %v3691_v4, %v3829_v58 }
  0x46   : > { %7446 = vst [vmem:[#allocation25_spill] sm:$0xff] %v3898_v63  ;;  %7447 = vst [vmem:[#allocation26_spill] sm:$0xff] %v3906_v14  ;;  %v3913_v26 = vrot.slane %v3898_v63, 7  ;;  %v3919_v35 = vmul.f32 %v3779_v38, %v3906_v14  ;;  %v3921_v40 = vadd.f32 %v225_v46, %v220_v56  ;;  %v246_v62 = vmul.f32 %v3714_v12, %v245_v57 }
  0x47   : > { %v3926_v18 = vmul.f32 %v3721_v16, %v3896_v61  ;;  %v206_v41 = vmul.f32 %v3781_v39, %v3776_v37  ;;  %v211_v44 = vmul.f32 %v3818_v54, %v3773_v36  ;;  %v482_v51 = vadd.f32 %v479_v13, %v474_v34 }
  0x48   : > { %7448 = vst [vmem:[#allocation27_spill] sm:$0xff] %v3921_v40  ;;  %896 = vrot.lane.b32.xlu1 %v3913_v26, %s3578_s7  ;;  %v3935_v59 = vstv %s3873_s23  ;;  %v3942_v56 = vstv %s3875_s24  ;;  %v3945_v8 = vstv %s3881_s25  ;;  %v241_v45 = vadd.f32 %v238_v17, %v233_v25  ;;  %s4117_s23 = sld [smem:[#allocation2 + $0x681]]  ;;  %s4119_s24 = sld [smem:[#allocation2 + $0x682]] }
  0x49   : > { %v494_v46 = vmul.f32 %v3935_v59, %v3700_v7  ;;  %v3948_v14 = vstv %s3883_s26  ;;  %v3950_v58 = vadd.f32 %v487_v27, %v482_v51  ;;  %v499_v13 = vmul.f32 %v3711_v11, %v3942_v56  ;;  %s4131_s25 = sld [smem:[#allocation2 + $0x683]]  ;;  %s4160_s26 = sld [smem:[#allocation2 + $0x280]] }
  0x4a   : > { %v507_v34 = vmul.f32 %v3714_v12, %v3945_v8  ;;  %v3960_v63 = vmul.f32 %v3841_v5, %v3921_v40  ;;  %v3964_v55 = vmul.f32 %v3853_v19, %v3798_v47  ;;  %v3968_v17 = vmul.f32 %v3856_v20, %v3859_v21 }
  0x4b   : > { %7449 = vst [vmem:[#allocation28_spill] sm:$0xff] %v3950_v58  ;;  %v189_v25 = vmul.f32 %v3686_v2, %v3789_v43  ;;  %v3977_v27 = vrot.slane %v3950_v58, 7  ;;  %v502_v51 = vadd.f32 %v499_v13, %v494_v46  ;;  %v515_v40 = vmul.f32 %v3721_v16, %v3948_v14 }
  0x4c   : > { %v234_v53 = vmul.f32 %v232_v48, %v3680_v0  ;;  %v235_v31 = vmul.f32 %v232_v48, %v3776_v37  ;;  %v240_v23 = vmul.f32 %v3818_v54, %v237_v50  ;;  %v239_v52 = vmul.f32 %v3683_v1, %v237_v50 }
  0x4d   : > { %v247_v49 = vmul.f32 %v3686_v2, %v245_v57  ;;  %v3986_v33 = vadd.f32 %v246_v62, %v241_v45  ;;  %v3988_v43 = vadd.f32 %v211_v44, %v206_v41  ;;  %916 = vrot.lane.b32.xlu0 %v3977_v27, %s3578_s7  ;;  %v510_v46 = vadd.f32 %v507_v34, %v502_v51 }
  0x4e   : > { %v197_v13 = vmul.f32 %v3691_v4, %v3833_v60  ;;  %v192_v58 = vadd.f32 %v189_v25, %v184_v22  ;;  %v3997_v48 = vsel %vm871_vm0, %v3779_v38, %v3755_v28  ;;  %v242_v50 = vadd.f32 %v239_v52, %v234_v53 }
  0x4f   : > { %7450 = vst [vmem:[#allocation29_spill] sm:$0xff] %v3997_v48  ;;  %v205_v45 = vmul.f32 %v3781_v39, %v3680_v0  ;;  %v4004_v62 = vmul.f32 %v3853_v19, %v245_v57  ;;  %v4006_v41 = vadd.f32 %v515_v40, %v510_v46  ;;  %v210_v60 = vmul.f32 %v3683_v1, %v3773_v36 }
  0x50   : > { %v218_v22 = vmul.f32 %v3686_v2, %v3798_v47  ;;  %v4014_v52 = vadd.f32 %v240_v23, %v235_v31  ;;  %v4017_v39 = vstv %s3937_s27  ;;  %v250_v53 = vadd.f32 %v247_v49, %v242_v50  ;;  %s4162_s27 = sld [smem:[#allocation2 + $0x281]] }
  0x51   : > { %7451 = vst [vmem:[#allocation30_spill] sm:$0xff] %v4006_v41  ;;  %v255_v57 = vmul.f32 %v3691_v4, %v3896_v61  ;;  %v4026_v40 = vstv %s3952_s28  ;;  %v4029_v36 = vrot.slane %v4006_v41, 7  ;;  %877 = vrot.lane.b32.xlu0 %v3997_v48, %s3578_s7  ;;  %v213_v23 = vadd.f32 %v210_v60, %v205_v45  ;;  %s4170_s28 = sld [smem:[#allocation2 + $0x282]] }
  0x52   : > { %v226_v31 = vmul.f32 %v3691_v4, %v3859_v21  ;;  %v4036_v47 = vstv %s3970_s29  ;;  %v4039_v49 = vstv %s3972_s30  ;;  %v4041_v44 = vadd.f32 %v197_v13, %v192_v58  ;;  %s4182_s29 = sld [smem:[#allocation2 + $0x283]]  ;;  %s4188_s30 = sld [smem:[#allocation2 + $0x300]] }
  0x53   : > { %7452 = vst [vmem:[#allocation31_spill] sm:$0xff] %v4029_v36  ;;  %v4046_v34 = vsel %vm871_vm0, %v3841_v5, %v3913_v26  ;;  %932 = vrot.lane.b32.xlu1 %v4029_v36, %s3578_s7  ;;  %v4057_v21 = vsel %vm871_vm0, %v3891_v42, %v3977_v27  ;;  %v221_v25 = vadd.f32 %v218_v22, %v213_v23  ;;  %v4105_v10 = vstv %s4012_s4  ;;  %s4200_s4 = sld [smem:[#allocation2 + $0x302]] }
  0x54   : > { %7453 = vst [vmem:[#allocation32_spill] sm:$0xff] %v4041_v44  ;;  %7454 = vst [vmem:[#allocation33_spill] sm:$0xff] %v4046_v34  ;;  %v495_v58 = vmul.f32 %v3935_v59, %v3680_v0  ;;  %v500_v51 = vmul.f32 %v3683_v1, %v3942_v56  ;;  %v1031_v46 = vmul.f32 %v3997_v48, %v4041_v44  ;;  %v4108_v29 = vstv %s4021_s5  ;;  %s4219_s5 = sld [smem:[#allocation2 + $0x303]] }
  0x55   : > { %7455 = vst [vmem:[#allocation34_spill] sm:$0xff] %v4057_v21  ;;  %v4065_v13 = vadd.f32 %v255_v57, %v250_v53  ;;  %v508_v50 = vmul.f32 %v3686_v2, %v3945_v8  ;;  %v516_v45 = vmul.f32 %v3691_v4, %v3948_v14  ;;  %v4071_v60 = vadd.f32 %v226_v31, %v221_v25 }
  0x56   : > { %894 = vrot.lane.b32.xlu0 %v4046_v34, %s3578_s7  ;;  %v503_v22 = vadd.f32 %v500_v51, %v495_v58  ;;  %v263_v23 = vmul.f32 %v4017_v39, %v3680_v0  ;;  %v268_v53 = vmul.f32 %v3683_v1, %v4026_v40  ;;  %v276_v31 = vmul.f32 %v3686_v2, %v4036_v47 }
  0x57   : > { %7456 = vst [vmem:[#allocation35_spill] sm:$0xff] %v4065_v13  ;;  %7457 = vst [vmem:[#allocation36_spill] sm:$0xff] %v4071_v60  ;;  %v1046_v57 = vmul.f32 %v4057_v21, %v4065_v13  ;;  %v284_v25 = vmul.f32 %v3691_v4, %v4039_v49  ;;  %v4088_v58 = vstv %s4001_s3  ;;  %914 = vrot.lane.b32.xlu1 %v4057_v21, %s3578_s7  ;;  %v4126_v6 = vstv %s4048_s8  ;;  %s4198_s3 = sld [smem:[#allocation2 + $0x301]] }
  0x58   : > { %v1037_v51 = vmul.f32 %v4046_v34, %v4071_v60  ;;  %v511_v44 = vadd.f32 %v508_v50, %v503_v22  ;;  %v271_v41 = vadd.f32 %v268_v53, %v263_v23  ;;  %v292_v13 = vmul.f32 %v4088_v58, %v3680_v0  ;;  %7460 = vst [vmem:[#allocation39_spill] sm:$0xff] %v4126_v6  ;;  %s4230_s8 = sld [smem:[#allocation2 + $0x701]] }
  0x59   : > { %v4102_v30 = vmul.f32 %v3711_v11, %v4026_v40  ;;  %v4111_v60 = vstv %s4023_s6  ;;  %v297_v53 = vmul.f32 %v3683_v1, %v4105_v10  ;;  %v305_v24 = vmul.f32 %v3686_v2, %v4108_v29  ;;  %s4228_s6 = sld [smem:[#allocation2 + $0x700]] }
  0x5a   : > { %7458 = vst [vmem:[#allocation37_spill] sm:$0xff] %v4111_v60  ;;  %v1040_v50 = vadd.f32 %v1037_v51, %v1031_v46  ;;  %v4113_v22 = vadd.f32 %v516_v45, %v511_v44  ;;  %v279_v23 = vadd.f32 %v276_v31, %v271_v41  ;;  %v313_v9 = vmul.f32 %v3691_v4, %v4111_v60 }
  0x5b   : > { %v4129_v46 = vstv %s4050_s14  ;;  %v300_v31 = vadd.f32 %v297_v53, %v292_v13  ;;  %v523_v51 = vmul.f32 %v4126_v6, %v3700_v7  ;;  %v524_v3 = vmul.f32 %v4126_v6, %v3680_v0  ;;  %s4250_s14 = sld [smem:[#allocation2 + $0x702]] }
  0x5c   : > { %7459 = vst [vmem:[#allocation38_spill] sm:$0xff] %v4113_v22  ;;  %7461 = vst [vmem:[#allocation40_spill] sm:$0xff] %v4129_v46  ;;  %v4134_v41 = vrot.slane %v4113_v22, 7  ;;  %v4136_v44 = vadd.f32 %v284_v25, %v279_v23  ;;  %v1049_v45 = vadd.f32 %v1046_v57, %v1040_v50  ;;  %v528_v21 = vmul.f32 %v3711_v11, %v4129_v46 }
  0x5d   : > { %v529_v34 = vmul.f32 %v3683_v1, %v4129_v46  ;;  %v4148_v22 = vmul.f32 %v4017_v39, %v3700_v7  ;;  %v308_v57 = vadd.f32 %v305_v24, %v300_v31  ;;  %v4158_v25 = vstv %s4079_s17  ;;  %s4262_s17 = sld [smem:[#allocation2 + $0x703]] }
  0x5e   : > { %7462 = vst [vmem:[#allocation41_spill] sm:$0xff] %v4134_v41  ;;  %7463 = vst [vmem:[#allocation42_spill] sm:$0xff] %v4136_v44  ;;  %936 = vrot.lane.b32.xlu1 %v4134_v41, %s3578_s7  ;;  %v4155_v13 = vsel %vm871_vm0, %v4029_v36, %v4134_v41  ;;  %v531_v23 = vadd.f32 %v528_v21, %v523_v51  ;;  %v536_v41 = vmul.f32 %v3714_v12, %v4158_v25 }
  0x5f   : > { %7464 = vst [vmem:[#allocation43_spill] sm:$0xff] %v4155_v13  ;;  %7465 = vst [vmem:[#allocation44_spill] sm:$0xff] %v4158_v25  ;;  %v1055_v50 = vmul.f32 %v4155_v13, %v4136_v44  ;;  %934 = vrot.lane.b32.xlu0 %v4155_v13, %s3578_s7  ;;  %v532_v53 = vadd.f32 %v529_v34, %v524_v3  ;;  %v4172_v24 = vadd.f32 %v313_v9, %v308_v57 }
  0x60   : > { %v537_v31 = vmul.f32 %v3686_v2, %v4158_v25  ;;  %v4177_v5 = vstv %s4096_s21  ;;  %v4180_v44 = vstv %s4098_s22  ;;  %v539_v3 = vadd.f32 %v536_v41, %v531_v23  ;;  %s4283_s21 = sld [smem:[#allocation2 + $0x780]]  ;;  %s4285_s22 = sld [smem:[#allocation2 + $0x781]] }
  0x61   : > { %7466 = vst [vmem:[#allocation45_spill] sm:$0xff] %v4172_v24  ;;  %7467 = vst [vmem:[#allocation46_spill] sm:$0xff] %v4177_v5  ;;  %v1058_v21 = vadd.f32 %v1055_v50, %v1049_v45  ;;  %v544_v34 = vmul.f32 %v3721_v16, %v4177_v5  ;;  %v545_v51 = vmul.f32 %v3691_v4, %v4177_v5  ;;  %v4193_v13 = vstv %s4117_s23  ;;  %s4304_s23 = sld [smem:[#allocation2 + $0x782]] }
  0x62   : > { %7468 = vst [vmem:[#allocation47_spill] sm:$0xff] %v4180_v44  ;;  %v540_v9 = vadd.f32 %v537_v31, %v532_v53  ;;  %v552_v57 = vmul.f32 %v4180_v44, %v3700_v7  ;;  %7469 = vst [vmem:[#allocation48_spill] sm:$0xff] %v4193_v13  ;;  %v4196_v60 = vstv %s4119_s24  ;;  %v557_v45 = vmul.f32 %v3711_v11, %v4193_v13  ;;  %s4306_s24 = sld [smem:[#allocation2 + $0x783]] }
  0x63   : > { %7470 = vst [vmem:[#allocation49_spill] sm:$0xff] %v4196_v60  ;;  %v4202_v41 = vadd.f32 %v544_v34, %v539_v3  ;;  %v565_v50 = vmul.f32 %v3714_v12, %v4196_v60  ;;  %v4209_v23 = vstv %s4131_s25  ;;  %v553_v36 = vmul.f32 %v4180_v44, %v3680_v0  ;;  %s4340_s25 = sld [smem:[#allocation2 + $0x380]] }
  0x64   : > { %7472 = vst [vmem:[#allocation51_spill] sm:$0xff] %v4209_v23  ;;  %v4211_v53 = vadd.f32 %v545_v51, %v540_v9  ;;  %v573_v31 = vmul.f32 %v3721_v16, %v4209_v23  ;;  %v558_v3 = vmul.f32 %v3683_v1, %v4193_v13  ;;  %v560_v5 = vadd.f32 %v557_v45, %v552_v57 }
  0x65   : > { %7471 = vst [vmem:[#allocation50_spill] sm:$0xff] %v4202_v41  ;;  %v4222_v34 = vrot.slane %v4202_v41, 7  ;;  %v566_v51 = vmul.f32 %v3686_v2, %v4196_v60  ;;  %v574_v9 = vmul.f32 %v3691_v4, %v4209_v23  ;;  %v4236_v25 = vstv %s4160_s26  ;;  %s4349_s26 = sld [smem:[#allocation2 + $0x381]] }
  0x66   : > { %7473 = vst [vmem:[#allocation52_spill] sm:$0xff] %v4211_v53  ;;  %v4233_v13 = vrot.slane %v4211_v53, 7  ;;  %v561_v44 = vadd.f32 %v558_v3, %v553_v36  ;;  %7476 = vst [vmem:[#allocation55_spill] sm:$0xff] %v4236_v25  ;;  %v4239_v41 = vstv %s4162_s27  ;;  %v568_v57 = vadd.f32 %v565_v50, %v560_v5  ;;  %s4351_s27 = sld [smem:[#allocation2 + $0x382]] }
  0x67   : > { %7474 = vst [vmem:[#allocation53_spill] sm:$0xff] %v4222_v34  ;;  %7477 = vst [vmem:[#allocation56_spill] sm:$0xff] %v4239_v41  ;;  %952 = vrot.lane.b32.xlu0 %v4222_v34, %s3578_s7  ;;  %v321_v45 = vmul.f32 %v4236_v25, %v3680_v0  ;;  %v326_v23 = vmul.f32 %v3683_v1, %v4239_v41  ;;  %v4248_v53 = vstv %s4170_s28  ;;  %v4260_v50 = vstv %s4182_s29  ;;  %s4367_s28 = sld [smem:[#allocation2 + $0x383]]  ;;  %s3579_s29 = smov 127  }
  0x68   : > { %7475 = vst [vmem:[#allocation54_spill] sm:$0xff] %v4233_v13  ;;  %7478 = vst [vmem:[#allocation57_spill] sm:$0xff] %v4248_v53  ;;  %v4255_v36 = vsel %vm871_vm0, %v4222_v34, %v4233_v13  ;;  %v569_v3 = vadd.f32 %v566_v51, %v561_v44  ;;  %v334_v5 = vmul.f32 %v3686_v2, %v4248_v53  ;;  %v4275_v34 = vstv %s4188_s30  ;;  %s3280_s30 = sld [smem:[#allocation2 + $0x800]] }
  0x69   : > { %7479 = vst [vmem:[#allocation58_spill] sm:$0xff] %v4255_v36  ;;  %7480 = vst [vmem:[#allocation59_spill] sm:$0xff] %v4260_v50  ;;  %v1064_v60 = vmul.f32 %v4255_v36, %v4172_v24  ;;  %954 = vrot.lane.b32.xlu1 %v4255_v36, %s3578_s7  ;;  %v4268_v41 = vadd.f32 %v573_v31, %v568_v57  ;;  %v329_v25 = vadd.f32 %v326_v23, %v321_v45 }
  0x6a   : > { %v342_v44 = vmul.f32 %v3691_v4, %v4260_v50  ;;  %v4272_v51 = vadd.f32 %v574_v9, %v569_v3  ;;  %7483 = vst [vmem:[#allocation62_spill] sm:$0xff] %v4275_v34  ;;  %v4278_v53 = vstv %s4198_s3  ;;  %v4281_v48 = vstv %s4200_s4  ;;  %s3281_s3 = sld [smem:[#allocation2 + $0x801]]  ;;  %s3282_s4 = sld [smem:[#allocation2 + $0x802]] }
  0x6b   : > { %7481 = vst [vmem:[#allocation60_spill] sm:$0xff] %v4268_v41  ;;  %7484 = vst [vmem:[#allocation63_spill] sm:$0xff] %v4278_v53  ;;  %v1067_v31 = vadd.f32 %v1064_v60, %v1058_v21  ;;  %v4288_v23 = vrot.slane %v4268_v41, 7  ;;  %956 = vrot.lane.b32.xlu0 %v4233_v13, %s3578_s7  ;;  %v337_v9 = vadd.f32 %v334_v5, %v329_v25  ;;  %v4302_v60 = vstv %s4219_s5  ;;  %s3283_s5 = sld [smem:[#allocation2 + $0x803]] }
  0x6c   : > { %7482 = vst [vmem:[#allocation61_spill] sm:$0xff] %v4272_v51  ;;  %7485 = vst [vmem:[#allocation64_spill] sm:$0xff] %v4281_v48  ;;  %v350_v57 = vmul.f32 %v4275_v34, %v3680_v0  ;;  %v4295_v45 = vrot.slane %v4272_v51, 7  ;;  %v355_v3 = vmul.f32 %v3683_v1, %v4278_v53  ;;  %v363_v24 = vmul.f32 %v3686_v2, %v4281_v48 }
  0x6d   : > { %7486 = vst [vmem:[#allocation65_spill] sm:$0xff] %v4288_v23  ;;  %7488 = vst [vmem:[#allocation67_spill] sm:$0xff] %v4302_v60  ;;  %972 = vrot.lane.b32.xlu1 %v4288_v23, %s3578_s7  ;;  %v4310_v25 = vadd.f32 %v342_v44, %v337_v9  ;;  %v371_v21 = vmul.f32 %v3691_v4, %v4302_v60  ;;  %v4315_v5 = vstv %s4228_s6  ;;  %v4318_v51 = vstv %s4230_s8  ;;  %s5888_s6 = sld [smem:[#allocation2 + $0x880]]  ;;  %s5896_s8 = sld [smem:[#allocation2 + $0x881]] }
  0x6e   : > { %7487 = vst [vmem:[#allocation66_spill] sm:$0xff] %v4295_v45  ;;  %7490 = vst [vmem:[#allocation69_spill] sm:$0xff] %v4315_v5  ;;  %v4323_v41 = vsel %vm871_vm0, %v4288_v23, %v4295_v45  ;;  %v358_v36 = vadd.f32 %v355_v3, %v350_v57  ;;  %v581_v13 = vmul.f32 %v4315_v5, %v3700_v7  ;;  %v4338_v57 = vstv %s4250_s14  ;;  %s5914_s14 = sld [smem:[#allocation2 + $0x882]] }
  0x6f   : > { %7489 = vst [vmem:[#allocation68_spill] sm:$0xff] %v4310_v25  ;;  %7491 = vst [vmem:[#allocation70_spill] sm:$0xff] %v4318_v51  ;;  %v582_v44 = vmul.f32 %v4315_v5, %v3680_v0  ;;  %v1073_v9 = vmul.f32 %v4323_v41, %v4310_v25  ;;  %974 = vrot.lane.b32.xlu0 %v4323_v41, %s3578_s7  ;;  %v586_v34 = vmul.f32 %v3711_v11, %v4318_v51 }
  0x70   : > { %7492 = vst [vmem:[#allocation71_spill] sm:$0xff] %v4323_v41  ;;  %v587_v23 = vmul.f32 %v3683_v1, %v4318_v51  ;;  %7493 = vst [vmem:[#allocation72_spill] sm:$0xff] %v4338_v57  ;;  %v366_v3 = vadd.f32 %v363_v24, %v358_v36  ;;  %v594_v60 = vmul.f32 %v3714_v12, %v4338_v57  ;;  %v4347_v41 = vstv %s4262_s17  ;;  %s5963_s17 = sld [smem:[#allocation2 + $0x883]] }
  0x71   : > { %v595_v25 = vmul.f32 %v3686_v2, %v4338_v57  ;;  %976 = vrot.lane.b32.xlu1 %v4295_v45, %s3578_s7  ;;  %v1076_v48 = vadd.f32 %v1073_v9, %v1067_v31  ;;  %v589_v53 = vadd.f32 %v586_v34, %v581_v13  ;;  %v602_v36 = vmul.f32 %v3721_v16, %v4347_v41 }
  0x72   : > { %v590_v24 = vadd.f32 %v587_v23, %v582_v44  ;;  %v4357_v51 = vadd.f32 %v371_v21, %v366_v3  ;;  %v603_v57 = vmul.f32 %v3691_v4, %v4347_v41  ;;  %v4362_v5 = vstv %s4283_s21  ;;  %s150_s21 = sand.u32 1, %s3565_s10  }
  0x73   : > { %7495 = vst [vmem:[#allocation74_spill] sm:$0xff] %v4362_v5  ;;  %v4365_v50 = vstv %s4285_s22  ;;  %v597_v46 = vadd.f32 %v594_v60, %v589_v53  ;;  %v610_v13 = vmul.f32 %v4362_v5, %v3700_v7  ;;  %v4374_v31 = vstv %s4304_s23  ;;  %s3206_s22 = sshll.u32 %s150_s21, 7 }
  0x74   : > { %7494 = vst [vmem:[#allocation73_spill] sm:$0xff] %v4357_v51  ;;  %7496 = vst [vmem:[#allocation75_spill] sm:$0xff] %v4365_v50  ;;  %v598_v6 = vadd.f32 %v595_v25, %v590_v24  ;;  %v615_v34 = vmul.f32 %v3711_v11, %v4365_v50  ;;  %v4377_v23 = vstv %s4306_s24  ;;  %v611_v21 = vmul.f32 %v4362_v5, %v3680_v0  ;;  %s6315_s23 = scalar_lea.vmem [#allocation5], %s3206_s22  ;;  %s3288_s24 = sld [smem:[#allocation2 + $0x900]] }
  0x75   : > { %v616_v44 = vmul.f32 %v3683_v1, %v4365_v50  ;;  %v4383_v53 = vadd.f32 %v602_v36, %v597_v46  ;;  %v623_v9 = vmul.f32 %v3714_v12, %v4374_v31  ;;  %v631_v3 = vmul.f32 %v3721_v16, %v4377_v23  ;;  %s3301_s22 = sld [smem:[#allocation2 + $0xa81]] }
  0x76   : > { %v4385_v60 = vadd.f32 %v603_v57, %v598_v6  ;;  %v618_v25 = vadd.f32 %v615_v34, %v610_v13  ;;  %v624_v45 = vmul.f32 %v3686_v2, %v4374_v31  ;;  %v632_v5 = vmul.f32 %v3691_v4, %v4377_v23 }
  0x77   : > { %7497 = vst [vmem:[#allocation76_spill] sm:$0xff] %v4383_v53  ;;  %v619_v24 = vadd.f32 %v616_v44, %v611_v21  ;;  %v4396_v50 = vrot.slane %v4383_v53, 7  ;;  %v4402_v57 = vstv %s4340_s25  ;;  %v4407_v34 = vstv %s4349_s26  ;;  %s3289_s25 = sld [smem:[#allocation2 + $0x901]]  ;;  %s3290_s26 = sld [smem:[#allocation2 + $0x902]] }
  0x78   : > { %7498 = vst [vmem:[#allocation77_spill] sm:$0xff] %v4385_v60  ;;  %v4399_v6 = vrot.slane %v4385_v60, 7  ;;  %v626_v46 = vadd.f32 %v623_v9, %v618_v25  ;;  %v379_v13 = vmul.f32 %v4402_v57, %v3680_v0  ;;  %v4410_v21 = vstv %s4351_s27  ;;  %s3291_s27 = sld [smem:[#allocation2 + $0x903]] }
  0x79   : > { %v627_v36 = vadd.f32 %v624_v45, %v619_v24  ;;  %992 = vrot.lane.b32.xlu0 %v4396_v50, %s3578_s7  ;;  %v384_v45 = vmul.f32 %v3683_v1, %v4407_v34  ;;  %v392_v0 = vmul.f32 %v3686_v2, %v4410_v21  ;;  %v222_v25 = vadd.f32 %v3964_v55, %v3988_v43 }
  0x7a   : > { %v4415_v44 = vsel %vm871_vm0, %v4396_v50, %v4399_v6  ;;  %v4419_v60 = vadd.f32 %v631_v3, %v626_v46  ;;  %v4434_v53 = vstv %s4367_s28  ;;  %v4443_v55 = vadd.f32 %v3926_v18, %v3986_v33  ;;  %s3292_s28 = sld [smem:[#allocation2 + $0x980]] }
  0x7b   : > { %v1082_v9 = vmul.f32 %v4415_v44, %v4357_v51  ;;  %994 = vrot.lane.b32.xlu1 %v4415_v44, %s3578_s7  ;;  %v4431_v24 = vadd.f32 %v632_v5, %v627_v36  ;;  %v387_v1 = vadd.f32 %v384_v45, %v379_v13  ;;  %v400_v2 = vmul.f32 %v3691_v4, %v4434_v53  ;;  %v7521_v51 = vld [vmem:[#allocation48_spill] sm:$0xff] }
  0x7c   : > { %7499 = vst [vmem:[#allocation78_spill] sm:$0xff] %v4419_v60  ;;  %v4437_v3 = vrot.slane %v4419_v60, 7  ;;  %7501 = vst [vmem:[#allocation80_spill] sm:$0xff] %v4443_v55  ;;  %v256_v43 = vmul.f32 %v3856_v20, %v3896_v61  ;;  %v251_v36 = vadd.f32 %v4004_v62, %v4014_v52  ;;  %v275_v13 = vmul.f32 %v3714_v12, %v4036_v47 }
  0x7d   : > { %7500 = vst [vmem:[#allocation79_spill] sm:$0xff] %v4431_v24  ;;  %v1085_v46 = vadd.f32 %v1082_v9, %v1076_v48  ;;  %v4448_v5 = vrot.slane %v4431_v24, 7  ;;  %v270_v4 = vadd.f32 %v4102_v30, %v4148_v22  ;;  %996 = vrot.lane.b32.xlu0 %v4399_v6, %s3578_s7  ;;  %v395_v33 = vadd.f32 %v392_v0, %v387_v1 }
  0x7e   : > { %v4460_v61 = vadd.f32 %v3869_v32, %v3904_v15  ;;  %v1039_v18 = vadd.f32 %v3960_v63, %v3919_v35  ;;  %v4465_v48 = vadd.f32 %v3968_v17, %v222_v25  ;;  %v1045_v62 = vmul.f32 %v3891_v42, %v4443_v55  ;;  %v7525_v55 = vld [vmem:[#allocation70_spill] sm:$0xff] }
  0x7f   : > { %1012 = vrot.lane.b32.xlu1 %v4437_v3, %s3578_s7  ;;  %v4472_v30 = vsel %vm871_vm0, %v4437_v3, %v4448_v5  ;;  %v264_v32 = vmul.f32 %v4017_v39, %v3776_v37  ;;  %v269_v63 = vmul.f32 %v3818_v54, %v4026_v40  ;;  %v4480_v15 = vadd.f32 %v400_v2, %v395_v33 }
  0x80   : > { %7502 = vst [vmem:[#allocation81_spill] sm:$0xff] %v4460_v61  ;;  %7503 = vst [vmem:[#allocation82_spill] sm:$0xff] %v4465_v48  ;;  %v1032_v35 = vmul.f32 %v3755_v28, %v4460_v61  ;;  %v1038_v17 = vmul.f32 %v3913_v26, %v4465_v48  ;;  %v496_v52 = vmul.f32 %v3935_v59, %v3776_v37  ;;  %v7526_v61 = vld [vmem:[#allocation72_spill] sm:$0xff] }
  0x81   : > { %7504 = vst [vmem:[#allocation83_spill] sm:$0xff] %v4480_v15  ;;  %v501_v22 = vmul.f32 %v3818_v54, %v3942_v56  ;;  %v4490_v45 = vadd.f32 %v256_v43, %v251_v36  ;;  %v283_v39 = vmul.f32 %v3721_v16, %v4039_v49  ;;  %v278_v40 = vadd.f32 %v275_v13, %v270_v4 }
  0x82   : > { %v1091_v0 = vmul.f32 %v4472_v30, %v4480_v15  ;;  %1014 = vrot.lane.b32.xlu0 %v4472_v30, %s3578_s7  ;;  %v509_v59 = vmul.f32 %v3853_v19, %v3945_v8  ;;  %v517_v56 = vmul.f32 %v3856_v20, %v3948_v14  ;;  %v293_v9 = vmul.f32 %v4088_v58, %v3776_v37 }
  0x83   : > { %7505 = vst [vmem:[#allocation84_spill] sm:$0xff] %v4490_v45  ;;  %1016 = vrot.lane.b32.xlu1 %v4448_v5, %s3578_s7  ;;  %v504_v25 = vadd.f32 %v501_v22, %v496_v52  ;;  %v4506_v1 = vadd.f32 %v1045_v62, %v1039_v18  ;;  %v272_v2 = vadd.f32 %v269_v63, %v264_v32  ;;  %v7509_v62 = vld [vmem:[#allocation40_spill] sm:$0xff] }
  0x84   : > { %v277_v43 = vmul.f32 %v3853_v19, %v4036_v47  ;;  %v4510_v36 = vadd.f32 %v1091_v0, %v1085_v46  ;;  %v1041_v13 = vadd.f32 %v1038_v17, %v1032_v35  ;;  %v1047_v4 = vmul.f32 %v3977_v27, %v4490_v45  ;;  %v7508_v47 = vld [vmem:[#allocation39_spill] sm:$0xff]  ;;  %v7510_v35 = vld [vmem:[#allocation29_spill] sm:$0xff]  ;;  %v7511_v22 = vld [vmem:[#allocation44_spill] sm:$0xff] }
  0x85   : > { %v512_v33 = vadd.f32 %v509_v59, %v504_v25  ;;  %v298_v8 = vmul.f32 %v3818_v54, %v4105_v10  ;;  %v4516_v14 = vadd.f32 %v283_v39, %v278_v40  ;;  %v306_v18 = vmul.f32 %v3853_v19, %v4108_v29  ;;  %v7512_v0 = vld [vmem:[#allocation46_spill] sm:$0xff]  ;;  %v7513_v59 = vld [vmem:[#allocation55_spill] sm:$0xff]  ;;  %v7522_v45 = vld [vmem:[#allocation49_spill] sm:$0xff] }
  0x86   : > { %7506 = vst [vmem:[#allocation85_spill] sm:$0xff] %v4510_v36  ;;  %1096 = vrot.lane.b32.xlu0 %v3779_v38, %s3579_s29  ;;  %v525_v46 = vmul.f32 %v7508_v47, %v3776_v37  ;;  %v530_v32 = vmul.f32 %v3818_v54, %v7509_v62  ;;  %v285_v63 = vmul.f32 %v3856_v20, %v4039_v49  ;;  %v7514_v49 = vld [vmem:[#allocation31_spill] sm:$0xff] }
  0x87   : > { %7507 = vst [vmem:[#allocation86_spill] sm:$0xff] %v4516_v14  ;;  %1098 = vrot.lane.b32.xlu1 %v7510_v35, %s3579_s29  ;;  %v4530_v17 = vadd.f32 %v517_v56, %v512_v33  ;;  %v301_v52 = vadd.f32 %v298_v8, %v293_v9  ;;  %v538_v38 = vmul.f32 %v3853_v19, %v7511_v22  ;;  %v7515_v56 = vld [vmem:[#allocation56_spill] sm:$0xff]  ;;  %v7516_v33 = vld [vmem:[#allocation57_spill] sm:$0xff]  ;;  %v7519_v35 = vld [vmem:[#allocation23_spill] sm:$0xff] }
  0x88   : > { %v280_v39 = vadd.f32 %v277_v43, %v272_v2  ;;  %v533_v40 = vadd.f32 %v530_v32, %v525_v46  ;;  %v546_v25 = vmul.f32 %v3856_v20, %v7512_v0  ;;  %v322_v47 = vmul.f32 %v7513_v59, %v3776_v37  ;;  %v7517_v43 = vld [vmem:[#allocation37_spill] sm:$0xff]  ;;  %v7520_v0 = vld [vmem:[#allocation59_spill] sm:$0xff] }
  0x89   : > { %v4538_v62 = vadd.f32 %v1047_v4, %v1041_v13  ;;  %v4542_v36 = vmul.f32 %v7514_v49, %v4516_v14  ;;  %v327_v9 = vmul.f32 %v3818_v54, %v7515_v56  ;;  %v335_v8 = vmul.f32 %v3853_v19, %v7516_v33  ;;  %v7518_v13 = vld [vmem:[#allocation47_spill] sm:$0xff] }
  0x8a   : > { %1100 = vrot.lane.b32.xlu0 %v3755_v28, %s3579_s29  ;;  %v309_v2 = vadd.f32 %v306_v18, %v301_v52  ;;  %v314_v46 = vmul.f32 %v3856_v20, %v7517_v43  ;;  %v541_v32 = vadd.f32 %v538_v38, %v533_v40  ;;  %v554_v4 = vmul.f32 %v7518_v13, %v3776_v37  ;;  %v7523_v38 = vld [vmem:[#allocation51_spill] sm:$0xff]  ;;  %v7524_v13 = vld [vmem:[#allocation69_spill] sm:$0xff] }
  0x8b   : > { %1108 = vrot.lane.b32.xlu1 %v7519_v35, %s3579_s29  ;;  %v330_v22 = vadd.f32 %v327_v9, %v322_v47  ;;  %v343_v15 = vmul.f32 %v3856_v20, %v7520_v0  ;;  %v559_v14 = vmul.f32 %v3818_v54, %v7521_v51  ;;  %v567_v28 = vmul.f32 %v3853_v19, %v7522_v45  ;;  %v7527_v45 = vld [vmem:[#allocation41_spill] sm:$0xff] }
  0x8c   : > { %v4562_v18 = vadd.f32 %v285_v63, %v280_v39  ;;  %v4564_v52 = vadd.f32 %v546_v25, %v541_v32  ;;  %v575_v40 = vmul.f32 %v3856_v20, %v7523_v38  ;;  %v583_v35 = vmul.f32 %v7524_v13, %v3776_v37  ;;  %v7528_v39 = vld [vmem:[#allocation33_spill] sm:$0xff] }
  0x8d   : > { %v338_v47 = vadd.f32 %v335_v8, %v330_v22  ;;  %v562_v9 = vadd.f32 %v559_v14, %v554_v4  ;;  %v588_v48 = vmul.f32 %v3818_v54, %v7525_v55  ;;  %v596_v51 = vmul.f32 %v3853_v19, %v7526_v61 }
  0x8e   : > { %v4576_v63 = vmul.f32 %v7527_v45, %v4562_v18  ;;  %1110 = vrot.lane.b32.xlu0 %v7528_v39, %s3579_s29  ;;  %v4580_v25 = vadd.f32 %v314_v46, %v309_v2  ;;  %v604_v32 = vmul.f32 %v3856_v20, %v4347_v41  ;;  %v296_v14 = vmul.f32 %v3711_v11, %v4105_v10  ;;  %v7530_v46 = vld [vmem:[#allocation74_spill] sm:$0xff]  ;;  %v7531_v41 = vld [vmem:[#allocation75_spill] sm:$0xff] }
  0x8f   : > { %1112 = vrot.lane.b32.xlu1 %v3913_v26, %s3579_s29  ;;  %v4588_v55 = vadd.f32 %v343_v15, %v338_v47  ;;  %v570_v61 = vadd.f32 %v567_v28, %v562_v9  ;;  %v591_v8 = vadd.f32 %v588_v48, %v583_v35  ;;  %v304_v4 = vmul.f32 %v3714_v12, %v4108_v29 }
  0x90   : > { %v291_v2 = vmul.f32 %v4088_v58, %v3700_v7  ;;  %v612_v22 = vmul.f32 %v7530_v46, %v3776_v37  ;;  %v617_v38 = vmul.f32 %v3818_v54, %v7531_v41  ;;  %v625_v10 = vmul.f32 %v3853_v19, %v4374_v31 }
  0x91   : > { %7529 = vst [vmem:[#allocation39_spill] sm:$0xff] %v4588_v55  ;;  %v4600_v26 = vadd.f32 %v575_v40, %v570_v61  ;;  %v599_v15 = vadd.f32 %v596_v51, %v591_v8  ;;  %v312_v48 = vmul.f32 %v3721_v16, %v7517_v43  ;;  %v325_v29 = vmul.f32 %v3711_v11, %v7515_v56  ;;  %v7533_v40 = vld [vmem:[#allocation34_spill] sm:$0xff] }
  0x92   : > { %1123 = vrot.lane.b32.xlu0 %v3891_v42, %s3579_s29  ;;  %v299_v58 = vadd.f32 %v296_v14, %v291_v2  ;;  %v620_v28 = vadd.f32 %v617_v38, %v612_v22  ;;  %v633_v13 = vmul.f32 %v3856_v20, %v4377_v23  ;;  %v333_v31 = vmul.f32 %v3714_v12, %v7516_v33  ;;  %v7535_v42 = vld [vmem:[#allocation63_spill] sm:$0xff]  ;;  %v7536_v23 = vld [vmem:[#allocation64_spill] sm:$0xff] }
  0x93   : > { %7532 = vst [vmem:[#allocation40_spill] sm:$0xff] %v4600_v26  ;;  %1125 = vrot.lane.b32.xlu1 %v7533_v40, %s3579_s29  ;;  %v4614_v35 = vadd.f32 %v604_v32, %v599_v15  ;;  %v341_v43 = vmul.f32 %v3721_v16, %v7520_v0  ;;  %v320_v56 = vmul.f32 %v7513_v59, %v3700_v7  ;;  %v7537_v33 = vld [vmem:[#allocation67_spill] sm:$0xff]  ;;  %v7538_v32 = vld [vmem:[#allocation62_spill] sm:$0xff] }
  0x94   : > { %v354_v47 = vmul.f32 %v3711_v11, %v7535_v42  ;;  %v307_v9 = vadd.f32 %v304_v4, %v299_v58  ;;  %v628_v51 = vadd.f32 %v625_v10, %v620_v28  ;;  %v362_v39 = vmul.f32 %v3714_v12, %v7536_v23  ;;  %v7540_v10 = vld [vmem:[#allocation53_spill] sm:$0xff] }
  0x95   : > { %7534 = vst [vmem:[#allocation29_spill] sm:$0xff] %v4614_v35  ;;  %v370_v14 = vmul.f32 %v3721_v16, %v7537_v33  ;;  %v328_v61 = vadd.f32 %v325_v29, %v320_v56  ;;  %v349_v8 = vmul.f32 %v7538_v32, %v3700_v7  ;;  %v383_v0 = vmul.f32 %v3711_v11, %v4407_v34 }
  0x96   : > { %v391_v59 = vmul.f32 %v3714_v12, %v4410_v21  ;;  %1127 = vrot.lane.b32.xlu0 %v3977_v27, %s3579_s29  ;;  %v4634_v4 = vadd.f32 %v312_v48, %v307_v9  ;;  %v4636_v2 = vadd.f32 %v633_v13, %v628_v51  ;;  %v399_v46 = vmul.f32 %v3721_v16, %v4434_v53 }
  0x97   : > { %v378_v22 = vmul.f32 %v4402_v57, %v3700_v7  ;;  %1138 = vrot.lane.b32.xlu1 %v7514_v49, %s3579_s29  ;;  %v336_v11 = vadd.f32 %v333_v31, %v328_v61  ;;  %v357_v41 = vadd.f32 %v354_v47, %v349_v8  ;;  %v1057_v12 = vadd.f32 %v4542_v36, %v4506_v1  ;;  %v7541_v36 = vld [vmem:[#allocation43_spill] sm:$0xff] }
  0x98   : > { %7539 = vst [vmem:[#allocation44_spill] sm:$0xff] %v4636_v2  ;;  %v351_v27 = vmul.f32 %v7538_v32, %v3776_v37  ;;  %v1063_v15 = vmul.f32 %v7540_v10, %v4634_v4  ;;  %v356_v16 = vmul.f32 %v3818_v54, %v7535_v42  ;;  %v364_v7 = vmul.f32 %v3853_v19, %v7536_v23  ;;  %v7545_v23 = vld [vmem:[#allocation54_spill] sm:$0xff] }
  0x99   : > { %v386_v38 = vadd.f32 %v383_v0, %v378_v22  ;;  %v4654_v48 = vadd.f32 %v341_v43, %v336_v11  ;;  %v365_v49 = vadd.f32 %v362_v39, %v357_v41  ;;  %v372_v29 = vmul.f32 %v3856_v20, %v7537_v33  ;;  %v7543_v43 = vld [vmem:[#allocation65_spill] sm:$0xff]  ;;  %v7546_v33 = vld [vmem:[#allocation66_spill] sm:$0xff] }
  0x9a   : > { %v380_v1 = vmul.f32 %v4402_v57, %v3776_v37  ;;  %1140 = vrot.lane.b32.xlu0 %v7541_v36, %s3579_s29  ;;  %v1066_v28 = vadd.f32 %v1063_v15, %v1057_v12  ;;  %v359_v13 = vadd.f32 %v356_v16, %v351_v27  ;;  %v385_v31 = vmul.f32 %v3818_v54, %v4407_v34  ;;  %v7552_v12 = vld [vmem:[#allocation71_spill] sm:$0xff]  ;;  %v4713_v27 = vld [vmem:[%s3677_s16 + $0x10] sm:$0x3]  ;;  %v7554_v15 = vld [vmem:[#allocation9_spill] sm:$0xff] }
  0x9b   : > { %v394_v58 = vadd.f32 %v391_v59, %v386_v38  ;;  %1142 = vrot.lane.b32.xlu1 %v7527_v45, %s3579_s29  ;;  %v4666_v40 = vadd.f32 %v370_v14, %v365_v49  ;;  %v1072_v56 = vmul.f32 %v7543_v43, %v4654_v48  ;;  %v393_v37 = vmul.f32 %v3853_v19, %v4410_v21  ;;  %v7553_v38 = vld [vmem:[#allocation8_spill] sm:$0xff]  ;;  %v7555_v49 = vld [vmem:[#allocation10_spill] sm:$0xff] }
  0x9c   : > { %v401_v57 = vmul.f32 %v3856_v20, %v4434_v53  ;;  %v367_v47 = vadd.f32 %v364_v7, %v359_v13  ;;  %v388_v9 = vadd.f32 %v385_v31, %v380_v1  ;;  %v1059_v34 = vadd.f32 %v4576_v63, %v4538_v62  ;;  %v7548_v62 = vld [vmem:[#allocation58_spill] sm:$0xff]  ;;  %v7559_v31 = vld [vmem:[#allocation15_spill] sm:$0xff] }
  0x9d   : > { %7542 = vst [vmem:[#allocation46_spill] sm:$0xff] %v4666_v40  ;;  %v4674_v42 = vadd.f32 %v399_v46, %v394_v58  ;;  %v1075_v51 = vadd.f32 %v1072_v56, %v1066_v28  ;;  %v1081_v45 = vmul.f32 %v4396_v50, %v4666_v40  ;;  %v1065_v39 = vmul.f32 %v7545_v23, %v4580_v25  ;;  %v7557_v36 = vld [vmem:[#allocation14_spill] sm:$0xff]  ;;  %v7558_v28 = vld [vmem:[#allocation11_spill] sm:$0xff] }
  0x9e   : > { %v1074_v21 = vmul.f32 %v7546_v33, %v4588_v55  ;;  %1153 = vrot.lane.b32.xlu0 %v7540_v10, %s3579_s29  ;;  %v4688_v14 = vadd.f32 %v372_v29, %v367_v47  ;;  %v396_v61 = vadd.f32 %v393_v37, %v388_v9  ;;  %v409_v10 = vmul.f32 %v4713_v27, %v7553_v38  ;;  %v7561_v37 = vld [vmem:[#allocation18_spill] sm:$0xff]  ;;  %v3463_v55 = vld [vmem:[%s3677_s16 + $0x48] sm:$0xff] }
  0x9f   : > { %7544 = vst [vmem:[#allocation55_spill] sm:$0xff] %v4674_v42  ;;  %v1090_v53 = vmul.f32 %v4437_v3, %v4674_v42  ;;  %1155 = vrot.lane.b32.xlu1 %v7548_v62, %s3579_s29  ;;  %v1084_v63 = vadd.f32 %v1081_v45, %v1075_v51  ;;  %v1068_v32 = vadd.f32 %v1065_v39, %v1059_v34  ;;  %v7563_v34 = vld [vmem:[#allocation12_spill] sm:$0xff]  ;;  %v7569_v62 = vld [vmem:[#allocation25_spill] sm:$0xff]  ;;  %v651_v40 = vstv %s3282_s4  ;;  %s3295_s4 = sld [smem:[#allocation2 + $0x983]] }
  0xa0   : > { %7547 = vst [vmem:[#allocation31_spill] sm:$0xff] %v4688_v14  ;;  %v4692_v8 = vadd.f32 %v401_v57, %v396_v61  ;;  %v1083_v0 = vmul.f32 %v4399_v6, %v4688_v14  ;;  %v414_v16 = vmul.f32 %v3818_v54, %v7554_v15  ;;  %v422_v29 = vmul.f32 %v3853_v19, %v7555_v49  ;;  %v7564_v51 = vld [vmem:[#allocation16_spill] sm:$0xff]  ;;  %v7577_v15 = vld [vmem:[#allocation38_spill] sm:$0xff] }
  0xa1   : > { %v4696_v59 = vadd.f32 %v1090_v53, %v1084_v63  ;;  %v1077_v46 = vadd.f32 %v1074_v21, %v1068_v32  ;;  %v443_v58 = vmul.f32 %v3818_v54, %v7557_v36  ;;  %v467_v57 = vmul.f32 %v4713_v27, %v7561_v37  ;;  %v7570_v32 = vld [vmem:[#allocation22_spill] sm:$0xff] }
  0xa2   : > { %7549 = vst [vmem:[#allocation56_spill] sm:$0xff] %v4692_v8  ;;  %1157 = vrot.lane.b32.xlu0 %v7545_v23, %s3579_s29  ;;  %v1092_v22 = vmul.f32 %v4448_v5, %v4692_v8  ;;  %v417_v7 = vadd.f32 %v414_v16, %v409_v10  ;;  %v459_v45 = vmul.f32 %v3856_v20, %v7564_v51 }
  0xa3   : > { %7550 = vst [vmem:[#allocation57_spill] sm:$0xff] %v4696_v59  ;;  %1168 = vrot.lane.b32.xlu1 %v7543_v43, %s3579_s29  ;;  %v1086_v11 = vadd.f32 %v1083_v0, %v1077_v46  ;;  %v7560_v43 = vld [vmem:[#allocation17_spill] sm:$0xff]  ;;  %v488_v0 = vmul.f32 %v3856_v20, %v7570_v32 }
  0xa5   : > { %v4704_v41 = vadd.f32 %v1092_v22, %v1086_v11 }
  0xa6   : > { %1170 = vrot.lane.b32.xlu0 %v7552_v12, %s3579_s29  ;;  %v7573_v12 = vld [vmem:[#allocation28_spill] sm:$0xff] }
  0xa7   : > { %7551 = vst [vmem:[#allocation37_spill] sm:$0xff] %v4704_v41  ;;  %1172 = vrot.lane.b32.xlu1 %v7546_v33, %s3579_s29  ;;  %v7566_v33 = vld [vmem:[#allocation20_spill] sm:$0xff] }
  0xa8   : > { %v480_v21 = vmul.f32 %v3853_v19, %v7566_v33 }
  0xaa   : > { %1183 = vrot.lane.b32.xlu0 %v4396_v50, %s3579_s29  ;;  %v7556_v50 = vld [vmem:[#allocation13_spill] sm:$0xff] }
  0xab   : > { %1185 = vrot.lane.b32.xlu1 %v4415_v44, %s3579_s29  ;;  %v438_v1 = vmul.f32 %v4713_v27, %v7556_v50  ;;  %v425_v44 = vadd.f32 %v422_v29, %v417_v7  ;;  %v4753_v23 = vpop.permute.xlu1 %879  ;;  %v7579_v7 = vld [vmem:[#allocation50_spill] sm:$0xff]  ;;  %v7580_v29 = vld [vmem:[#allocation52_spill] sm:$0xff] }
  0xac   : > { %v4747_v9 = vpop.permute.xlu0 %875  ;;  %7565 = vst [vmem:[#allocation47_spill] sm:$0xff] %v4753_v23 }
  0xad   : > { %v446_v13 = vadd.f32 %v443_v58, %v438_v1  ;;  %v7582_v1 = vld [vmem:[#allocation60_spill] sm:$0xff]  ;;  %v7584_v58 = vld [vmem:[#allocation61_spill] sm:$0xff] }
  0xae   : > { %1187 = vrot.lane.b32.xlu0 %v4399_v6, %s3579_s29  ;;  %v430_v6 = vmul.f32 %v3856_v20, %v7558_v28  ;;  %v7575_v20 = vld [vmem:[#allocation30_spill] sm:$0xff]  ;;  %v7586_v28 = vld [vmem:[#allocation76_spill] sm:$0xff] }
  0xaf   : > { %1198 = vrot.lane.b32.xlu1 %v4437_v3, %s3579_s29  ;;  %v451_v3 = vmul.f32 %v3853_v19, %v7559_v31  ;;  %v7571_v19 = vld [vmem:[#allocation24_spill] sm:$0xff] }
  0xb0   : > { %v4741_v56 = vadd.f32 %v430_v6, %v425_v44  ;;  %v4769_v46 = vpop.permute.xlu1 %892 }
  0xb2   : > { %1200 = vrot.lane.b32.xlu0 %v4472_v30, %s3579_s29  ;;  %v7562_v30 = vld [vmem:[#allocation19_spill] sm:$0xff] }
  0xb3   : > { %1202 = vrot.lane.b32.xlu1 %v4448_v5, %s3579_s29  ;;  %v472_v47 = vmul.f32 %v3818_v54, %v7562_v30  ;;  %v454_v5 = vadd.f32 %v451_v3, %v446_v13  ;;  %v7567_v54 = vld [vmem:[#allocation21_spill] sm:$0xff] }
  0xb4   : > { %v7588_v13 = vld [vmem:[#allocation77_spill] sm:$0xff] }
  0xb5   : > { %v475_v39 = vadd.f32 %v472_v47, %v467_v57  ;;  %v4761_v53 = vadd.f32 %v459_v45, %v454_v5 }
  0xb6   : > { %1214 = vrot.lane.b32.xlu0 %v7560_v43, %s3578_s7 }
  0xb7   : > { %1216 = vrot.lane.b32.xlu1 %v7563_v34, %s3578_s7  ;;  %v4763_v61 = vpop.permute.xlu0 %912  ;;  %v483_v63 = vadd.f32 %v480_v21, %v475_v39 }
  0xb8   : > { %7568 = vst [vmem:[#allocation23_spill] sm:$0xff] %v4763_v61 }
  0xb9   : > { %v4775_v22 = vadd.f32 %v488_v0, %v483_v63 }
  0xba   : > { %1218 = vrot.lane.b32.xlu0 %v4741_v56, %s3578_s7  ;;  %v4781_v38 = vpop.permute.xlu1 %896 }
  0xbb   : > { %1227 = vrot.lane.b32.xlu1 %v7567_v54, %s3578_s7  ;;  %7574 = vst [vmem:[#allocation48_spill] sm:$0xff] %v4781_v38 }
  0xbe   : > { %1229 = vrot.lane.b32.xlu0 %v7569_v62, %s3578_s7 }
  0xbf   : > { %1231 = vrot.lane.b32.xlu1 %v4761_v53, %s3578_s7  ;;  %v4777_v11 = vpop.permute.xlu0 %916 }
  0xc0   : > { %7572 = vst [vmem:[#allocation59_spill] sm:$0xff] %v4777_v11  ;;  %v1618_v11 = vrot.slane %v7586_v28, 1 }
  0xc2   : > { %1243 = vrot.lane.b32.xlu0 %v7571_v19, %s3578_s7 }
  0xc3   : > { %1245 = vrot.lane.b32.xlu1 %v7573_v12, %s3578_s7  ;;  %v4787_v10 = vpop.permute.xlu0 %877 }
  0xc4   : > { %7576 = vst [vmem:[#allocation49_spill] sm:$0xff] %v4787_v10 }
  0xc5   : > { %v4791_v16 = vpop.permute.xlu1 %932 }
  0xc6   : > { %1247 = vrot.lane.b32.xlu0 %v4775_v22, %s3578_s7  ;;  %7578 = vst [vmem:[#allocation51_spill] sm:$0xff] %v4791_v16  ;;  %v1619_v16 = vrot.slane %v7588_v13, 1 }
  0xc7   : > { %1259 = vrot.lane.b32.xlu1 %v7575_v20, %s3578_s7 }
  0xc8   : > { %v4797_v49 = vpop.permute.xlu0 %894 }
  0xc9   : > { %v4801_v50 = vpop.permute.xlu1 %914 }
  0xca   : > { %1261 = vrot.lane.b32.xlu0 %v7577_v15, %s3578_s7  ;;  %7581 = vst [vmem:[#allocation69_spill] sm:$0xff] %v4801_v50  ;;  %v3458_v50 = vld [vmem:[%s3677_s16 + $0x8] sm:$0xff] }
  0xcb   : > { %1263 = vrot.lane.b32.xlu1 %v4530_v17, %s3578_s7 }
  0xce   : > { %1275 = vrot.lane.b32.xlu0 %v7579_v7, %s3578_s7 }
  0xcf   : > { %1277 = vrot.lane.b32.xlu1 %v7580_v29, %s3578_s7 }
  0xd0   : > { %v4811_v44 = vpop.permute.xlu1 %936 }
  0xd1   : > { %v4807_v36 = vpop.permute.xlu0 %934  ;;  %7585 = vst [vmem:[#allocation72_spill] sm:$0xff] %v4811_v44 }
  0xd2   : > { %1279 = vrot.lane.b32.xlu0 %v4564_v52, %s3578_s7  ;;  %7583 = vst [vmem:[#allocation70_spill] sm:$0xff] %v4807_v36  ;;  %v1599_v36 = vrot.slane %v7584_v58, 1 }
  0xd3   : > { %1291 = vrot.lane.b32.xlu1 %v7582_v1, %s3578_s7 }
  0xd6   : > { %1293 = vrot.lane.b32.xlu0 %v7584_v58, %s3578_s7 }
  0xd7   : > { %1295 = vrot.lane.b32.xlu1 %v4600_v26, %s3578_s7 }
  0xd9   : > { %v4817_v6 = vpop.permute.xlu0 %952 }
  0xda   : > { %1307 = vrot.lane.b32.xlu0 %v7586_v28, %s3578_s7  ;;  %7587 = vst [vmem:[#allocation41_spill] sm:$0xff] %v4817_v6 }
  0xdb   : > { %1309 = vrot.lane.b32.xlu1 %v7588_v13, %s3578_s7  ;;  %v4821_v31 = vpop.permute.xlu1 %954 }
  0xdc   : > { %7589 = vst [vmem:[#allocation33_spill] sm:$0xff] %v4821_v31  ;;  %v1578_v31 = vrot.slane %v7579_v7, 1 }
  0xdd   : > { %v4827_v3 = vpop.permute.xlu0 %956 }
  0xde   : > { %1311 = vrot.lane.b32.xlu0 %v4614_v35, %s3578_s7  ;;  %7590 = vst [vmem:[#allocation74_spill] sm:$0xff] %v4827_v3 }
  0xdf   : > { %1323 = vrot.lane.b32.xlu1 %v4419_v60, %s3578_s7  ;;  %v4829_v37 = vpop.permute.xlu1 %972 }
  0xe0   : > { %7591 = vst [vmem:[#allocation75_spill] sm:$0xff] %v4829_v37  ;;  %v1579_v37 = vrot.slane %v7580_v29, 1 }
  0xe1   : > { %v4837_v57 = vpop.permute.xlu0 %974 }
  0xe2   : > { %1325 = vrot.lane.b32.xlu0 %v4431_v24, %s3578_s7  ;;  %7592 = vst [vmem:[#allocation34_spill] sm:$0xff] %v4837_v57  ;;  %v1559_v57 = vrot.slane %v7577_v15, 1 }
  0xe3   : > { %1327 = vrot.lane.b32.xlu1 %v4636_v2, %s3578_s7  ;;  %v4841_v30 = vpop.permute.xlu1 %976 }
  0xe4   : > { %7593 = vst [vmem:[#allocation63_spill] sm:$0xff] %v4841_v30 }
  0xe6   : > { %1383 = vrot.lane.b32.xlu0 %v7560_v43, %s3579_s29 }
  0xe7   : > { %1385 = vrot.lane.b32.xlu1 %v7563_v34, %s3579_s29 }
  0xea   : > { %1387 = vrot.lane.b32.xlu0 %v4741_v56, %s3579_s29 }
  0xeb   : > { %1395 = vrot.lane.b32.xlu1 %v7567_v54, %s3579_s29  ;;  %v4847_v47 = vpop.permute.xlu0 %992 }
  0xec   : > { %7594 = vst [vmem:[#allocation64_spill] sm:$0xff] %v4847_v47  ;;  %v1539_v47 = vrot.slane %v7573_v12, 1 }
  0xed   : > { %v4849_v5 = vpop.permute.xlu1 %994 }
  0xee   : > { %7595 = vst [vmem:[#allocation67_spill] sm:$0xff] %v4849_v5  ;;  %1397 = vrot.lane.b32.xlu0 %v7569_v62, %s3579_s29  ;;  %v4924_v5 = vrot.slane %v4741_v56, 1 }
  0xef   : > { %1399 = vrot.lane.b32.xlu1 %v4761_v53, %s3579_s29  ;;  %v4855_v51 = vpop.permute.xlu0 %996 }
  0xf0   : > { %7596 = vst [vmem:[#allocation62_spill] sm:$0xff] %v4855_v51 }
  0xf1   : > { %v4857_v45 = vpop.permute.xlu1 %1012 }
  0xf2   : > { %7597 = vst [vmem:[#allocation53_spill] sm:$0xff] %v4857_v45  ;;  %1410 = vrot.lane.b32.xlu0 %v7571_v19, %s3579_s29 }
  0xf3   : > { %1412 = vrot.lane.b32.xlu1 %v7573_v12, %s3579_s29 }
  0xf4   : > { %v4863_v39 = vpop.permute.xlu0 %1014 }
  0xf5   : > { %7598 = vst [vmem:[#allocation43_spill] sm:$0xff] %v4863_v39  ;;  %v4865_v33 = vpop.permute.xlu1 %1016 }
  0xf6   : > { %7599 = vst [vmem:[#allocation65_spill] sm:$0xff] %v4865_v33  ;;  %1414 = vrot.lane.b32.xlu0 %v4775_v22, %s3579_s29 }
  0xf7   : > { %1425 = vrot.lane.b32.xlu1 %v7575_v20, %s3579_s29 }
  0xf8   : > { %v4871_v21 = vpop.permute.xlu0 %1096 }
  0xf9   : > { %7600 = vst [vmem:[#allocation54_spill] sm:$0xff] %v4871_v21  ;;  %v4873_v63 = vpop.permute.xlu1 %1098  ;;  %v1519_v21 = vrot.slane %v7569_v62, 1 }
  0xfa   : > { %7601 = vst [vmem:[#allocation66_spill] sm:$0xff] %v4873_v63  ;;  %1427 = vrot.lane.b32.xlu0 %v7577_v15, %s3579_s29 }
  0xfb   : > { %1429 = vrot.lane.b32.xlu1 %v4530_v17, %s3579_s29 }
  0xfc   : > { %v4879_v32 = vpop.permute.xlu0 %1100 }
  0xfd   : > { %7602 = vst [vmem:[#allocation58_spill] sm:$0xff] %v4879_v32  ;;  %v4881_v0 = vpop.permute.xlu1 %1108 }
  0xfe   : > { %7603 = vst [vmem:[#allocation71_spill] sm:$0xff] %v4881_v0  ;;  %1440 = vrot.lane.b32.xlu0 %v7579_v7, %s3579_s29  ;;  %v1538_v0 = vrot.slane %v7571_v19, 1 }
  0xff   : > { %1442 = vrot.lane.b32.xlu1 %v7580_v29, %s3579_s29 }
 0x100   : > { %v4887_v41 = vpop.permute.xlu0 %1110 }
 0x101   : > { %7604 = vst [vmem:[#allocation8_spill] sm:$0xff] %v4887_v41  ;;  %v4889_v59 = vpop.permute.xlu1 %1112 }
 0x102   : > { %7605 = vst [vmem:[#allocation9_spill] sm:$0xff] %v4889_v59  ;;  %1444 = vrot.lane.b32.xlu0 %v4564_v52, %s3579_s29  ;;  %v1518_v59 = vrot.slane %v7567_v54, 1 }
 0x103   : > { %1455 = vrot.lane.b32.xlu1 %v7582_v1, %s3579_s29 }
 0x104   : > { %v4895_v33 = vpop.permute.xlu0 %1123 }
 0x105   : > { %7606 = vst [vmem:[#allocation10_spill] sm:$0xff] %v4895_v33  ;;  %v4897_v39 = vpop.permute.xlu1 %1125 }
 0x106   : > { %7607 = vst [vmem:[#allocation13_spill] sm:$0xff] %v4897_v39  ;;  %1457 = vrot.lane.b32.xlu0 %v7584_v58, %s3579_s29 }
 0x107   : > { %1459 = vrot.lane.b32.xlu1 %v4600_v26, %s3579_s29 }
 0x108   : > { %v4903_v51 = vpop.permute.xlu0 %1127 }
 0x109   : > { %7608 = vst [vmem:[#allocation14_spill] sm:$0xff] %v4903_v51  ;;  %v4905_v45 = vpop.permute.xlu1 %1138  ;;  %v1502_v51 = vrot.slane %v7563_v34, 1 }
 0x10a   : > { %7609 = vst [vmem:[#allocation11_spill] sm:$0xff] %v4905_v45  ;;  %1470 = vrot.lane.b32.xlu0 %v7586_v28, %s3579_s29  ;;  %v1501_v45 = vrot.slane %v7560_v43, 1 }
 0x10b   : > { %1472 = vrot.lane.b32.xlu1 %v7588_v13, %s3579_s29 }
 0x10c   : > { %v4911_v32 = vpop.permute.xlu0 %1140 }
 0x10d   : > { %7610 = vst [vmem:[#allocation15_spill] sm:$0xff] %v4911_v32  ;;  %v4913_v63 = vpop.permute.xlu1 %1142 }
 0x10e   : > { %7611 = vst [vmem:[#allocation17_spill] sm:$0xff] %v4913_v63  ;;  %1474 = vrot.lane.b32.xlu0 %v4614_v35, %s3579_s29  ;;  %v4933_v63 = vsel %vm1500_vm1, %v1501_v45, %v1502_v51  ;;  %v4950_v45 = vrot.slane %v4761_v53, 1 }
 0x10f   : > { %1485 = vrot.lane.b32.xlu1 %v4419_v60, %s3579_s29 }
 0x110   : > { %v4921_v39 = vpop.permute.xlu0 %1153 }
 0x111   : > { %7612 = vst [vmem:[#allocation18_spill] sm:$0xff] %v4921_v39  ;;  %v4926_v33 = vpop.permute.xlu1 %1155  ;;  %v4939_v39 = vsel %vm1500_vm1, %v1502_v51, %v4924_v5  ;;  %v4955_v51 = vsel %vm1500_vm1, %v1518_v59, %v1519_v21  ;;  %v4972_v59 = vrot.slane %v4775_v22, 1 }
 0x112   : > { %7613 = vst [vmem:[#allocation19_spill] sm:$0xff] %v4926_v33  ;;  %1487 = vrot.lane.b32.xlu0 %v4431_v24, %s3579_s29 }
 0x113   : > { %1489 = vrot.lane.b32.xlu1 %v4636_v2, %s3579_s29  ;;  %v4987_v30 = vsel %vm1500_vm1, %v1539_v47, %v4972_v59 }
 0x114   : > { %v4935_v32 = vpop.permute.xlu0 %1157 }
 0x115   : > { %7614 = vst [vmem:[#allocation12_spill] sm:$0xff] %v4935_v32  ;;  %v4943_v33 = vpop.permute.xlu1 %1168 }
 0x116   : > { %7615 = vst [vmem:[#allocation16_spill] sm:$0xff] %v4943_v33  ;;  %1506 = vrot.lane.b32.xlu0 %v4933_v63, %s3578_s7  ;;  %v4965_v33 = vsel %vm1500_vm1, %v1519_v21, %v4950_v45  ;;  %v4981_v21 = vsel %vm1500_vm1, %v1538_v0, %v1539_v47  ;;  %v4998_v0 = vrot.slane %v4530_v17, 1 }
 0x117   : > { %1508 = vrot.lane.b32.xlu1 %v4939_v39, %s3578_s7 }
 0x118   : > { %v4952_v32 = vpop.permute.xlu0 %1170 }
 0x119   : > { %7616 = vst [vmem:[#allocation20_spill] sm:$0xff] %v4952_v32  ;;  %v4957_v41 = vpop.permute.xlu1 %1172 }
 0x11a   : > { %7617 = vst [vmem:[#allocation21_spill] sm:$0xff] %v4957_v41  ;;  %1510 = vrot.lane.b32.xlu0 %v4924_v5, %s3578_s7 }
 0x11b   : > { %1523 = vrot.lane.b32.xlu1 %v4955_v51, %s3578_s7 }
 0x11c   : > { %v4969_v32 = vpop.permute.xlu0 %1183 }
 0x11d   : > { %7618 = vst [vmem:[#allocation25_spill] sm:$0xff] %v4969_v32  ;;  %v4974_v41 = vpop.permute.xlu1 %1185  ;;  %v1558_v32 = vrot.slane %v7575_v20, 1 }
 0x11e   : > { %7619 = vst [vmem:[#allocation22_spill] sm:$0xff] %v4974_v41  ;;  %1525 = vrot.lane.b32.xlu0 %v4965_v33, %s3578_s7 }
 0x11f   : > { %1527 = vrot.lane.b32.xlu1 %v4950_v45, %s3578_s7  ;;  %v5003_v47 = vsel %vm1500_vm1, %v1558_v32, %v1559_v57  ;;  %v5020_v32 = vrot.slane %v4564_v52, 1 }
 0x120   : > { %v4983_v8 = vpop.permute.xlu0 %1187 }
 0x121   : > { %7620 = vst [vmem:[#allocation24_spill] sm:$0xff] %v4983_v8  ;;  %v4991_v41 = vpop.permute.xlu1 %1198  ;;  %7625 = vst [vmem:[#allocation87_spill] sm:$0xff] %v5020_v32  ;;  %v5035_v6 = vsel %vm1500_vm1, %v1579_v37, %v5020_v32 }
 0x122   : > { %7621 = vst [vmem:[#allocation28_spill] sm:$0xff] %v4991_v41  ;;  %1543 = vrot.lane.b32.xlu0 %v4981_v21, %s3578_s7  ;;  %v5013_v41 = vsel %vm1500_vm1, %v1559_v57, %v4998_v0  ;;  %v5029_v57 = vsel %vm1500_vm1, %v1578_v31, %v1579_v37  ;;  %v5046_v31 = vrot.slane %v4600_v26, 1 }
 0x123   : > { %1545 = vrot.lane.b32.xlu1 %v4987_v30, %s3578_s7 }
 0x124   : > { %v5000_v8 = vpop.permute.xlu0 %1200 }
 0x125   : > { %7622 = vst [vmem:[#allocation30_spill] sm:$0xff] %v5000_v8  ;;  %v5005_v3 = vpop.permute.xlu1 %1202 }
 0x126   : > { %7623 = vst [vmem:[#allocation38_spill] sm:$0xff] %v5005_v3  ;;  %1547 = vrot.lane.b32.xlu0 %v4972_v59, %s3578_s7 }
 0x127   : > { %1563 = vrot.lane.b32.xlu1 %v5003_v47, %s3578_s7 }
 0x128   : > { %v5017_v8 = vpop.permute.xlu0 %1214 }
 0x129   : > { %7624 = vst [vmem:[#allocation50_spill] sm:$0xff] %v5017_v8  ;;  %v5022_v3 = vpop.permute.xlu1 %1216  ;;  %v1598_v8 = vrot.slane %v7582_v1, 1 }
 0x12a   : > { %7626 = vst [vmem:[#allocation88_spill] sm:$0xff] %v5022_v3  ;;  %1565 = vrot.lane.b32.xlu0 %v5013_v41, %s3578_s7 }
 0x12b   : > { %1567 = vrot.lane.b32.xlu1 %v4998_v0, %s3578_s7  ;;  %v5051_v37 = vsel %vm1500_vm1, %v1598_v8, %v1599_v36  ;;  %v5068_v8 = vrot.slane %v4614_v35, 1  ;;  %v1639_v35 = vrot.slane %v4431_v24, 1 }
 0x12c   : > { %v5031_v14 = vpop.permute.xlu0 %1218 }
 0x12d   : > { %7627 = vst [vmem:[#allocation89_spill] sm:$0xff] %v5031_v14  ;;  %v5039_v3 = vpop.permute.xlu1 %1227  ;;  %v5083_v13 = vsel %vm1500_vm1, %v1619_v16, %v5068_v8 }
 0x12e   : > { %7628 = vst [vmem:[#allocation90_spill] sm:$0xff] %v5039_v3  ;;  %1583 = vrot.lane.b32.xlu0 %v5029_v57, %s3578_s7  ;;  %v5061_v3 = vsel %vm1500_vm1, %v1599_v36, %v5046_v31  ;;  %v5077_v36 = vsel %vm1500_vm1, %v1618_v11, %v1619_v16  ;;  %v5094_v11 = vrot.slane %v4636_v2, 1 }
 0x12f   : > { %1585 = vrot.lane.b32.xlu1 %v5035_v6, %s3578_s7 }
 0x130   : > { %v5048_v14 = vpop.permute.xlu0 %1229 }
 0x131   : > { %7629 = vst [vmem:[#allocation91_spill] sm:$0xff] %v5048_v14  ;;  %v5053_v44 = vpop.permute.xlu1 %1231 }
 0x132   : > { %7630 = vst [vmem:[#allocation92_spill] sm:$0xff] %v5053_v44  ;;  %1587 = vrot.lane.b32.xlu0 %v5020_v32, %s3578_s7 }
 0x133   : > { %1603 = vrot.lane.b32.xlu1 %v5051_v37, %s3578_s7 }
 0x134   : > { %v5065_v14 = vpop.permute.xlu0 %1243 }
 0x135   : > { %7631 = vst [vmem:[#allocation93_spill] sm:$0xff] %v5065_v14  ;;  %v5070_v44 = vpop.permute.xlu1 %1245  ;;  %v1638_v14 = vrot.slane %v4419_v60, 1 }
 0x136   : > { %7632 = vst [vmem:[#allocation94_spill] sm:$0xff] %v5070_v44  ;;  %1605 = vrot.lane.b32.xlu0 %v5061_v3, %s3578_s7 }
 0x137   : > { %1607 = vrot.lane.b32.xlu1 %v5046_v31, %s3578_s7  ;;  %v5099_v16 = vsel %vm1500_vm1, %v1638_v14, %v1639_v35 }
 0x138   : > { %v5079_v58 = vpop.permute.xlu0 %1247 }
 0x139   : > { %7633 = vst [vmem:[#allocation95_spill] sm:$0xff] %v5079_v58  ;;  %v5087_v44 = vpop.permute.xlu1 %1259 }
 0x13a   : > { %7634 = vst [vmem:[#allocation96_spill] sm:$0xff] %v5087_v44  ;;  %1623 = vrot.lane.b32.xlu0 %v5077_v36, %s3578_s7  ;;  %v5109_v44 = vsel %vm1500_vm1, %v1639_v35, %v5094_v11 }
 0x13b   : > { %1625 = vrot.lane.b32.xlu1 %v5083_v13, %s3578_s7 }
 0x13c   : > { %v5096_v58 = vpop.permute.xlu0 %1261 }
 0x13d   : > { %7635 = vst [vmem:[#allocation97_spill] sm:$0xff] %v5096_v58  ;;  %v5101_v42 = vpop.permute.xlu1 %1263 }
 0x13e   : > { %7636 = vst [vmem:[#allocation98_spill] sm:$0xff] %v5101_v42  ;;  %1627 = vrot.lane.b32.xlu0 %v5068_v8, %s3578_s7  ;;  %v643_v42 = vstv %s3281_s3  ;;  %s3294_s3 = sld [smem:[#allocation2 + $0x982]] }
 0x13f   : > { %1643 = vrot.lane.b32.xlu1 %v5099_v16, %s3578_s7 }
 0x140   : > { %v5111_v24 = vpop.permute.xlu0 %1275 }
 0x141   : > { %7637 = vst [vmem:[#allocation99_spill] sm:$0xff] %v5111_v24  ;;  %v5113_v2 = vpop.permute.xlu1 %1277 }
 0x142   : > { %7638 = vst [vmem:[#allocation100_spill] sm:$0xff] %v5113_v2  ;;  %1645 = vrot.lane.b32.xlu0 %v5109_v44, %s3578_s7 }
 0x143   : > { %1647 = vrot.lane.b32.xlu1 %v5094_v11, %s3578_s7 }
 0x144   : > { %v5119_v14 = vpop.permute.xlu0 %1279 }
 0x145   : > { %7639 = vst [vmem:[#allocation101_spill] sm:$0xff] %v5119_v14  ;;  %v5121_v58 = vpop.permute.xlu1 %1291 }
 0x146   : > { %7640 = vst [vmem:[#allocation102_spill] sm:$0xff] %v5121_v58  ;;  %1727 = vrot.lane.b32.xlu0 %v4933_v63, %s3579_s29 }
 0x147   : > { %1729 = vrot.lane.b32.xlu1 %v4939_v39, %s3579_s29 }
 0x148   : > { %v5127_v35 = vpop.permute.xlu0 %1293 }
 0x149   : > { %7641 = vst [vmem:[#allocation103_spill] sm:$0xff] %v5127_v35  ;;  %v5129_v24 = vpop.permute.xlu1 %1295 }
 0x14a   : > { %7642 = vst [vmem:[#allocation104_spill] sm:$0xff] %v5129_v24  ;;  %1731 = vrot.lane.b32.xlu0 %v4924_v5, %s3579_s29 }
 0x14b   : > { %1739 = vrot.lane.b32.xlu1 %v4955_v51, %s3579_s29 }
 0x14c   : > { %v5135_v2 = vpop.permute.xlu0 %1307 }
 0x14d   : > { %7643 = vst [vmem:[#allocation105_spill] sm:$0xff] %v5135_v2  ;;  %v5137_v14 = vpop.permute.xlu1 %1309 }
 0x14e   : > { %7644 = vst [vmem:[#allocation106_spill] sm:$0xff] %v5137_v14  ;;  %1741 = vrot.lane.b32.xlu0 %v4965_v33, %s3579_s29 }
 0x14f   : > { %1743 = vrot.lane.b32.xlu1 %v4950_v45, %s3579_s29 }
 0x150   : > { %v5143_v58 = vpop.permute.xlu0 %1311 }
 0x151   : > { %7645 = vst [vmem:[#allocation107_spill] sm:$0xff] %v5143_v58  ;;  %v5145_v35 = vpop.permute.xlu1 %1323  ;;  %v638_v58 = vstv %s3280_s30  ;;  %s3293_s30 = sld [smem:[#allocation2 + $0x981]] }
 0x152   : > { %7646 = vst [vmem:[#allocation108_spill] sm:$0xff] %v5145_v35  ;;  %1754 = vrot.lane.b32.xlu0 %v4981_v21, %s3579_s29  ;;  %v640_v28 = vmul.f32 %v3458_v50, %v638_v58  ;;  %v3461_v50 = vld [vmem:[%s3677_s16 + $0x30] sm:$0xff] }
 0x153   : > { %1756 = vrot.lane.b32.xlu1 %v4987_v30, %s3579_s29  ;;  %v652_v23 = vmul.f32 %v3461_v50, %v651_v40 }
 0x154   : > { %v5151_v24 = vpop.permute.xlu0 %1325 }
 0x155   : > { %7647 = vst [vmem:[#allocation109_spill] sm:$0xff] %v5151_v24  ;;  %v5153_v2 = vpop.permute.xlu1 %1327 }
 0x156   : > { %7648 = vst [vmem:[#allocation110_spill] sm:$0xff] %v5153_v2  ;;  %1758 = vrot.lane.b32.xlu0 %v4972_v59, %s3579_s29 }
 0x157   : > { %1769 = vrot.lane.b32.xlu1 %v5003_v47, %s3579_s29 }
 0x158   : > { %v5159_v14 = vpop.permute.xlu0 %1383 }
 0x159   : > { %7649 = vst [vmem:[#allocation111_spill] sm:$0xff] %v5159_v14  ;;  %v5161_v35 = vpop.permute.xlu1 %1385  ;;  %v3457_v14 = vld [vmem:[%s3677_s16] sm:$0xff] }
 0x15a   : > { %7650 = vst [vmem:[#allocation112_spill] sm:$0xff] %v5161_v35  ;;  %1771 = vrot.lane.b32.xlu0 %v5013_v41, %s3579_s29  ;;  %v639_v60 = vmul.f32 %v3457_v14, %v638_v58 }
 0x15b   : > { %1773 = vrot.lane.b32.xlu1 %v4998_v0, %s3579_s29 }
 0x15c   : > { %v5167_v24 = vpop.permute.xlu0 %1387 }
 0x15d   : > { %7651 = vst [vmem:[#allocation113_spill] sm:$0xff] %v5167_v24  ;;  %v5169_v2 = vpop.permute.xlu1 %1395  ;;  %v3459_v24 = vld [vmem:[%s3677_s16 + $0x18] sm:$0xff] }
 0x15e   : > { %7652 = vst [vmem:[#allocation114_spill] sm:$0xff] %v5169_v2  ;;  %1784 = vrot.lane.b32.xlu0 %v5029_v57, %s3579_s29  ;;  %v644_v61 = vmul.f32 %v3459_v24, %v643_v42  ;;  %v3460_v2 = vld [vmem:[%s3677_s16 + $0x20] sm:$0xff]  ;;  %v3462_v24 = vld [vmem:[%s3677_s16 + $0x38] sm:$0xff] }
 0x15f   : > { %1786 = vrot.lane.b32.xlu1 %v5035_v6, %s3579_s29  ;;  %v645_v29 = vmul.f32 %v3460_v2, %v643_v42  ;;  %v653_v1 = vmul.f32 %v3462_v24, %v651_v40 }
 0x160   : > { %v5175_v35 = vpop.permute.xlu0 %1397  ;;  %v647_v14 = vadd.f32 %v644_v61, %v639_v60  ;;  %v3464_v61 = vld [vmem:[%s3677_s16 + $0x50] sm:$0xff] }
 0x161   : > { %7653 = vst [vmem:[#allocation115_spill] sm:$0xff] %v5175_v35  ;;  %v5181_v38 = vpop.permute.xlu1 %1399  ;;  %v648_v10 = vadd.f32 %v645_v29, %v640_v28 }
 0x162   : > { %7654 = vst [vmem:[#allocation116_spill] sm:$0xff] %v5181_v38  ;;  %1788 = vrot.lane.b32.xlu0 %v5020_v32, %s3579_s29  ;;  %v659_v38 = vstv %s3283_s5  ;;  %v655_v26 = vadd.f32 %v652_v23, %v647_v14  ;;  %s3296_s5 = sld [smem:[#allocation2 + $0xa00]] }
 0x163   : > { %1799 = vrot.lane.b32.xlu1 %v5051_v37, %s3579_s29  ;;  %v660_v60 = vmul.f32 %v3463_v55, %v659_v38  ;;  %v661_v29 = vmul.f32 %v3464_v61, %v659_v38  ;;  %v641_v61 = vmul.f32 %v4713_v27, %v638_v58  ;;  %v3467_v58 = vld [vmem:[%s3677_s16 + $0x58] sm:$0x3] }
 0x164   : > { %v5187_v35 = vpop.permute.xlu0 %1410 }
 0x165   : > { %7655 = vst [vmem:[#allocation117_spill] sm:$0xff] %v5187_v35  ;;  %v5191_v2 = vpop.permute.xlu1 %1412  ;;  %v656_v35 = vadd.f32 %v653_v1, %v648_v10  ;;  %v5209_v24 = vadd.f32 %v660_v60, %v655_v26 }
 0x166   : > { %7656 = vst [vmem:[#allocation118_spill] sm:$0xff] %v5191_v2  ;;  %1801 = vrot.lane.b32.xlu0 %v5061_v3, %s3579_s29 }
 0x167   : > { %1803 = vrot.lane.b32.xlu1 %v5046_v31, %s3579_s29  ;;  %7660 = vst [vmem:[#allocation122_spill] sm:$0xff] %v5209_v24  ;;  %v5222_v10 = vrot.slane %v5209_v24, 7 }
 0x168   : > { %v5197_v32 = vpop.permute.xlu0 %1414 }
 0x169   : > { %7657 = vst [vmem:[#allocation119_spill] sm:$0xff] %v5197_v32  ;;  %v5201_v28 = vpop.permute.xlu1 %1425  ;;  %v5211_v32 = vadd.f32 %v661_v29, %v656_v35  ;;  %7664 = vst [vmem:[#allocation126_spill] sm:$0xff] %v5222_v10  ;;  %v3465_v29 = vld [vmem:[%s3677_s16 + $0x28] sm:$0x3] }
 0x16a   : > { %7658 = vst [vmem:[#allocation120_spill] sm:$0xff] %v5201_v28  ;;  %1814 = vrot.lane.b32.xlu0 %v5077_v36, %s3579_s29 }
 0x16b   : > { %1816 = vrot.lane.b32.xlu1 %v5083_v13, %s3579_s29  ;;  %7661 = vst [vmem:[#allocation123_spill] sm:$0xff] %v5211_v32  ;;  %v5225_v1 = vrot.slane %v5211_v32, 7 }
 0x16c   : > { %v5207_v50 = vpop.permute.xlu0 %1427 }
 0x16d   : > { %7659 = vst [vmem:[#allocation121_spill] sm:$0xff] %v5207_v50  ;;  %v5213_v23 = vpop.permute.xlu1 %1429  ;;  %7665 = vst [vmem:[#allocation127_spill] sm:$0xff] %v5225_v1  ;;  %v5238_v14 = vsel %vm871_vm0, %v5222_v10, %v5225_v1 }
 0x16e   : > { %7662 = vst [vmem:[#allocation124_spill] sm:$0xff] %v5213_v23  ;;  %1818 = vrot.lane.b32.xlu0 %v5068_v8, %s3579_s29  ;;  %7668 = vst [vmem:[#allocation130_spill] sm:$0xff] %v5238_v14 }
 0x16f   : > { %1829 = vrot.lane.b32.xlu1 %v5099_v16, %s3579_s29 }
 0x170   : > { %v5219_v55 = vpop.permute.xlu0 %1440 }
 0x171   : > { %7663 = vst [vmem:[#allocation125_spill] sm:$0xff] %v5219_v55  ;;  %v5227_v26 = vpop.permute.xlu1 %1442 }
 0x172   : > { %7666 = vst [vmem:[#allocation128_spill] sm:$0xff] %v5227_v26  ;;  %1831 = vrot.lane.b32.xlu0 %v5109_v44, %s3579_s29  ;;  %v646_v26 = vmul.f32 %v3465_v29, %v643_v42  ;;  %v662_v29 = vmul.f32 %v3467_v58, %v659_v38 }
 0x173   : > { %1833 = vrot.lane.b32.xlu1 %v5094_v11, %s3579_s29 }
 0x174   : > { %v5233_v35 = vpop.permute.xlu0 %1444  ;;  %v649_v50 = vadd.f32 %v646_v26, %v641_v61 }
 0x175   : > { %7667 = vst [vmem:[#allocation129_spill] sm:$0xff] %v5233_v35  ;;  %v5240_v60 = vpop.permute.xlu1 %1455 }
 0x176   : > { %7669 = vst [vmem:[#allocation131_spill] sm:$0xff] %v5240_v60  ;;  %2011 = vrot.lane.b32.xlu0 %v5222_v10, %s3578_s7  ;;  %v3466_v60 = vld [vmem:[%s3677_s16 + $0x40] sm:$0x3] }
 0x177   : > { %2013 = vrot.lane.b32.xlu1 %v5238_v14, %s3578_s7  ;;  %v654_v23 = vmul.f32 %v3466_v60, %v651_v40 }
 0x178   : > { %v5248_v55 = vpop.permute.xlu0 %1457 }
 0x179   : > { %7670 = vst [vmem:[#allocation132_spill] sm:$0xff] %v5248_v55  ;;  %v5250_v35 = vpop.permute.xlu1 %1459  ;;  %v657_v42 = vadd.f32 %v654_v23, %v649_v50  ;;  %v7678_v50 = vld [vmem:[#allocation26_spill] sm:$0xff]  ;;  %v7679_v23 = vld [vmem:[#allocation27_spill] sm:$0xff] }
 0x17a   : > { %7671 = vst [vmem:[#allocation133_spill] sm:$0xff] %v5250_v35  ;;  %2015 = vrot.lane.b32.xlu0 %v5225_v1, %s3578_s7  ;;  %v1661_v38 = vmul.f32 %v4933_v63, %v7678_v50  ;;  %v1667_v61 = vmul.f32 %v4955_v51, %v7679_v23  ;;  %v2084_v63 = vrot.slane %v5209_v24, 1  ;;  %v1338_v51 = vmul.f32 %v7560_v43, %v7678_v50  ;;  %v7687_v35 = vld [vmem:[#allocation80_spill] sm:$0xff] }
 0x17b   : > { %2032 = vrot.lane.b32.xlu1 %v5222_v10, %s3579_s29  ;;  %v5272_v40 = vadd.f32 %v662_v29, %v657_v42  ;;  %v7682_v29 = vld [vmem:[#allocation36_spill] sm:$0xff]  ;;  %v2085_v10 = vrot.slane %v5211_v32, 1 }
 0x17c   : > { %v5257_v28 = vpop.permute.xlu0 %1470 }
 0x17d   : > { %7672 = vst [vmem:[#allocation134_spill] sm:$0xff] %v5257_v28  ;;  %v5259_v27 = vpop.permute.xlu1 %1472  ;;  %7676 = vst [vmem:[#allocation138_spill] sm:$0xff] %v5272_v40  ;;  %v1670_v28 = vadd.f32 %v1667_v61, %v1661_v38  ;;  %v1347_v38 = vmul.f32 %v7571_v19, %v7687_v35 }
 0x17e   : > { %7673 = vst [vmem:[#allocation135_spill] sm:$0xff] %v5259_v27  ;;  %2034 = vrot.lane.b32.xlu0 %v5238_v14, %s3579_s29  ;;  %v7681_v14 = vld [vmem:[#allocation32_spill] sm:$0xff] }
 0x17f   : > { %2036 = vrot.lane.b32.xlu1 %v5225_v1, %s3579_s29  ;;  %v1662_v42 = vmul.f32 %v4939_v39, %v7681_v14  ;;  %v1668_v1 = vmul.f32 %v4965_v33, %v7682_v29  ;;  %v5301_v39 = vrot.slane %v5272_v40, 1 }
 0x180   : > { %v5266_v55 = vpop.permute.xlu0 %1474 }
 0x181   : > { %7674 = vst [vmem:[#allocation136_spill] sm:$0xff] %v5266_v55  ;;  %v5268_v26 = vpop.permute.xlu1 %1485  ;;  %7684 = vst [vmem:[#allocation32_spill] sm:$0xff] %v5301_v39  ;;  %v7686_v55 = vld [vmem:[#allocation82_spill] sm:$0xff]  ;;  %v1671_v43 = vadd.f32 %v1668_v1, %v1662_v42  ;;  %v5326_v61 = vsel %vm1500_vm1, %v2085_v10, %v5301_v39  ;;  %v7693_v42 = vld [vmem:[#allocation84_spill] sm:$0xff] }
 0x182   : > { %7675 = vst [vmem:[#allocation137_spill] sm:$0xff] %v5268_v26  ;;  %2048 = vrot.lane.b32.xlu0 %v5209_v24, %s3578_s7  ;;  %v7685_v26 = vld [vmem:[#allocation81_spill] sm:$0xff]  ;;  %v1343_v27 = vmul.f32 %v4761_v53, %v7686_v55  ;;  %7692 = vst [vmem:[#allocation80_spill] sm:$0xff] %v5326_v61  ;;  %v1669_v19 = vmul.f32 %v4950_v45, %v7686_v55 }
 0x183   : > { %2050 = vrot.lane.b32.xlu1 %v5211_v32, %s3578_s7  ;;  %v1340_v33 = vmul.f32 %v4741_v56, %v7685_v26  ;;  %v5318_v56 = vsel %vm1500_vm1, %v2084_v63, %v2085_v10  ;;  %v1339_v10 = vmul.f32 %v7563_v34, %v7681_v14 }
 0x184   : > { %v5276_v60 = vpop.permute.xlu0 %1487  ;;  %7690 = vst [vmem:[#allocation81_spill] sm:$0xff] %v5318_v56 }
 0x185   : > { %7677 = vst [vmem:[#allocation139_spill] sm:$0xff] %v5276_v60  ;;  %v5282_v58 = vpop.permute.xlu1 %1489  ;;  %v1346_v1 = vadd.f32 %v1343_v27, %v1340_v33  ;;  %v1342_v27 = vmul.f32 %v7569_v62, %v7682_v29  ;;  %v1355_v62 = vmul.f32 %v4530_v17, %v4562_v18 }
 0x186   : > { %7680 = vst [vmem:[#allocation26_spill] sm:$0xff] %v5282_v58  ;;  %2052 = vrot.lane.b32.xlu0 %v5272_v40, %s3578_s7  ;;  %v1341_v58 = vmul.f32 %v7567_v54, %v7679_v23  ;;  %v7689_v54 = vld [vmem:[#allocation35_spill] sm:$0xff] }
 0x187   : > { %2069 = vrot.lane.b32.xlu1 %v5209_v24, %s3579_s29  ;;  %v1676_v24 = vmul.f32 %v4981_v21, %v7687_v35 }
 0x188   : > { %v5298_v60 = vpop.permute.xlu0 %1506  ;;  %v1344_v53 = vadd.f32 %v1341_v58, %v1338_v51  ;;  %v1663_v58 = vmul.f32 %v4924_v5, %v7685_v26 }
 0x189   : > { %7683 = vst [vmem:[#allocation27_spill] sm:$0xff] %v5298_v60  ;;  %v5309_v2 = vpop.permute.xlu1 %1508  ;;  %v1677_v60 = vmul.f32 %v4987_v30, %v7689_v54  ;;  %v1349_v30 = vmul.f32 %v4775_v22, %v7693_v42 }
 0x18a   : > { %7688 = vst [vmem:[#allocation36_spill] sm:$0xff] %v5309_v2  ;;  %2071 = vrot.lane.b32.xlu0 %v5211_v32, %s3579_s29  ;;  %v1679_v32 = vadd.f32 %v1676_v24, %v1670_v28  ;;  %v7694_v2 = vld [vmem:[#allocation86_spill] sm:$0xff]  ;;  %v1350_v5 = vadd.f32 %v1347_v38, %v1344_v53  ;;  %v1345_v53 = vadd.f32 %v1342_v27, %v1339_v10 }
 0x18b   : > { %2073 = vrot.lane.b32.xlu1 %v5272_v40, %s3579_s29  ;;  %v1685_v40 = vmul.f32 %v5003_v47, %v7694_v2  ;;  %v1680_v22 = vadd.f32 %v1677_v60, %v1671_v43  ;;  %v7695_v28 = vld [vmem:[#allocation42_spill] sm:$0xff]  ;;  %v1353_v45 = vmul.f32 %v7575_v20, %v7694_v2  ;;  %v1352_v34 = vadd.f32 %v1349_v30, %v1346_v1  ;;  %v7698_v1 = vld [vmem:[#allocation45_spill] sm:$0xff] }
 0x18c   : > { %v5322_v21 = vpop.permute.xlu0 %1510  ;;  %v1686_v47 = vmul.f32 %v5013_v41, %v7695_v28  ;;  %v1694_v60 = vmul.f32 %v5029_v57, %v4634_v4  ;;  %v1672_v41 = vadd.f32 %v1669_v19, %v1663_v58  ;;  %v1678_v43 = vmul.f32 %v4972_v59, %v7693_v42 }
 0x18d   : > { %7691 = vst [vmem:[#allocation82_spill] sm:$0xff] %v5322_v21  ;;  %v5332_v63 = vpop.permute.xlu1 %1523  ;;  %v1688_v51 = vadd.f32 %v1685_v40, %v1679_v32  ;;  %v1348_v20 = vmul.f32 %v7573_v12, %v7689_v54  ;;  %v1695_v17 = vmul.f32 %v5035_v6, %v7698_v1  ;;  %v1356_v32 = vadd.f32 %v1353_v45, %v1350_v5  ;;  %v7702_v45 = vld [vmem:[#allocation40_spill] sm:$0xff] }
 0x18e   : > { %2089 = vrot.lane.b32.xlu0 %v5318_v56, %s3578_s7  ;;  %v1689_v38 = vadd.f32 %v1686_v47, %v1680_v22  ;;  %v1359_v57 = vmul.f32 %v7579_v7, %v4634_v4  ;;  %v1358_v59 = vadd.f32 %v1355_v62, %v1352_v34  ;;  %v1361_v12 = vmul.f32 %v4564_v52, %v4580_v25  ;;  %v7700_v47 = vld [vmem:[#allocation68_spill] sm:$0xff] }
 0x18f   : > { %2091 = vrot.lane.b32.xlu1 %v5326_v61, %s3578_s7  ;;  %v1697_v30 = vadd.f32 %v1694_v60, %v1688_v51  ;;  %v1703_v58 = vmul.f32 %v5051_v37, %v4654_v48  ;;  %v901_v6 = vmul.f32 %v4769_v46, %v7679_v23  ;;  %v1681_v10 = vadd.f32 %v1678_v43, %v1672_v41  ;;  %v7703_v51 = vld [vmem:[#allocation60_spill] sm:$0xff] }
 0x190   : > { %v5350_v24 = vpop.permute.xlu0 %1525  ;;  %v1351_v27 = vadd.f32 %v1348_v20, %v1345_v53  ;;  %v1354_v7 = vmul.f32 %v7577_v15, %v7695_v28  ;;  %v902_v52 = vmul.f32 %v4797_v49, %v7682_v29  ;;  %v1687_v22 = vmul.f32 %v4998_v0, %v4562_v18  ;;  %v7701_v15 = vld [vmem:[#allocation39_spill] sm:$0xff]  ;;  %v7707_v20 = vld [vmem:[#allocation46_spill] sm:$0xff] }
 0x191   : > { %7696 = vst [vmem:[#allocation35_spill] sm:$0xff] %v5350_v24  ;;  %v5356_v33 = vpop.permute.xlu1 %1527  ;;  %v1698_v37 = vadd.f32 %v1695_v17, %v1689_v38  ;;  %v1704_v5 = vmul.f32 %v5061_v3, %v7700_v47  ;;  %v884_v46 = vmul.f32 %v4747_v9, %v7678_v50  ;;  %v1367_v34 = vmul.f32 %v7702_v45, %v7701_v15  ;;  %v7705_v0 = vld [vmem:[#allocation47_spill] sm:$0xff]  ;;  %v7706_v3 = vld [vmem:[#allocation49_spill] sm:$0xff] }
 0x192   : > { %7697 = vst [vmem:[#allocation84_spill] sm:$0xff] %v5356_v33  ;;  %2093 = vrot.lane.b32.xlu0 %v5301_v39, %s3578_s7  ;;  %v1362_v62 = vadd.f32 %v1359_v57, %v1356_v32  ;;  %v1365_v49 = vmul.f32 %v7703_v51, %v4654_v48  ;;  %v886_v41 = vmul.f32 %v7705_v0, %v7685_v26  ;;  %v7709_v32 = vld [vmem:[#allocation48_spill] sm:$0xff] }
 0x193   : > { %2113 = vrot.lane.b32.xlu1 %v5318_v56, %s3579_s29  ;;  %v885_v43 = vmul.f32 %v7706_v3, %v7681_v14  ;;  %v1706_v53 = vadd.f32 %v1703_v58, %v1697_v30  ;;  %v1712_v38 = vmul.f32 %v5077_v36, %v7707_v20  ;;  %v904_v17 = vadd.f32 %v901_v6, %v884_v46  ;;  %v7710_v51 = vld [vmem:[#allocation52_spill] sm:$0xff]  ;;  %v7712_v58 = vld [vmem:[#allocation23_spill] sm:$0xff] }
 0x194   : > { %v5370_v40 = vpop.permute.xlu0 %1543  ;;  %v903_v57 = vmul.f32 %v7709_v32, %v7686_v55  ;;  %v1357_v45 = vadd.f32 %v1354_v7, %v1351_v27  ;;  %v5412_v56 = vadd.f32 %v1687_v22, %v1681_v10  ;;  %v1707_v0 = vadd.f32 %v1704_v5, %v1698_v37  ;;  %v7713_v27 = vld [vmem:[#allocation76_spill] sm:$0xff]  ;;  %v7715_v10 = vld [vmem:[#allocation69_spill] sm:$0xff]  ;;  %v7716_v37 = vld [vmem:[#allocation55_spill] sm:$0xff] }
 0x195   : > { %v5376_v19 = vpop.permute.xlu1 %1545  ;;  %v921_v36 = vmul.f32 %v7712_v58, %v7687_v35  ;;  %v5420_v6 = vmul.f32 %v5046_v31, %v7701_v15  ;;  %v1368_v46 = vadd.f32 %v1365_v49, %v1362_v62  ;;  %v1371_v7 = vmul.f32 %v7713_v27, %v7707_v20  ;;  %v7718_v62 = vld [vmem:[#allocation61_spill] sm:$0xff]  ;;  %v7719_v58 = vld [vmem:[#allocation59_spill] sm:$0xff] }
 0x196   : > { %7699 = vst [vmem:[#allocation86_spill] sm:$0xff] %v5376_v19  ;;  %2115 = vrot.lane.b32.xlu0 %v5326_v61, %s3579_s29  ;;  %v1360_v61 = vmul.f32 %v7710_v51, %v7698_v1  ;;  %v1715_v22 = vadd.f32 %v1712_v38, %v1706_v53  ;;  %v1364_v5 = vadd.f32 %v1361_v12, %v1358_v59  ;;  %v7723_v12 = vld [vmem:[#allocation70_spill] sm:$0xff] }
 0x197   : > { %2117 = vrot.lane.b32.xlu1 %v5301_v39, %s3579_s29  ;;  %v905_v39 = vadd.f32 %v902_v52, %v885_v43  ;;  %v922_v52 = vmul.f32 %v7715_v10, %v7689_v54  ;;  %v924_v32 = vadd.f32 %v921_v36, %v904_v17  ;;  %v906_v51 = vadd.f32 %v903_v57, %v886_v41 }
 0x198   : > { %v5398_v60 = vpop.permute.xlu0 %1547  ;;  %v1363_v31 = vadd.f32 %v1360_v61, %v1357_v45  ;;  %v1366_v49 = vmul.f32 %v7718_v62, %v7700_v47  ;;  %v923_v27 = vmul.f32 %v7719_v58, %v7693_v42  ;;  %v942_v38 = vmul.f32 %v7723_v12, %v7695_v28  ;;  %v7724_v61 = vld [vmem:[#allocation78_spill] sm:$0xff]  ;;  %v7726_v45 = vld [vmem:[#allocation41_spill] sm:$0xff] }
 0x199   : > { %7704 = vst [vmem:[#allocation42_spill] sm:$0xff] %v5398_v60  ;;  %v5406_v9 = vpop.permute.xlu1 %1563  ;;  %v7711_v60 = vld [vmem:[#allocation73_spill] sm:$0xff]  ;;  %v925_v10 = vadd.f32 %v922_v52, %v905_v39  ;;  %v1374_v41 = vadd.f32 %v1371_v7, %v1368_v46  ;;  %v1377_v17 = vmul.f32 %v7724_v61, %v7716_v37  ;;  %v961_v36 = vmul.f32 %v7726_v45, %v4634_v4 }
 0x19a   : > { %7708 = vst [vmem:[#allocation45_spill] sm:$0xff] %v5406_v9  ;;  %v1713_v30 = vmul.f32 %v5083_v13, %v7711_v60  ;;  %v1721_v13 = vmul.f32 %v5099_v16, %v7716_v37  ;;  %v7722_v16 = vld [vmem:[#allocation72_spill] sm:$0xff]  ;;  %v1370_v39 = vadd.f32 %v1367_v34, %v1364_v5  ;;  %v926_v58 = vadd.f32 %v923_v27, %v906_v51  ;;  %v7732_v12 = vld [vmem:[#allocation77_spill] sm:$0xff]  ;;  %v7737_v27 = vld [vmem:[#allocation34_spill] sm:$0xff] }
 0x19b   : > { %v943_v59 = vmul.f32 %v7722_v16, %v4562_v18  ;;  %v7731_v16 = vld [vmem:[#allocation33_spill] sm:$0xff]  ;;  %v1369_v7 = vadd.f32 %v1366_v49, %v1363_v31  ;;  %v1372_v61 = vmul.f32 %v7732_v12, %v7711_v60  ;;  %v945_v51 = vadd.f32 %v942_v38, %v925_v10  ;;  %v7744_v10 = vld [vmem:[#allocation71_spill] sm:$0xff] }
 0x19c   : > { %v5424_v3 = vpop.permute.xlu0 %1565  ;;  %v5438_v53 = vadd.f32 %v1713_v30, %v1707_v0  ;;  %v5450_v62 = vadd.f32 %v1721_v13, %v1715_v22  ;;  %v7728_v0 = vld [vmem:[#allocation31_spill] sm:$0xff]  ;;  %v7729_v30 = vld [vmem:[#allocation29_spill] sm:$0xff]  ;;  %v962_v46 = vmul.f32 %v7731_v16, %v7698_v1  ;;  %v7734_v22 = vld [vmem:[#allocation74_spill] sm:$0xff]  ;;  %v982_v16 = vmul.f32 %v7737_v27, %v7700_v47 }
 0x19d   : > { %7714 = vst [vmem:[#allocation68_spill] sm:$0xff] %v5424_v3  ;;  %v5430_v43 = vpop.permute.xlu1 %1567  ;;  %v7720_v3 = vld [vmem:[#allocation51_spill] sm:$0xff]  ;;  %v963_v34 = vmul.f32 %v7734_v22, %v4580_v25  ;;  %v5470_v31 = vadd.f32 %v1377_v17, %v1374_v41  ;;  %v7741_v22 = vld [vmem:[#allocation56_spill] sm:$0xff]  ;;  %v1117_v38 = vmul.f32 %v7744_v10, %v7679_v23 }
 0x19e   : > { %7717 = vst [vmem:[#allocation39_spill] sm:$0xff] %v5430_v43  ;;  %v941_v19 = vmul.f32 %v7720_v3, %v7694_v2  ;;  %7721 = vst [vmem:[#allocation40_spill] sm:$0xff] %v5438_v53  ;;  %v1373_v3 = vmul.f32 %v7729_v30, %v7728_v0  ;;  %v7733_v43 = vld [vmem:[#allocation75_spill] sm:$0xff]  ;;  %v946_v30 = vadd.f32 %v943_v59, %v926_v58 }
 0x19f   : > { %7727 = vst [vmem:[#allocation47_spill] sm:$0xff] %v5450_v62  ;;  %v981_v45 = vmul.f32 %v7733_v43, %v4654_v48  ;;  %v7735_v13 = vld [vmem:[#allocation83_spill] sm:$0xff]  ;;  %7738 = vst [vmem:[#allocation48_spill] sm:$0xff] %v5470_v31  ;;  %v7742_v62 = vld [vmem:[#allocation44_spill] sm:$0xff]  ;;  %v965_v59 = vadd.f32 %v962_v46, %v945_v51  ;;  %v1375_v58 = vadd.f32 %v1372_v61, %v1369_v7 }
 0x1a0   : > { %v5446_v57 = vpop.permute.xlu0 %1583  ;;  %v944_v53 = vadd.f32 %v941_v19, %v924_v32  ;;  %v5466_v5 = vmul.f32 %v5109_v44, %v7735_v13  ;;  %v7740_v32 = vld [vmem:[#allocation63_spill] sm:$0xff]  ;;  %v5476_v12 = vadd.f32 %v1373_v3, %v1370_v39  ;;  %v7747_v39 = vld [vmem:[#allocation8_spill] sm:$0xff]  ;;  %v7749_v46 = vld [vmem:[#allocation9_spill] sm:$0xff] }
 0x1a1   : > { %7725 = vst [vmem:[#allocation60_spill] sm:$0xff] %v5446_v57  ;;  %v5454_v52 = vpop.permute.xlu1 %1585  ;;  %v983_v43 = vmul.f32 %v7740_v32, %v7701_v15  ;;  %v7745_v41 = vld [vmem:[#allocation79_spill] sm:$0xff]  ;;  %v1118_v3 = vmul.f32 %v7747_v39, %v7682_v29  ;;  %v1119_v51 = vmul.f32 %v7749_v46, %v7686_v55  ;;  %v7750_v7 = vld [vmem:[#allocation10_spill] sm:$0xff] }
 0x1a2   : > { %7730 = vst [vmem:[#allocation49_spill] sm:$0xff] %v5454_v52  ;;  %7736 = vst [vmem:[#allocation46_spill] sm:$0xff] %v5466_v5  ;;  %v964_v19 = vadd.f32 %v961_v36, %v944_v53  ;;  %v1379_v52 = vmul.f32 %v7742_v62, %v7741_v22  ;;  %v1378_v17 = vmul.f32 %v7745_v41, %v7735_v13  ;;  %v7746_v36 = vld [vmem:[#allocation64_spill] sm:$0xff]  ;;  %v7748_v62 = vld [vmem:[#allocation54_spill] sm:$0xff] }
 0x1a3   : > { %v966_v53 = vadd.f32 %v963_v34, %v946_v30  ;;  %v1001_v32 = vmul.f32 %v7746_v36, %v7707_v20  ;;  %v985_v5 = vadd.f32 %v982_v16, %v965_v59  ;;  %v1132_v61 = vmul.f32 %v7750_v7, %v7687_v35  ;;  %v7752_v34 = vld [vmem:[#allocation67_spill] sm:$0xff]  ;;  %v7754_v16 = vld [vmem:[#allocation13_spill] sm:$0xff] }
 0x1a4   : > { %v5472_v49 = vpop.permute.xlu0 %1587  ;;  %v984_v27 = vadd.f32 %v981_v45, %v964_v19  ;;  %v1002_v30 = vmul.f32 %v7752_v34, %v7711_v60  ;;  %v7753_v19 = vld [vmem:[#allocation66_spill] sm:$0xff]  ;;  %v1133_v59 = vmul.f32 %v7754_v16, %v7689_v54  ;;  %v7757_v7 = vld [vmem:[#allocation11_spill] sm:$0xff]  ;;  %v7759_v34 = vld [vmem:[#allocation53_spill] sm:$0xff] }
 0x1a5   : > { %7739 = vst [vmem:[#allocation52_spill] sm:$0xff] %v5472_v49  ;;  %v5480_v44 = vpop.permute.xlu1 %1603  ;;  %v1105_v49 = vmul.f32 %v7748_v62, %v7678_v50  ;;  %v986_v45 = vadd.f32 %v983_v43, %v966_v53  ;;  %v1106_v41 = vmul.f32 %v7753_v19, %v7681_v14  ;;  %v7756_v62 = vld [vmem:[#allocation58_spill] sm:$0xff]  ;;  %v1021_v21 = vmul.f32 %v7759_v34, %v7716_v37  ;;  %v7760_v57 = vld [vmem:[#allocation15_spill] sm:$0xff] }
 0x1a6   : > { %7743 = vst [vmem:[#allocation73_spill] sm:$0xff] %v5480_v44  ;;  %v1107_v46 = vmul.f32 %v7756_v62, %v7685_v26  ;;  %v1147_v44 = vmul.f32 %v7757_v7, %v7694_v2  ;;  %v7758_v43 = vld [vmem:[#allocation14_spill] sm:$0xff]  ;;  %v1148_v16 = vmul.f32 %v7760_v57, %v7695_v28  ;;  %v1005_v9 = vadd.f32 %v1002_v30, %v985_v5  ;;  %v7770_v5 = vld [vmem:[#allocation43_spill] sm:$0xff] }
 0x1a7   : > { %v1120_v39 = vadd.f32 %v1117_v38, %v1105_v49  ;;  %v1134_v53 = vmul.f32 %v7758_v43, %v7693_v42  ;;  %v1121_v19 = vadd.f32 %v1118_v3, %v1106_v41  ;;  %v7761_v49 = vld [vmem:[#allocation17_spill] sm:$0xff]  ;;  %v7762_v62 = vld [vmem:[#allocation18_spill] sm:$0xff]  ;;  %v7765_v3 = vld [vmem:[#allocation19_spill] sm:$0xff]  ;;  %v1022_v30 = vmul.f32 %v7770_v5, %v7735_v13 }
 0x1a8   : > { %v5496_v10 = vpop.permute.xlu0 %1605  ;;  %v1122_v24 = vadd.f32 %v1119_v51, %v1107_v46  ;;  %v1149_v38 = vmul.f32 %v7761_v49, %v4562_v18  ;;  %v1162_v33 = vmul.f32 %v7762_v62, %v4634_v4  ;;  %v1163_v41 = vmul.f32 %v7765_v3, %v7698_v1  ;;  %v7768_v46 = vld [vmem:[#allocation12_spill] sm:$0xff]  ;;  %v7776_v5 = vld [vmem:[#allocation22_spill] sm:$0xff] }
 0x1a9   : > { %7751 = vst [vmem:[#allocation23_spill] sm:$0xff] %v5496_v10  ;;  %v5504_v36 = vpop.permute.xlu1 %1607  ;;  %v1004_v10 = vadd.f32 %v1001_v32, %v984_v27  ;;  %v7764_v27 = vld [vmem:[#allocation62_spill] sm:$0xff]  ;;  %v1136_v43 = vadd.f32 %v1133_v59, %v1121_v19  ;;  %v1164_v49 = vmul.f32 %v7768_v46, %v4580_v25  ;;  %v7771_v59 = vld [vmem:[#allocation20_spill] sm:$0xff] }
 0x1aa   : > { %7755 = vst [vmem:[#allocation76_spill] sm:$0xff] %v5504_v36  ;;  %v1135_v36 = vadd.f32 %v1132_v61, %v1120_v39  ;;  %v1003_v32 = vmul.f32 %v7764_v27, %v7728_v0  ;;  %v1137_v51 = vadd.f32 %v1134_v53, %v1122_v24  ;;  %v7767_v61 = vld [vmem:[#allocation16_spill] sm:$0xff]  ;;  %v1178_v19 = vmul.f32 %v7771_v59, %v7700_v47 }
 0x1ab   : > { %v1177_v39 = vmul.f32 %v7767_v61, %v4654_v48  ;;  %v5532_v62 = vadd.f32 %v1021_v21, %v1004_v10  ;;  %v1151_v27 = vadd.f32 %v1148_v16, %v1136_v43  ;;  %v7775_v21 = vld [vmem:[#allocation65_spill] sm:$0xff]  ;;  %v1193_v16 = vmul.f32 %v7776_v5, %v7711_v60  ;;  %v7779_v59 = vld [vmem:[#allocation28_spill] sm:$0xff] }
 0x1ac   : > { %v5520_v7 = vpop.permute.xlu0 %1623  ;;  %v1150_v57 = vadd.f32 %v1147_v44, %v1135_v36  ;;  %v1152_v3 = vadd.f32 %v1149_v38, %v1137_v51  ;;  %v7772_v44 = vld [vmem:[#allocation21_spill] sm:$0xff]  ;;  %v1023_v10 = vmul.f32 %v7775_v21, %v7741_v22  ;;  %v7778_v38 = vld [vmem:[#allocation87_spill] sm:$0xff] }
 0x1ad   : > { %7763 = vst [vmem:[#allocation69_spill] sm:$0xff] %v5520_v7  ;;  %v5526_v34 = vpop.permute.xlu1 %1625  ;;  %7769 = vst [vmem:[#allocation61_spill] sm:$0xff] %v5532_v62  ;;  %v1179_v24 = vmul.f32 %v7772_v44, %v7701_v15  ;;  %v7773_v36 = vld [vmem:[#allocation25_spill] sm:$0xff]  ;;  %v1166_v46 = vadd.f32 %v1163_v41, %v1151_v27  ;;  %v1207_v44 = vmul.f32 %v7779_v59, %v7716_v37 }
 0x1ae   : > { %7766 = vst [vmem:[#allocation55_spill] sm:$0xff] %v5526_v34  ;;  %v1165_v7 = vadd.f32 %v1162_v33, %v1150_v57  ;;  %v1192_v53 = vmul.f32 %v7773_v36, %v7707_v20  ;;  %v1696_v33 = vmul.f32 %v7778_v38, %v4580_v25  ;;  %v1167_v51 = vadd.f32 %v1164_v49, %v1152_v3  ;;  %v7780_v36 = vld [vmem:[#allocation24_spill] sm:$0xff]  ;;  %v7783_v21 = vld [vmem:[#allocation57_spill] sm:$0xff] }
 0x1af   : > { %v1194_v34 = vmul.f32 %v7780_v36, %v7728_v0  ;;  %v1181_v31 = vadd.f32 %v1178_v19, %v1166_v46  ;;  %v5557_v41 = vadd.f32 %v1379_v52, %v5476_v12  ;;  %v5559_v27 = vadd.f32 %v1378_v17, %v1375_v58  ;;  %v7791_v19 = vld [vmem:[#allocation91_spill] sm:$0xff]  ;;  %v7794_v46 = vld [vmem:[#allocation50_spill] sm:$0xff] }
 0x1b0   : > { %v5542_v61 = vpop.permute.xlu0 %1627  ;;  %v1180_v57 = vadd.f32 %v1177_v39, %v1165_v7  ;;  %v1844_v5 = vmax.f32 %v5532_v62, %v7783_v21  ;;  %v1182_v7 = vadd.f32 %v1179_v24, %v1167_v51  ;;  %v1699_v52 = vadd.f32 %v1696_v33, %v5412_v56  ;;  %v7797_v51 = vld [vmem:[#allocation89_spill] sm:$0xff] }
 0x1b1   : > { %7774 = vst [vmem:[#allocation59_spill] sm:$0xff] %v5542_v61  ;;  %v5548_v43 = vpop.permute.xlu1 %1643  ;;  %v1006_v61 = vadd.f32 %v1003_v32, %v986_v45  ;;  %7781 = vst [vmem:[#allocation72_spill] sm:$0xff] %v5557_v41  ;;  %v1196_v38 = vadd.f32 %v1193_v16, %v1181_v31  ;;  %v7787_v45 = vld [vmem:[#allocation90_spill] sm:$0xff]  ;;  %v1237_v24 = vmul.f32 %v7791_v19, %v7682_v29  ;;  %v7795_v16 = vld [vmem:[#allocation93_spill] sm:$0xff] }
 0x1b2   : > { %7777 = vst [vmem:[#allocation51_spill] sm:$0xff] %v5548_v43  ;;  %7782 = vst [vmem:[#allocation70_spill] sm:$0xff] %v5559_v27  ;;  %v5563_v43 = vadd.f32 %v1022_v30, %v1005_v9  ;;  %v1195_v39 = vadd.f32 %v1192_v53, %v1180_v57  ;;  %v1236_v32 = vmul.f32 %v7787_v45, %v7679_v23  ;;  %v7790_v9 = vld [vmem:[#allocation92_spill] sm:$0xff]  ;;  %v7792_v53 = vld [vmem:[#allocation38_spill] sm:$0xff] }
 0x1b3   : > { %v5567_v3 = vadd.f32 %v1023_v10, %v1006_v61  ;;  %v1197_v17 = vadd.f32 %v1194_v34, %v1182_v7  ;;  %v1238_v30 = vmul.f32 %v7790_v9, %v7686_v55  ;;  %v1209_v61 = vmul.f32 %v7792_v53, %v7741_v22  ;;  %v7793_v31 = vld [vmem:[#allocation30_spill] sm:$0xff]  ;;  %v7796_v34 = vld [vmem:[#allocation88_spill] sm:$0xff]  ;;  %v7799_v7 = vld [vmem:[#allocation95_spill] sm:$0xff] }
 0x1b4   : > { %7784 = vst [vmem:[#allocation78_spill] sm:$0xff] %v5563_v43  ;;  %v5565_v49 = vpop.permute.xlu0 %1645  ;;  %v5574_v58 = vadd.f32 %v1207_v44, %v1195_v39  ;;  %v1208_v10 = vmul.f32 %v7793_v31, %v7735_v13  ;;  %v1223_v56 = vmul.f32 %v7794_v46, %v7678_v50  ;;  %v1252_v33 = vmul.f32 %v7795_v16, %v7687_v35  ;;  %v7798_v44 = vld [vmem:[#allocation94_spill] sm:$0xff]  ;;  %v7800_v19 = vld [vmem:[#allocation96_spill] sm:$0xff] }
 0x1b5   : > { %7785 = vst [vmem:[#allocation41_spill] sm:$0xff] %v5565_v49  ;;  %7786 = vst [vmem:[#allocation31_spill] sm:$0xff] %v5567_v3  ;;  %v5572_v12 = vpop.permute.xlu1 %1647  ;;  %v1224_v57 = vmul.f32 %v7796_v34, %v7681_v14  ;;  %v1225_v59 = vmul.f32 %v7797_v51, %v7685_v26  ;;  %v1253_v36 = vmul.f32 %v7798_v44, %v7689_v54  ;;  %v7802_v44 = vld [vmem:[#allocation98_spill] sm:$0xff]  ;;  %v7807_v49 = vld [vmem:[#allocation100_spill] sm:$0xff] }
 0x1b6   : > { %7788 = vst [vmem:[#allocation29_spill] sm:$0xff] %v5572_v12  ;;  %7789 = vst [vmem:[#allocation33_spill] sm:$0xff] %v5574_v58  ;;  %v1254_v39 = vmul.f32 %v7799_v7, %v7693_v42  ;;  %v1239_v9 = vadd.f32 %v1236_v32, %v1223_v56  ;;  %v1268_v53 = vmul.f32 %v7800_v19, %v7694_v2  ;;  %v7803_v7 = vld [vmem:[#allocation97_spill] sm:$0xff] }
 0x1b7   : > { %v1708_v31 = vadd.f32 %v5420_v6, %v1699_v52  ;;  %v1714_v46 = vmul.f32 %v5068_v8, %v7728_v0  ;;  %v1241_v34 = vadd.f32 %v1238_v30, %v1225_v59  ;;  %v1240_v51 = vadd.f32 %v1237_v24, %v1224_v57  ;;  %v7806_v6 = vld [vmem:[#allocation99_spill] sm:$0xff]  ;;  %v7808_v24 = vld [vmem:[#allocation101_spill] sm:$0xff] }
 0x1b8   : > { %v5596_v45 = vpop.permute.xlu0 %1727  ;;  %v1270_v21 = vmul.f32 %v7802_v44, %v4562_v18  ;;  %v1269_v62 = vmul.f32 %v7803_v7, %v7695_v28  ;;  %v5609_v27 = vadd.f32 %v1209_v61, %v1197_v17  ;;  %v5611_v32 = vadd.f32 %v1208_v10, %v1196_v38  ;;  %v7810_v17 = vld [vmem:[#allocation102_spill] sm:$0xff]  ;;  %v7813_v7 = vld [vmem:[#allocation37_spill] sm:$0xff] }
 0x1b9   : > { %v5603_v16 = vpop.permute.xlu1 %1729  ;;  %v1255_v56 = vadd.f32 %v1252_v33, %v1239_v9  ;;  %v1284_v52 = vmul.f32 %v7806_v6, %v4634_v4  ;;  %v1256_v19 = vadd.f32 %v1253_v36, %v1240_v51  ;;  %v1257_v8 = vadd.f32 %v1254_v39, %v1241_v34  ;;  %v7811_v9 = vld [vmem:[#allocation104_spill] sm:$0xff]  ;;  %v7812_v34 = vld [vmem:[#allocation103_spill] sm:$0xff] }
 0x1ba   : > { %7801 = vst [vmem:[#allocation77_spill] sm:$0xff] %v5603_v16  ;;  %7804 = vst [vmem:[#allocation75_spill] sm:$0xff] %v5609_v27  ;;  %v1285_v30 = vmul.f32 %v7807_v49, %v7698_v1  ;;  %v1286_v57 = vmul.f32 %v7808_v24, %v4580_v25  ;;  %v1300_v61 = vmul.f32 %v7810_v17, %v4654_v48 }
 0x1bb   : > { %7805 = vst [vmem:[#allocation74_spill] sm:$0xff] %v5611_v32  ;;  %v1271_v44 = vadd.f32 %v1268_v53, %v1255_v56  ;;  %v1717_v38 = vadd.f32 %v1714_v46, %v1708_v31  ;;  %v1723_v10 = vmul.f32 %v5094_v11, %v7741_v22  ;;  %v1273_v36 = vadd.f32 %v1270_v21, %v1257_v8  ;;  %v7814_v56 = vld [vmem:[#allocation85_spill] sm:$0xff] }
 0x1bc   : > { %v5619_v59 = vpop.permute.xlu0 %1731  ;;  %v1272_v39 = vadd.f32 %v1269_v62, %v1256_v19  ;;  %v1302_v49 = vmul.f32 %v7811_v9, %v7701_v15  ;;  %v1301_v51 = vmul.f32 %v7812_v34, %v7700_v47  ;;  %v1846_v53 = vmax.f32 %v5567_v3, %v7813_v7  ;;  %v7815_v46 = vld [vmem:[#allocation105_spill] sm:$0xff]  ;;  %v7816_v19 = vld [vmem:[#allocation107_spill] sm:$0xff] }
 0x1bd   : > { %7809 = vst [vmem:[#allocation83_spill] sm:$0xff] %v5619_v59  ;;  %v5625_v33 = vpop.permute.xlu1 %1739  ;;  %v1845_v6 = vmax.f32 %v5563_v43, %v7814_v56  ;;  %v1287_v31 = vadd.f32 %v1284_v52, %v1271_v44  ;;  %v1316_v11 = vmul.f32 %v7815_v46, %v7707_v20  ;;  %v5638_v24 = vmax.f32 %v1844_v5, %v5574_v58 }
 0x1be   : > { %v1288_v62 = vadd.f32 %v1285_v30, %v1272_v39  ;;  %v1289_v21 = vadd.f32 %v1286_v57, %v1273_v36  ;;  %v1318_v8 = vmul.f32 %v7816_v19, %v7728_v0  ;;  %v5645_v9 = vmax.f32 %v1846_v53, %v5609_v27  ;;  %v7820_v30 = vld [vmem:[#allocation108_spill] sm:$0xff]  ;;  %v7821_v36 = vld [vmem:[#allocation114_spill] sm:$0xff] }
 0x1bf   : > { %v5648_v34 = vmax.f32 %v1845_v6, %v5611_v32  ;;  %v1303_v52 = vadd.f32 %v1300_v61, %v1287_v31  ;;  %v5650_v44 = vadd.f32 %v1723_v10, %v1717_v38  ;;  %v1332_v57 = vmul.f32 %v7820_v30, %v7716_v37  ;;  %v7822_v19 = vld [vmem:[#allocation106_spill] sm:$0xff]  ;;  %v7823_v6 = vld [vmem:[#allocation116_spill] sm:$0xff]  ;;  %v7824_v61 = vld [vmem:[#allocation115_spill] sm:$0xff] }
 0x1c0   : > { %v5642_v17 = vpop.permute.xlu0 %1741  ;;  %v1305_v5 = vadd.f32 %v1302_v49, %v1289_v21  ;;  %v1304_v56 = vadd.f32 %v1301_v51, %v1288_v62  ;;  %v1404_v39 = vmul.f32 %v7821_v36, %v7679_v23  ;;  %v1317_v53 = vmul.f32 %v7822_v19, %v7711_v60  ;;  %v7825_v49 = vld [vmem:[#allocation110_spill] sm:$0xff]  ;;  %v7826_v31 = vld [vmem:[#allocation111_spill] sm:$0xff]  ;;  %v7827_v21 = vld [vmem:[#allocation117_spill] sm:$0xff] }
 0x1c1   : > { %7817 = vst [vmem:[#allocation34_spill] sm:$0xff] %v5642_v17  ;;  %7818 = vst [vmem:[#allocation63_spill] sm:$0xff] %v5648_v34  ;;  %v5652_v46 = vpop.permute.xlu1 %1743  ;;  %v1319_v43 = vadd.f32 %v1316_v11, %v1303_v52  ;;  %v1406_v32 = vmul.f32 %v7823_v6, %v7686_v55  ;;  %v1405_v38 = vmul.f32 %v7824_v61, %v7682_v29  ;;  %v7828_v11 = vld [vmem:[#allocation112_spill] sm:$0xff]  ;;  %v7829_v19 = vld [vmem:[#allocation113_spill] sm:$0xff] }
 0x1c2   : > { %7819 = vst [vmem:[#allocation56_spill] sm:$0xff] %v5650_v44  ;;  %v1321_v10 = vadd.f32 %v1318_v8, %v1305_v5  ;;  %v1334_v51 = vmul.f32 %v7825_v49, %v7741_v22  ;;  %v1392_v62 = vmul.f32 %v7826_v31, %v7678_v50  ;;  %v1419_v30 = vmul.f32 %v7827_v21, %v7687_v35  ;;  %v7830_v61 = vld [vmem:[#allocation118_spill] sm:$0xff]  ;;  %v7831_v5 = vld [vmem:[#allocation119_spill] sm:$0xff]  ;;  %v7834_v21 = vld [vmem:[#allocation109_spill] sm:$0xff] }
 0x1c3   : > { %v1393_v52 = vmul.f32 %v7828_v11, %v7681_v14  ;;  %v1394_v6 = vmul.f32 %v7829_v19, %v7685_v26  ;;  %v1420_v8 = vmul.f32 %v7830_v61, %v7689_v54  ;;  %v1421_v49 = vmul.f32 %v7831_v5, %v7693_v42  ;;  %v7835_v44 = vld [vmem:[#allocation120_spill] sm:$0xff]  ;;  %v7837_v61 = vld [vmem:[#allocation121_spill] sm:$0xff] }
 0x1c4   : > { %v5670_v36 = vpop.permute.xlu0 %1754  ;;  %v5682_v31 = vadd.f32 %v1332_v57, %v1319_v43  ;;  %v1333_v7 = vmul.f32 %v7834_v21, %v7735_v13  ;;  %v1407_v3 = vadd.f32 %v1404_v39, %v1392_v62  ;;  %v1434_v11 = vmul.f32 %v7835_v44, %v7694_v2  ;;  %v7836_v19 = vld [vmem:[#allocation124_spill] sm:$0xff]  ;;  %v7839_v57 = vld [vmem:[#allocation125_spill] sm:$0xff] }
 0x1c5   : > { %v5680_v27 = vpop.permute.xlu1 %1756  ;;  %v1409_v58 = vadd.f32 %v1406_v32, %v1394_v6  ;;  %v1408_v16 = vadd.f32 %v1405_v38, %v1393_v52  ;;  %v1436_v12 = vmul.f32 %v7836_v19, %v4562_v18  ;;  %v1435_v17 = vmul.f32 %v7837_v61, %v7695_v28  ;;  %v7840_v32 = vld [vmem:[#allocation128_spill] sm:$0xff]  ;;  %v7841_v38 = vld [vmem:[#allocation129_spill] sm:$0xff] }
 0x1c6   : > { %7832 = vst [vmem:[#allocation44_spill] sm:$0xff] %v5680_v27  ;;  %7833 = vst [vmem:[#allocation71_spill] sm:$0xff] %v5682_v31  ;;  %v1320_v5 = vadd.f32 %v1317_v53, %v1304_v56  ;;  %v5692_v59 = vadd.f32 %v1334_v51, %v1321_v10  ;;  %v1422_v43 = vadd.f32 %v1419_v30, %v1407_v3  ;;  %v7843_v10 = vld [vmem:[#allocation131_spill] sm:$0xff] }
 0x1c7   : > { %v1449_v27 = vmul.f32 %v7839_v57, %v4634_v4  ;;  %v1423_v39 = vadd.f32 %v1420_v8, %v1408_v16  ;;  %v1424_v62 = vadd.f32 %v1421_v49, %v1409_v58  ;;  %v1450_v44 = vmul.f32 %v7840_v32, %v7698_v1  ;;  %v7844_v58 = vld [vmem:[#allocation133_spill] sm:$0xff]  ;;  %v7845_v49 = vld [vmem:[#allocation132_spill] sm:$0xff] }
 0x1c8   : > { %7838 = vst [vmem:[#allocation79_spill] sm:$0xff] %v5692_v59  ;;  %v5696_v21 = vpop.permute.xlu0 %1758  ;;  %v1451_v52 = vmul.f32 %v7841_v38, %v4580_v25  ;;  %v1850_v56 = vmax.f32 %v5638_v24, %v5682_v31  ;;  %v5706_v53 = vadd.f32 %v1333_v7, %v1320_v5  ;;  %v1437_v3 = vadd.f32 %v1434_v11, %v1422_v43  ;;  %v7846_v24 = vld [vmem:[#allocation134_spill] sm:$0xff]  ;;  %v7847_v43 = vld [vmem:[#allocation135_spill] sm:$0xff] }
 0x1c9   : > { %v5702_v6 = vpop.permute.xlu1 %1769  ;;  %v1464_v51 = vmul.f32 %v7843_v10, %v4654_v48  ;;  %v1439_v30 = vadd.f32 %v1436_v12, %v1424_v62  ;;  %v1438_v16 = vadd.f32 %v1435_v17, %v1423_v39  ;;  %v1466_v8 = vmul.f32 %v7844_v58, %v7701_v15  ;;  %v7848_v62 = vld [vmem:[#allocation136_spill] sm:$0xff]  ;;  %v7850_v10 = vld [vmem:[#allocation27_spill] sm:$0xff] }
 0x1ca   : > { %7842 = vst [vmem:[#allocation64_spill] sm:$0xff] %v5706_v53  ;;  %v1465_v19 = vmul.f32 %v7845_v49, %v7700_v47  ;;  %v1852_v61 = vmax.f32 %v5645_v9, %v5692_v59  ;;  %v1452_v57 = vadd.f32 %v1449_v27, %v1437_v3  ;;  %v1479_v7 = vmul.f32 %v7846_v24, %v7707_v20  ;;  %v7849_v27 = vld [vmem:[#allocation137_spill] sm:$0xff]  ;;  %v7853_v59 = vld [vmem:[#allocation84_spill] sm:$0xff] }
 0x1cb   : > { %v1532_v11 = vmul.f32 %v5332_v63, %v7679_v23  ;;  %v1453_v12 = vadd.f32 %v1450_v44, %v1438_v16  ;;  %v1454_v17 = vadd.f32 %v1451_v52, %v1439_v30  ;;  %v1480_v39 = vmul.f32 %v7847_v43, %v7711_v60  ;;  %v7851_v16 = vld [vmem:[#allocation48_spill] sm:$0xff]  ;;  %v7852_v43 = vld [vmem:[#allocation45_spill] sm:$0xff] }
 0x1cc   : > { %v5720_v5 = vpop.permute.xlu0 %1771  ;;  %v1481_v32 = vmul.f32 %v7848_v62, %v7728_v0  ;;  %v1467_v9 = vadd.f32 %v1464_v51, %v1452_v57  ;;  %v1494_v3 = vmul.f32 %v7849_v27, %v7716_v37  ;;  %v1515_v58 = vmul.f32 %v7850_v10, %v7678_v50 }
 0x1cd   : > { %v5726_v38 = vpop.permute.xlu1 %1773  ;;  %v1552_v63 = vmul.f32 %v5370_v40, %v7687_v35  ;;  %v1469_v52 = vadd.f32 %v1466_v8, %v1454_v17  ;;  %v1468_v30 = vadd.f32 %v1465_v19, %v1453_v12  ;;  %v5737_v49 = vmax.f32 %v1850_v56, %v7851_v16  ;;  %v7854_v8 = vld [vmem:[#allocation35_spill] sm:$0xff]  ;;  %v7856_v17 = vld [vmem:[#allocation60_spill] sm:$0xff] }
 0x1ce   : > { %v1482_v24 = vadd.f32 %v1479_v7, %v1467_v9  ;;  %v5740_v51 = vmax.f32 %v1852_v61, %v5557_v41  ;;  %v1535_v57 = vadd.f32 %v1532_v11, %v1515_v58  ;;  %v1572_v62 = vmul.f32 %v7852_v43, %v7694_v2  ;;  %v7855_v61 = vld [vmem:[#allocation139_spill] sm:$0xff]  ;;  %v7861_v43 = vld [vmem:[#allocation26_spill] sm:$0xff] }
 0x1cf   : > { %v5744_v10 = vadd.f32 %v1480_v39, %v1468_v30  ;;  %v1484_v40 = vadd.f32 %v1481_v32, %v1469_v52  ;;  %v1534_v44 = vmul.f32 %v7853_v59, %v7686_v55  ;;  %v1533_v19 = vmul.f32 %v7854_v8, %v7682_v29  ;;  %v7857_v32 = vld [vmem:[#allocation36_spill] sm:$0xff]  ;;  %v7858_v59 = vld [vmem:[#allocation82_spill] sm:$0xff] }
 0x1d0   : > { %v1785_v27 = vpop.permute.xlu0 %1784  ;;  %v5752_v7 = vadd.f32 %v1494_v3, %v1482_v24  ;;  %v5756_v11 = vmul.f32 %v7855_v61, %v7735_v13  ;;  %v1555_v12 = vadd.f32 %v1552_v63, %v1535_v57  ;;  %v1592_v39 = vmul.f32 %v7856_v17, %v4634_v4  ;;  %v7859_v52 = vld [vmem:[#allocation86_spill] sm:$0xff]  ;;  %v7862_v63 = vld [vmem:[#allocation73_spill] sm:$0xff] }
 0x1d1   : > { %v5750_v56 = vpop.permute.xlu1 %1786  ;;  %v1516_v9 = vmul.f32 %v7857_v32, %v7681_v14  ;;  %v1517_v58 = vmul.f32 %v7858_v59, %v7685_v26  ;;  %v1553_v30 = vmul.f32 %v7859_v52, %v7689_v54  ;;  %v7860_v3 = vld [vmem:[#allocation42_spill] sm:$0xff]  ;;  %v1496_v8 = vmul.f32 %v7861_v43, %v7741_v22  ;;  %v7863_v59 = vld [vmem:[#allocation39_spill] sm:$0xff]  ;;  %v7864_v52 = vld [vmem:[#allocation68_spill] sm:$0xff] }
 0x1d2   : > { %v1554_v24 = vmul.f32 %v7860_v3, %v7693_v42  ;;  %v1575_v61 = vadd.f32 %v1572_v62, %v1555_v12  ;;  %v1612_v57 = vmul.f32 %v7862_v63, %v4654_v48  ;;  %v1748_v17 = vmul.f32 %v5625_v33, %v7679_v23  ;;  %v7865_v43 = vld [vmem:[#allocation69_spill] sm:$0xff] }
 0x1d3   : > { %v1537_v41 = vadd.f32 %v1534_v44, %v1517_v58  ;;  %v1536_v16 = vadd.f32 %v1533_v19, %v1516_v9  ;;  %v1574_v31 = vmul.f32 %v7863_v59, %v4562_v18  ;;  %v1573_v53 = vmul.f32 %v7864_v52, %v7695_v28  ;;  %v7866_v19 = vld [vmem:[#allocation49_spill] sm:$0xff]  ;;  %v7867_v58 = vld [vmem:[#allocation52_spill] sm:$0xff] }
 0x1d4   : > { %v1789_v32 = vpop.permute.xlu0 %1788  ;;  %v1595_v34 = vadd.f32 %v1592_v39, %v1575_v61  ;;  %v1632_v62 = vmul.f32 %v7865_v43, %v7707_v20  ;;  %v1736_v12 = vmul.f32 %v5596_v45, %v7678_v50  ;;  %v1763_v23 = vmul.f32 %v5670_v36, %v7687_v35  ;;  %v7868_v39 = vld [vmem:[#allocation51_spill] sm:$0xff] }
 0x1d5   : > { %v1800_v3 = vpop.permute.xlu1 %1799  ;;  %v1556_v33 = vadd.f32 %v1553_v30, %v1536_v16  ;;  %v1557_v44 = vadd.f32 %v1554_v24, %v1537_v41  ;;  %v1593_v9 = vmul.f32 %v7866_v19, %v7698_v1  ;;  %v1594_v63 = vmul.f32 %v7867_v58, %v4580_v25  ;;  %v7869_v36 = vld [vmem:[#allocation23_spill] sm:$0xff]  ;;  %v7870_v24 = vld [vmem:[#allocation76_spill] sm:$0xff] }
 0x1d6   : > { %v1615_v59 = vadd.f32 %v1612_v57, %v1595_v34  ;;  %v1652_v61 = vmul.f32 %v7868_v39, %v7716_v37  ;;  %v1751_v52 = vadd.f32 %v1748_v17, %v1736_v12  ;;  %v1778_v43 = vmul.f32 %v5702_v6, %v7694_v2 }
 0x1d7   : > { %v1856_v35 = vmax.f32 %v5737_v49, %v5752_v7  ;;  %v1577_v45 = vadd.f32 %v1574_v31, %v1557_v44  ;;  %v1576_v41 = vadd.f32 %v1573_v53, %v1556_v33  ;;  %v1613_v16 = vmul.f32 %v7869_v36, %v7700_v47  ;;  %v7871_v53 = vld [vmem:[#allocation59_spill] sm:$0xff] }
 0x1d8   : > { %v1802_v50 = vpop.permute.xlu0 %1801  ;;  %v1614_v34 = vmul.f32 %v7870_v24, %v7701_v15  ;;  %v1635_v57 = vadd.f32 %v1632_v62, %v1615_v59  ;;  %v1766_v19 = vadd.f32 %v1763_v23, %v1751_v52  ;;  %v1793_v17 = vmul.f32 %v1785_v27, %v4634_v4  ;;  %v7872_v23 = vld [vmem:[#allocation83_spill] sm:$0xff]  ;;  %v7873_v27 = vld [vmem:[#allocation34_spill] sm:$0xff] }
 0x1d9   : > { %v1804_v30 = vpop.permute.xlu1 %1803  ;;  %v5799_v12 = vadd.f32 %v1496_v8, %v1484_v40  ;;  %v1596_v2 = vadd.f32 %v1593_v9, %v1576_v41  ;;  %v1597_v6 = vadd.f32 %v1594_v63, %v1577_v45  ;;  %v1750_v49 = vmul.f32 %v5652_v46, %v7686_v55  ;;  %v7874_v9 = vld [vmem:[#allocation29_spill] sm:$0xff] }
 0x1da   : > { %v5803_v31 = vadd.f32 %v1652_v61, %v1635_v57  ;;  %v1634_v33 = vmul.f32 %v7871_v53, %v7728_v0  ;;  %v1781_v44 = vadd.f32 %v1778_v43, %v1766_v19  ;;  %v1808_v58 = vmul.f32 %v1800_v3, %v4654_v48  ;;  %v7875_v48 = vld [vmem:[#allocation77_spill] sm:$0xff] }
 0x1db   : > { %v1616_v62 = vadd.f32 %v1613_v16, %v1596_v2  ;;  %v1738_v4 = vmul.f32 %v7872_v23, %v7685_v26  ;;  %v1749_v40 = vmul.f32 %v7873_v27, %v7682_v29  ;;  %v1765_v8 = vmul.f32 %v5696_v21, %v7693_v42  ;;  %v7876_v26 = vld [vmem:[#allocation44_spill] sm:$0xff]  ;;  %v7877_v42 = vld [vmem:[#allocation55_spill] sm:$0xff] }
 0x1dc   : > { %v1815_v39 = vpop.permute.xlu0 %1814  ;;  %v1617_v46 = vadd.f32 %v1614_v34, %v1597_v6  ;;  %v1654_v63 = vmul.f32 %v7874_v9, %v7741_v22  ;;  %v1796_v59 = vadd.f32 %v1793_v17, %v1781_v44  ;;  %v1737_v3 = vmul.f32 %v7875_v48, %v7681_v14 }
 0x1dd   : > { %v1817_v55 = vpop.permute.xlu1 %1816  ;;  %v1823_v61 = vmul.f32 %v1815_v39, %v7707_v20  ;;  %v1753_v52 = vadd.f32 %v1750_v49, %v1738_v4  ;;  %v1764_v43 = vmul.f32 %v7876_v26, %v7689_v54  ;;  %v1780_v29 = vmul.f32 %v5726_v38, %v4562_v18  ;;  %v7878_v18 = vld [vmem:[#allocation41_spill] sm:$0xff]  ;;  %v7889_v26 = vld [vmem:[#allocation71_spill] sm:$0xff] }
 0x1de   : > { %v1633_v21 = vmul.f32 %v7877_v42, %v7711_v60  ;;  %v1859_v45 = vmax.f32 %v1856_v35, %v5803_v31  ;;  %v1637_v41 = vadd.f32 %v1634_v33, %v1617_v46  ;;  %v1811_v36 = vadd.f32 %v1808_v58, %v1796_v59  ;;  %v7884_v46 = vld [vmem:[#allocation61_spill] sm:$0xff] }
 0x1df   : > { %v1752_v16 = vadd.f32 %v1749_v40, %v1737_v3  ;;  %v1768_v24 = vadd.f32 %v1765_v8, %v1753_v52  ;;  %v1779_v20 = vmul.f32 %v5720_v5, %v7695_v28  ;;  %v1795_v14 = vmul.f32 %v1789_v32, %v4580_v25  ;;  %v7879_v5 = vld [vmem:[#allocation47_spill] sm:$0xff]  ;;  %v7887_v3 = vld [vmem:[#allocation40_spill] sm:$0xff]  ;;  %v7888_v52 = vld [vmem:[#allocation46_spill] sm:$0xff] }
 0x1e0   : > { %v1819_v57 = vpop.permute.xlu0 %1818  ;;  %v5829_v54 = vadd.f32 %v1654_v63, %v1637_v41  ;;  %v1653_v38 = vmul.f32 %v7878_v18, %v7735_v13  ;;  %v1826_v19 = vadd.f32 %v1823_v61, %v1811_v36  ;;  %v1794_v6 = vmul.f32 %v5750_v56, %v7698_v1  ;;  %v7880_v1 = vld [vmem:[#allocation70_spill] sm:$0xff]  ;;  %v7881_v56 = vld [vmem:[#allocation63_spill] sm:$0xff]  ;;  %v7885_v63 = vld [vmem:[#allocation57_spill] sm:$0xff] }
 0x1e1   : > { %v1830_v34 = vpop.permute.xlu1 %1829  ;;  %v1767_v35 = vadd.f32 %v1764_v43, %v1752_v16  ;;  %v1783_v2 = vadd.f32 %v1780_v29, %v1768_v24  ;;  %v1810_v49 = vmul.f32 %v1804_v30, %v7701_v15  ;;  %v5839_v25 = vadd.f32 %v5756_v11, %v5744_v10  ;;  %v7882_v15 = vld [vmem:[#allocation64_spill] sm:$0xff]  ;;  %v7886_v61 = vld [vmem:[#allocation33_spill] sm:$0xff] }
 0x1e2   : > { %v1838_v17 = vmul.f32 %v1830_v34, %v7716_v37  ;;  %v1636_v28 = vadd.f32 %v1633_v21, %v1616_v62  ;;  %v1862_v32 = vmax.f32 %v1859_v45, %v7879_v5  ;;  %v1858_v33 = vmax.f32 %v5740_v51, %v5799_v12  ;;  %v7891_v36 = vld [vmem:[#allocation48_spill] sm:$0xff] }
 0x1e3   : > { %v1782_v37 = vadd.f32 %v1779_v20, %v1767_v35  ;;  %v1798_v44 = vadd.f32 %v1795_v14, %v1783_v2  ;;  %v1825_v58 = vmul.f32 %v1819_v57, %v7728_v0  ;;  %v7883_v30 = vmax.f32 %v7881_v56, %v7882_v15  ;;  %v7893_v2 = vld [vmem:[#allocation37_spill] sm:$0xff] }
 0x1e4   : > { %v5842_v53 = vadd.f32 %v1838_v17, %v1826_v19  ;;  %v5851_v10 = vadd.f32 %v1653_v38, %v1636_v28  ;;  %v1809_v11 = vmul.f32 %v1802_v50, %v7700_v47  ;;  %v1861_v4 = vmax.f32 %v1858_v33, %v5829_v54  ;;  %v1832_v8 = vpop.permute.xlu0 %1831  ;;  %v7892_v17 = vld [vmem:[#allocation31_spill] sm:$0xff] }
 0x1e5   : > { %v1834_v39 = vpop.permute.xlu1 %1833  ;;  %v1854_v23 = vmax.f32 %v7883_v30, %v7880_v1  ;;  %v1797_v27 = vadd.f32 %v1794_v6, %v1782_v37  ;;  %v1813_v51 = vadd.f32 %v1810_v49, %v1798_v44  ;;  %v1824_v0 = vmul.f32 %v1817_v55, %v7711_v60  ;;  %v7890_v55 = vld [vmem:[#allocation56_spill] sm:$0xff]  ;;  %v7894_v28 = vld [vmem:[#allocation75_spill] sm:$0xff] }
 0x1e6   : > { %v1865_v62 = vmax.f32 %v1862_v32, %v5842_v53  ;;  %v1840_v40 = vmul.f32 %v1834_v39, %v7741_v22  ;;  %v5863_v47 = vadd.f32 %v7888_v52, %v7887_v3  ;;  %v1839_v60 = vmul.f32 %v1832_v8, %v7735_v13  ;;  %v7895_v44 = vld [vmem:[#allocation79_spill] sm:$0xff]  ;;  %v7897_v8 = vld [vmem:[#allocation78_spill] sm:$0xff] }
 0x1e7   : > { %v1857_v50 = vmax.f32 %v1854_v23, %v5839_v25  ;;  %v1828_v29 = vadd.f32 %v1825_v58, %v1813_v51  ;;  %v1812_v42 = vadd.f32 %v1809_v11, %v1797_v27  ;;  %v1864_v45 = vmax.f32 %v1861_v4, %v7890_v55  ;;  %v7899_v3 = vld [vmem:[#allocation74_spill] sm:$0xff] }
 0x1e8   : > { %v1868_v9 = vsub.f32 %v7884_v46, %v1865_v62  ;;  %v1877_v59 = vsub.f32 %v7885_v63, %v1865_v62  ;;  %v1886_v48 = vsub.f32 %v7886_v61, %v1865_v62  ;;  %v1895_v43 = vsub.f32 %v7889_v26, %v1865_v62  ;;  %v7898_v46 = vld [vmem:[#allocation85_spill] sm:$0xff] }
 0x1e9   : > { %v1904_v16 = vsub.f32 %v7891_v36, %v1865_v62  ;;  %v5870_v24 = vadd.f32 %v1840_v40, %v1828_v29  ;;  %v1860_v20 = vmax.f32 %v1857_v50, %v5851_v10  ;;  %v1827_v14 = vadd.f32 %v1824_v0, %v1812_v42  ;;  %v5920_v50 = vpop.permute.xlu1 %2013  ;;  %v5928_v42 = vpop.permute.xlu0 %2011 }
 0x1ea   : > { %v1871_v22 = vmul.f32 1.442695, %v1868_v9  ;;  %v1880_v21 = vmul.f32 1.442695, %v1877_v59  ;;  %v1889_v41 = vmul.f32 1.442695, %v1886_v48  ;;  %v1913_v34 = vsub.f32 %v5752_v7, %v1865_v62 }
 0x1eb   : > { %v1898_v57 = vmul.f32 1.442695, %v1895_v43  ;;  %v5875_v18 = vmax.f32 %v1864_v45, %v5870_v24  ;;  %v1922_v13 = vsub.f32 %v5803_v31, %v1865_v62  ;;  %v5878_v38 = vadd.f32 %v1839_v60, %v1827_v14 }
 0x1ec   : > { %3396 = vpow2.f32 %v1871_v22  ;;  %v1907_v19 = vmul.f32 1.442695, %v1904_v16  ;;  %v1863_v49 = vmax.f32 %v1860_v20, %v5863_v47  ;;  %v1916_v7 = vmul.f32 1.442695, %v1913_v34 }
 0x1ed   : > { %3398 = vpow2.f32 %v1880_v21  ;;  %v1870_v35 = vsub.f32 %v7892_v17, %v5875_v18  ;;  %v1879_v6 = vsub.f32 %v7893_v2, %v5875_v18  ;;  %v1888_v32 = vsub.f32 %v7894_v28, %v5875_v18  ;;  %v5968_v28 = vpop.permute.xlu0 %2015 }
 0x1ee   : > { %3400 = vpow2.f32 %v1889_v41  ;;  %v1931_v33 = vsub.f32 %v7879_v5, %v1865_v62  ;;  %v1897_v58 = vsub.f32 %v7895_v44, %v5875_v18  ;;  %v5893_v39 = vmax.f32 %v1863_v49, %v5878_v38  ;;  %v7896_v5 = vld [vmem:[#allocation72_spill] sm:$0xff] }
 0x1ef   : > { %3402 = vpow2.f32 %v1898_v57  ;;  %v1875_v31 = vmul.f32 1.442695, %v1870_v35  ;;  %v1884_v37 = vmul.f32 1.442695, %v1879_v6  ;;  %v1925_v56 = vmul.f32 1.442695, %v1922_v13 }
 0x1f0   : > { %3404 = vpow2.f32 %v1907_v19  ;;  %v1940_v30 = vsub.f32 %v5842_v53, %v1865_v62  ;;  %v1893_v23 = vmul.f32 1.442695, %v1888_v32  ;;  %v1906_v11 = vsub.f32 %v7896_v5, %v5875_v18  ;;  %v5948_v13 = vld [vmem:[%s3677_s16] sm:$0xff]  ;;  %v5959_v35 = vld [vmem:[%s3677_s16 + $0x18] sm:$0xff] }
 0x1f1   : > { %3406 = vpow2.f32 %v1916_v7  ;;  %v1934_v4 = vmul.f32 1.442695, %v1931_v33  ;;  %v1915_v27 = vsub.f32 %v5799_v12, %v5875_v18  ;;  %v1902_v40 = vmul.f32 1.442695, %v1897_v58 }
 0x1f2   : > { %3408 = vpow2.f32 %v1875_v31  ;;  %v1869_v53 = vsub.f32 %v7897_v8, %v5893_v39  ;;  %v1943_v0 = vmul.f32 1.442695, %v1940_v30  ;;  %v1878_v9 = vsub.f32 %v7898_v46, %v5893_v39 }
 0x1f3   : > { %3410 = vpow2.f32 %v1884_v37  ;;  %v1911_v12 = vmul.f32 1.442695, %v1906_v11  ;;  %v1924_v59 = vsub.f32 %v5829_v54, %v5875_v18  ;;  %v1920_v48 = vmul.f32 1.442695, %v1915_v27 }
 0x1f4   : > { %3412 = vpow2.f32 %v1925_v56  ;;  %v1887_v52 = vsub.f32 %v7899_v3, %v5893_v39  ;;  %v5923_v26 = vstv %s5888_s6  ;;  %v1933_v54 = vsub.f32 %v7890_v55, %v5875_v18  ;;  %v5983_v56 = vld [vmem:[%s3677_s16 + $0x8] sm:$0xff]  ;;  %s3297_s6 = sld [smem:[#allocation2 + $0xa01]] }
 0x1f5   : > { %3414 = vpow2.f32 %v1893_v23  ;;  %v1873_v29 = vmul.f32 1.442695, %v1869_v53  ;;  %v1882_v21 = vmul.f32 1.442695, %v1878_v9  ;;  %v1896_v60 = vsub.f32 %v7882_v15, %v5893_v39  ;;  %v5988_v23 = vld [vmem:[%s3677_s16 + $0x20] sm:$0xff] }
 0x1f6   : > { %v5902_v51 = vpop.eup %3396  ;;  %3416 = vpow2.f32 %v1934_v4  ;;  %v5935_v45 = vstv %s5896_s8  ;;  %v1929_v36 = vmul.f32 1.442695, %v1924_v59  ;;  %v1942_v55 = vsub.f32 %v5870_v24, %v5875_v18  ;;  %s3298_s8 = sld [smem:[#allocation2 + $0xa02]] }
 0x1f7   : > { %v5906_v62 = vpop.eup %3398  ;;  %3418 = vpow2.f32 %v1902_v40  ;;  %v1891_v20 = vmul.f32 1.442695, %v1887_v52  ;;  %v1905_v14 = vsub.f32 %v7880_v1, %v5893_v39  ;;  %v1938_v57 = vmul.f32 1.442695, %v1933_v54  ;;  %v5956_v1 = vpop.permute.xlu1 %2032  ;;  %v6018_v54 = vld [vmem:[%s3677_s16 + $0x38] sm:$0xff] }
 0x1f8   : > { %v1949_v63 = vadd.f32 %v5906_v62, %v5902_v51  ;;  %v5916_v61 = vpop.eup %3400  ;;  %3420 = vpow2.f32 %v1943_v0  ;;  %v668_v24 = vmul.f32 %v5948_v13, %v5923_v26  ;;  %v1900_v19 = vmul.f32 1.442695, %v1896_v60  ;;  %v6001_v0 = vld [vmem:[%s3677_s16 + $0x30] sm:$0xff]  ;;  %v6015_v52 = vpop.permute.xlu0 %2034 }
 0x1f9   : > { %v5930_v22 = vpop.eup %3402  ;;  %3422 = vpow2.f32 %v1911_v12  ;;  %v1914_v17 = vsub.f32 %v5839_v25, %v5893_v39  ;;  %v673_v2 = vmul.f32 %v5959_v35, %v5935_v45  ;;  %v1947_v7 = vmul.f32 1.442695, %v1942_v55 }
 0x1fa   : > { %v1952_v43 = vadd.f32 %v5916_v61, %v1949_v63  ;;  %v5940_v16 = vpop.eup %3404  ;;  %3424 = vpow2.f32 %v1920_v48  ;;  %v5971_v25 = vstv %s5914_s14  ;;  %v1909_v31 = vmul.f32 1.442695, %v1905_v14  ;;  %s3299_s14 = sld [smem:[#allocation2 + $0xa03]] }
 0x1fb   : > { %v5944_v34 = vpop.eup %3406  ;;  %3426 = vpow2.f32 %v1873_v29  ;;  %v1923_v37 = vsub.f32 %v5851_v10, %v5893_v39  ;;  %v669_v30 = vmul.f32 %v5983_v56, %v5923_v26  ;;  %v674_v5 = vmul.f32 %v5988_v23, %v5935_v45  ;;  %v6010_v59 = vpop.permute.xlu1 %2036 }
 0x1fc   : > { %v1955_v41 = vadd.f32 %v5930_v22, %v1952_v43  ;;  %v5952_v18 = vpop.eup %3408  ;;  %3428 = vpow2.f32 %v1882_v21  ;;  %v1918_v4 = vmul.f32 1.442695, %v1914_v17  ;;  %v1932_v27 = vsub.f32 %v5863_v47, %v5893_v39 }
 0x1fd   : > { %v5965_v6 = vpop.eup %3410  ;;  %3430 = vpow2.f32 %v1929_v36  ;;  %v676_v53 = vadd.f32 %v673_v2, %v668_v24  ;;  %v681_v46 = vmul.f32 %v6001_v0, %v5971_v25  ;;  %v1927_v12 = vmul.f32 1.442695, %v1923_v37  ;;  %v6038_v24 = vld [vmem:[%s3677_s16 + $0x48] sm:$0xff]  ;;  %v6043_v2 = vld [vmem:[%s3677_s16 + $0x50] sm:$0xff] }
 0x1fe   : > { %v1958_v15 = vadd.f32 %v5940_v16, %v1955_v41  ;;  %v5973_v32 = vpop.eup %3412  ;;  %v1951_v33 = vadd.f32 %v5965_v6, %v5952_v18  ;;  %3432 = vpow2.f32 %v1891_v20  ;;  %v1941_v47 = vsub.f32 %v5878_v38, %v5893_v39  ;;  %7900 = vst [vmem:[#allocation8_spill] sm:$0xff] %v6038_v24  ;;  %7901 = vst [vmem:[#allocation54_spill] sm:$0xff] %v6043_v2 }
 0x1ff   : > { %v5979_v44 = vpop.eup %3414  ;;  %3434 = vpow2.f32 %v1938_v57  ;;  %v677_v43 = vadd.f32 %v674_v5, %v669_v30  ;;  %v682_v29 = vmul.f32 %v6018_v54, %v5971_v25  ;;  %v1936_v38 = vmul.f32 1.442695, %v1932_v27  ;;  %v2049_v30 = vpop.permute.xlu0 %2048 }
 0x200   : > { %v1961_v49 = vadd.f32 %v5944_v34, %v1958_v15  ;;  %v5992_v11 = vpop.eup %3416  ;;  %v1954_v10 = vadd.f32 %v5979_v44, %v1951_v33  ;;  %3436 = vpow2.f32 %v1900_v19  ;;  %v6026_v39 = vstv %s5963_s17  ;;  %s3300_s17 = sld [smem:[#allocation2 + $0xa80]] }
 0x201   : > { %v5997_v40 = vpop.eup %3418  ;;  %3438 = vpow2.f32 %v1947_v7  ;;  %v1945_v20 = vmul.f32 1.442695, %v1941_v47  ;;  %v684_v14 = vadd.f32 %v681_v46, %v676_v53  ;;  %v689_v19 = vmul.f32 %v6038_v24, %v6026_v39 }
 0x202   : > { %v1964_v58 = vadd.f32 %v5973_v32, %v1961_v49  ;;  %v6005_v9 = vpop.eup %3420  ;;  %v1957_v63 = vadd.f32 %v5997_v40, %v1954_v10  ;;  %3440 = vpow2.f32 %v1909_v31  ;;  %v685_v17 = vadd.f32 %v682_v29, %v677_v43  ;;  %v6050_v31 = vpop.permute.xlu1 %2050  ;;  %v6072_v43 = vld [vmem:[%s3677_s16 + $0x10] sm:$0x3] }
 0x203   : > { %v6012_v48 = vpop.eup %3422  ;;  %3442 = vpow2.f32 %v1918_v4  ;;  %v690_v49 = vmul.f32 %v6043_v2, %v6026_v39  ;;  %7902 = vst [vmem:[#allocation9_spill] sm:$0xff] %v6072_v43  ;;  %v670_v29 = vmul.f32 %v6072_v43, %v5923_v26 }
 0x204   : > { %v1967_v8 = vadd.f32 %v5992_v11, %v1964_v58  ;;  %v6022_v21 = vpop.eup %3424  ;;  %v1960_v60 = vadd.f32 %v6012_v48, %v1957_v63 }
 0x205   : > { %v6028_v41 = vpop.eup %3426  ;;  %v6063_v53 = vadd.f32 %v690_v49, %v685_v17 }
 0x206   : > { %v1970_v3 = vadd.f32 %v6005_v9, %v1967_v8  ;;  %v6030_v36 = vpop.eup %3428  ;;  %v1963_v55 = vadd.f32 %v6022_v21, %v1960_v60  ;;  %v6061_v8 = vadd.f32 %v689_v19, %v684_v14  ;;  %v6113_v19 = vld [vmem:[%s3677_s16 + $0x40] sm:$0x3] }
 0x207   : > { %v6033_v15 = vpop.eup %3430  ;;  %v1950_v57 = vadd.f32 %v6030_v36, %v6028_v41  ;;  %7907 = vst [vmem:[#allocation13_spill] sm:$0xff] %v6113_v19 }
 0x208   : > { %3444 = vrcp.f32 %v1970_v3  ;;  %v6047_v7 = vpop.eup %3432  ;;  %v1966_v33 = vadd.f32 %v6033_v15, %v1963_v55  ;;  %v2070_v3 = vpop.permute.xlu1 %2069 }
 0x209   : > { %3446 = vpow2.f32 %v1927_v12  ;;  %v6052_v37 = vpop.eup %3434  ;;  %v1953_v58 = vadd.f32 %v6047_v7, %v1950_v57  ;;  %v2053_v55 = vpop.permute.xlu0 %2052  ;;  %v2224_v57 = vrot.slane %v6061_v8, 1 }
 0x20a   : > { %3448 = vpow2.f32 %v1936_v38  ;;  %v6055_v5 = vpop.eup %3436  ;;  %v1969_v10 = vadd.f32 %v6052_v37, %v1966_v33 }
 0x20b   : > { %3450 = vpow2.f32 %v1945_v20  ;;  %v6058_v4 = vpop.eup %3438  ;;  %v1956_v27 = vadd.f32 %v6055_v5, %v1953_v58  ;;  %v6080_v20 = vld [vmem:[%s3677_s16 + $0x28] sm:$0x3] }
 0x20c   : > { %v6065_v46 = vpop.eup %3440  ;;  %v1972_v63 = vadd.f32 %v6058_v4, %v1969_v10  ;;  %7903 = vst [vmem:[#allocation10_spill] sm:$0xff] %v6080_v20  ;;  %v675_v14 = vmul.f32 %v6080_v20, %v5935_v45 }
 0x20d   : > { %v1959_v12 = vadd.f32 %v6065_v46, %v1956_v27  ;;  %v6069_v47 = vpop.eup %3442  ;;  %v7906_v27 = vld [vmem:[#allocation126_spill] sm:$0xff] }
 0x20e   : > { %3452 = vrcp.f32 %v1972_v63 }
 0x20f   : > { %v1962_v38 = vadd.f32 %v6069_v47, %v1959_v12  ;;  %v678_v12 = vadd.f32 %v675_v14, %v670_v29  ;;  %v2074_v14 = vpop.permute.xlu1 %2073 }
 0x212   : > { %v6076_v60 = vpop.eup %3444 }
 0x213   : > { %v6086_v17 = vpop.eup %3446  ;;  %v6090_v26 = vmul.f32 %v6076_v60, %v5902_v51  ;;  %v6094_v49 = vmul.f32 %v6076_v60, %v5906_v62  ;;  %v6098_v33 = vmul.f32 %v6076_v60, %v5916_v61  ;;  %v6109_v51 = vmul.f32 %v6076_v60, %v5930_v22 }
 0x214   : > { %v1965_v45 = vadd.f32 %v6086_v17, %v1962_v38  ;;  %v6101_v58 = vpop.eup %3448  ;;  %v683_v61 = vmul.f32 %v6113_v19, %v5971_v25  ;;  %v7908_v38 = vrot.slane %v6063_v53, 1  ;;  %v6128_v29 = vmul.f32 %v6076_v60, %v5940_v16  ;;  %v6135_v19 = vpop.permute.xlu0 %2071 }
 0x215   : > { %7904 = vst [vmem:[#allocation67_spill] sm:$0xff] %v6094_v49  ;;  %7905 = vst [vmem:[#allocation66_spill] sm:$0xff] %v6098_v33  ;;  %v2020_v10 = vmul.f32 %v5928_v42, %v6090_v26  ;;  %v2026_v63 = vmul.f32 %v7906_v27, %v6094_v49  ;;  %v6122_v20 = vpop.eup %3450  ;;  %v2041_v22 = vmul.f32 %v5956_v1, %v6098_v33 }
 0x216   : > { %v1968_v62 = vadd.f32 %v6101_v58, %v1965_v45  ;;  %v6120_v42 = vsel %vm1500_vm1, %v2224_v57, %v7908_v38  ;;  %v6132_v25 = vmul.f32 %v6076_v60, %v5992_v11  ;;  %v2057_v38 = vmul.f32 %v2049_v30, %v6109_v51 }
 0x217   : > { %v2029_v27 = vadd.f32 %v2026_v63, %v2020_v10  ;;  %v6140_v10 = vmul.f32 %v6076_v60, %v5944_v34  ;;  %v686_v1 = vadd.f32 %v683_v61, %v678_v12  ;;  %v6147_v63 = vld [vmem:[%s3677_s16 + $0x58] sm:$0x3]  ;;  %v6155_v34 = vmul.f32 %v6076_v60, %v5973_v32 }
 0x218   : > { %7909 = vst [vmem:[#allocation58_spill] sm:$0xff] %v6132_v25  ;;  %v1971_v45 = vadd.f32 %v6122_v20, %v1968_v62  ;;  %v6144_v16 = vmul.f32 %v6120_v42, %v6132_v25  ;;  %7912 = vst [vmem:[#allocation53_spill] sm:$0xff] %v6147_v63  ;;  %v691_v11 = vmul.f32 %v6147_v63, %v6026_v39  ;;  %v3453_v62 = vpop.eup %3452  ;;  %v2090_v63 = vpop.permute.xlu0 %2089 }
 0x219   : > { %v2044_v57 = vadd.f32 %v2041_v22, %v2029_v27  ;;  %7910 = vst [vmem:[#allocation11_spill] sm:$0xff] %v6140_v10  ;;  %v7913_v27 = vld [vmem:[#allocation122_spill] sm:$0xff]  ;;  %7914 = vst [vmem:[#allocation15_spill] sm:$0xff] %v6155_v34  ;;  %v6158_v22 = vmul.f32 %v3453_v62, %v5952_v18  ;;  %v6164_v12 = vmul.f32 %v3453_v62, %v5979_v44 }
 0x21a   : > { %7911 = vst [vmem:[#allocation14_spill] sm:$0xff] %v6144_v16  ;;  %3454 = vrcp.f32 %v1971_v45  ;;  %v2063_v30 = vmul.f32 %v6128_v29, %v7913_v27  ;;  %v6161_v45 = vmul.f32 %v3453_v62, %v5965_v6  ;;  %v2078_v39 = vmul.f32 %v2070_v3, %v6140_v10 }
 0x21b   : > { %v2060_v43 = vadd.f32 %v2057_v38, %v2044_v57  ;;  %v6167_v57 = vpop.permute.xlu1 %2091  ;;  %v7915_v38 = vld [vmem:[#allocation127_spill] sm:$0xff]  ;;  %v2022_v32 = vmul.f32 %v5968_v28, %v6158_v22  ;;  %v6174_v18 = vmul.f32 %v3453_v62, %v5997_v40  ;;  %v6176_v6 = vadd.f32 %v691_v11, %v686_v1 }
 0x21c   : > { %v2028_v27 = vmul.f32 %v7915_v38, %v6161_v45  ;;  %v2098_v44 = vmul.f32 %v2090_v63, %v6155_v34  ;;  %v2043_v3 = vmul.f32 %v6010_v59, %v6164_v12  ;;  %v6185_v38 = vrot.slane %v6063_v53, 7 }
 0x21d   : > { %v2066_v61 = vadd.f32 %v2063_v30, %v2060_v43  ;;  %7916 = vst [vmem:[#allocation17_spill] sm:$0xff] %v6174_v18  ;;  %v6182_v30 = vmul.f32 %v3453_v62, %v6012_v48  ;;  %v6188_v40 = vrot.slane %v6061_v8, 7  ;;  %v2059_v1 = vmul.f32 %v2053_v55, %v6174_v18 }
 0x21e   : > { %v2031_v43 = vadd.f32 %v2028_v27, %v2022_v32  ;;  %v6192_v11 = vmul.f32 %v3453_v62, %v6022_v21  ;;  %v6195_v63 = vrot.slane %v6176_v6, 1  ;;  %v6199_v59 = vmul.f32 %v6076_v60, %v6005_v9  ;;  %v7921_v32 = vld [vmem:[#allocation138_spill] sm:$0xff] }
 0x21f   : > { %v2081_v2 = vadd.f32 %v2078_v39, %v2066_v61  ;;  %7917 = vst [vmem:[#allocation18_spill] sm:$0xff] %v6182_v30  ;;  %v2114_v48 = vpop.permute.xlu1 %2113  ;;  %v7920_v61 = vld [vmem:[#allocation81_spill] sm:$0xff]  ;;  %v6206_v55 = vmul.f32 %v3453_v62, %v6033_v15  ;;  %v2150_v21 = vsel %vm871_vm0, %v6188_v40, %v6185_v38  ;;  %v6222_v15 = vmul.f32 %v3453_v62, %v6052_v37 }
 0x220   : > { %v2046_v24 = vadd.f32 %v2043_v3, %v2031_v43  ;;  %7918 = vst [vmem:[#allocation62_spill] sm:$0xff] %v6192_v11  ;;  %7919 = vst [vmem:[#allocation19_spill] sm:$0xff] %v6199_v59  ;;  %v6237_v37 = vmul.f32 %v3453_v62, %v6058_v4 }
 0x221   : > { %v2101_v28 = vadd.f32 %v2098_v44, %v2081_v2  ;;  %v2107_v2 = vmul.f32 %v7920_v61, %v6132_v25  ;;  %v2065_v44 = vmul.f32 %v6182_v30, %v7921_v32  ;;  %v7922_v61 = vrot.slane %v6063_v53, 1 }
 0x222   : > { %v2062_v27 = vadd.f32 %v2059_v1, %v2046_v24  ;;  %v2080_v1 = vmul.f32 %v2074_v14, %v6192_v11  ;;  %v2094_v14 = vpop.permute.xlu0 %2093  ;;  %7924 = vst [vmem:[#allocation16_spill] sm:$0xff] %v6237_v37 }
 0x223   : > { %v2110_v24 = vadd.f32 %v2107_v2, %v2101_v28  ;;  %v2228_v32 = vsel %vm1500_vm1, %v7922_v61, %v6195_v63  ;;  %v2122_v28 = vmul.f32 %v2114_v48, %v6199_v59  ;;  %v2118_v16 = vpop.permute.xlu1 %2117  ;;  %v7926_v59 = vld [vmem:[#allocation32_spill] sm:$0xff] }
 0x224   : > { %v3455_v39 = vpop.eup %3454  ;;  %v2068_v3 = vadd.f32 %v2065_v44, %v2062_v27  ;;  %v2100_v44 = vmul.f32 %v2094_v14, %v6206_v55  ;;  %v2109_v4 = vmul.f32 %v7926_v59, %v6222_v15  ;;  %v7928_v59 = vld [vmem:[#allocation123_spill] sm:$0xff] }
 0x225   : > { %v6212_v43 = vmul.f32 %v3455_v39, %v6028_v41  ;;  %v6215_v9 = vmul.f32 %v3455_v39, %v6030_v36  ;;  %v6218_v60 = vmul.f32 %v3455_v39, %v6047_v7  ;;  %v7923_v36 = vld [vmem:[#allocation130_spill] sm:$0xff]  ;;  %v6233_v7 = vmul.f32 %v3455_v39, %v6055_v5 }
 0x226   : > { %v2083_v2 = vadd.f32 %v2080_v1, %v2068_v3  ;;  %v6240_v27 = vmul.f32 %v3455_v39, %v6065_v46  ;;  %v6246_v5 = vmul.f32 %v3455_v39, %v6101_v58 }
 0x227   : > { %v2021_v41 = vmul.f32 %v5920_v50, %v6212_v43  ;;  %v2027_v25 = vmul.f32 %v7923_v36, %v6215_v9  ;;  %v2042_v50 = vmul.f32 %v6015_v52, %v6218_v60  ;;  %v2125_v36 = vadd.f32 %v2122_v28, %v2110_v24 }
 0x228   : > { %7925 = vst [vmem:[#allocation12_spill] sm:$0xff] %v6246_v5  ;;  %v2103_v48 = vadd.f32 %v2100_v44, %v2083_v2  ;;  %v6251_v62 = vmul.f32 %v2150_v21, %v6215_v9  ;;  %v2058_v3 = vmul.f32 %v6050_v31, %v6233_v7  ;;  %v6260_v52 = vmul.f32 %v2228_v32, %v6246_v5 }
 0x229   : > { %v2030_v61 = vadd.f32 %v2027_v25, %v2021_v41  ;;  %v6256_v25 = vmul.f32 %v3455_v39, %v6069_v47  ;;  %2131 = vrot.lane.b32.xlu0 %v2125_v36, %s3579_s29  ;;  %v2124_v24 = vmul.f32 %v2118_v16, %v6237_v37  ;;  %v2064_v41 = vmul.f32 %v6240_v27, %v7928_v59  ;;  %v7930_v36 = vld [vmem:[#allocation80_spill] sm:$0xff] }
 0x22a   : > { %v2112_v58 = vadd.f32 %v2109_v4, %v2103_v48  ;;  %v6266_v28 = vmul.f32 %v3455_v39, %v6086_v17  ;;  %v6272_v2 = vmul.f32 %v3455_v39, %v6122_v20  ;;  %v2108_v17 = vmul.f32 %v7930_v36, %v6246_v5 }
 0x22b   : > { %v2045_v46 = vadd.f32 %v2042_v50, %v2030_v61  ;;  %7927 = vst [vmem:[#allocation43_spill] sm:$0xff] %v6256_v25  ;;  %v2079_v47 = vmul.f32 %v6135_v19, %v6256_v25  ;;  %v2116_v61 = vpop.permute.xlu0 %2115 }
 0x22c   : > { %7929 = vst [vmem:[#allocation20_spill] sm:$0xff] %v6266_v28  ;;  %v2127_v14 = vadd.f32 %v2124_v24, %v2112_v58  ;;  %v2099_v16 = vmul.f32 %v6167_v57, %v6266_v28  ;;  %v2123_v4 = vmul.f32 %v2116_v61, %v6272_v2 }
 0x22d   : > { %v2061_v1 = vadd.f32 %v2058_v3, %v2045_v46 }
 0x22e   : > { %2135 = vrot.lane.b32.xlu0 %v2127_v14, %s3579_s29 }
 0x22f   : > { %v2067_v31 = vadd.f32 %v2064_v41, %v2061_v1  ;;  %v2166_v41 = vmul.f32 %v6188_v40, %v6094_v49 }
 0x231   : > { %v2082_v44 = vadd.f32 %v2079_v47, %v2067_v31 }
 0x232   : > { %2153 = vrot.lane.b32.xlu0 %v2150_v21, %s3578_s7 }
 0x233   : > { %v2102_v50 = vadd.f32 %v2099_v16, %v2082_v44 }
 0x235   : > { %v2111_v48 = vadd.f32 %v2108_v17, %v2102_v50 }
 0x236   : > { %2172 = vrot.lane.b32.xlu0 %v6188_v40, %s3579_s29 }
 0x237   : > { %v2126_v19 = vadd.f32 %v2123_v4, %v2111_v48  ;;  %v2168_v48 = vmul.f32 %v6185_v38, %v6161_v45 }
 0x239   : > { %2133 = vrot.lane.b32.xlu1 %v2126_v19, %s3579_s29 }
 0x23a   : > { %2176 = vrot.lane.b32.xlu0 %v6185_v38, %s3579_s29 }
 0x23d   : > { %2151 = vrot.lane.b32.xlu1 %v6188_v40, %s3578_s7 }
 0x23e   : > { %2190 = vrot.lane.b32.xlu0 %v6063_v53, %s3578_s7 }
 0x241   : > { %2155 = vrot.lane.b32.xlu1 %v6185_v38, %s3578_s7 }
 0x242   : > { %2209 = vrot.lane.b32.xlu0 %v6061_v8, %s3579_s29 }
 0x245   : > { %2174 = vrot.lane.b32.xlu1 %v2150_v21, %s3579_s29 }
 0x246   : > { %2213 = vrot.lane.b32.xlu0 %v6176_v6, %s3579_s29 }
 0x249   : > { %2188 = vrot.lane.b32.xlu1 %v6061_v8, %s3578_s7 }
 0x24a   : > { %2231 = vrot.lane.b32.xlu0 %v2228_v32, %s3578_s7 }
 0x24d   : > { %2192 = vrot.lane.b32.xlu1 %v6176_v6, %s3578_s7 }
 0x24e   : > { %2253 = vrot.lane.b32.xlu0 %v6120_v42, %s3579_s29 }
 0x251   : > { %2211 = vrot.lane.b32.xlu1 %v6063_v53, %s3579_s29 }
 0x252   : > { %2257 = vrot.lane.b32.xlu0 %v6195_v63, %s3579_s29 }
 0x255   : > { %2229 = vrot.lane.b32.xlu1 %v6120_v42, %s3578_s7 }
 0x259   : > { %2233 = vrot.lane.b32.xlu1 %v6195_v63, %s3578_s7 }
 0x25d   : > { %2255 = vrot.lane.b32.xlu1 %v2228_v32, %s3579_s29 }
 0x29b   : > { %v2132_v20 = vpop.permute.xlu0 %2131 }
 0x29c   : > { %2141 = vst.msk [vmem:[%s6315_s23 - $0x1] sm:$0xfe] %vm2140_vm2, %v2132_v20 }
 0x2a0   : > { %v2136_v57 = vpop.permute.xlu0 %2135 }
 0x2a1   : > { %2145 = vst.msk [vmem:[%s6315_s23 + $0xf] sm:$0x1] %vm2144_vm3, %v2136_v57 }
 0x2a4   : > { %v2154_v42 = vpop.permute.xlu0 %2153 }
 0x2a5   : > { %v2161_v24 = vmul.f32 %v2154_v42, %v6212_v43 }
 0x2a7   : > { %v2170_v31 = vadd.f32 %v6251_v62, %v2161_v24  ;;  %v2204_v62 = vmul.f32 %v6240_v27, %v6063_v53 }
 0x2a8   : > { %v2173_v39 = vpop.permute.xlu0 %2172 }
 0x2a9   : > { %v2181_v47 = vmul.f32 %v2173_v39, %v6098_v33 }
 0x2ab   : > { %v2134_v21 = vpop.permute.xlu1 %2133 }
 0x2ac   : > { %2143 = vst.msk [vmem:[%s6315_s23 + $0x7] sm:$0xff] %vm2142_vm4, %v2134_v21  ;;  %v2177_v32 = vpop.permute.xlu0 %2176  ;;  %v2203_v21 = vmul.f32 %v6128_v29, %v6061_v8 }
 0x2ad   : > { %v2183_v19 = vmul.f32 %v2177_v32, %v6164_v12  ;;  %v2205_v32 = vmul.f32 %v6182_v30, %v6176_v6 }
 0x2af   : > { %v2152_v46 = vpop.permute.xlu1 %2151 }
 0x2b0   : > { %v2191_v3 = vpop.permute.xlu0 %2190  ;;  %v2160_v1 = vmul.f32 %v2152_v46, %v6090_v26 }
 0x2b1   : > { %v2198_v16 = vmul.f32 %v2191_v3, %v6233_v7 }
 0x2b2   : > { %v2169_v61 = vadd.f32 %v2166_v41, %v2160_v1  ;;  %v696_v41 = vstv %s3288_s24  ;;  %s3302_s24 = sld [smem:[#allocation2 + $0xa82]] }
 0x2b3   : > { %v2156_v58 = vpop.permute.xlu1 %2155 }
 0x2b4   : > { %v2210_v59 = vpop.permute.xlu0 %2209  ;;  %v2162_v50 = vmul.f32 %v2156_v58, %v6158_v22  ;;  %v2184_v4 = vadd.f32 %v2181_v47, %v2169_v61 }
 0x2b5   : > { %v2218_v47 = vmul.f32 %v2210_v59, %v6140_v10 }
 0x2b6   : > { %v2171_v42 = vadd.f32 %v2168_v48, %v2162_v50  ;;  %v697_v50 = vmul.f32 %v5948_v13, %v696_v41  ;;  %v698_v48 = vmul.f32 %v5983_v56, %v696_v41 }
 0x2b7   : > { %v2175_v14 = vpop.permute.xlu1 %2174 }
 0x2b8   : > { %v2182_v44 = vmul.f32 %v2175_v14, %v6218_v60  ;;  %v2214_v17 = vpop.permute.xlu0 %2213  ;;  %v2186_v38 = vadd.f32 %v2183_v19, %v2171_v42  ;;  %v701_v14 = vstv %s3289_s25  ;;  %s3304_s25 = sld [smem:[#allocation2 + $0xb00]] }
 0x2b9   : > { %v703_v6 = vmul.f32 %v5988_v23, %v701_v14  ;;  %v2220_v59 = vmul.f32 %v2214_v17, %v6192_v11 }
 0x2ba   : > { %v2185_v36 = vadd.f32 %v2182_v44, %v2170_v31 }
 0x2bb   : > { %v2189_v40 = vpop.permute.xlu1 %2188 }
 0x2bc   : > { %v2197_v20 = vmul.f32 %v2189_v40, %v6109_v51  ;;  %v2201_v57 = vadd.f32 %v2198_v16, %v2185_v36  ;;  %v2232_v58 = vpop.permute.xlu0 %2231  ;;  %v702_v36 = vmul.f32 %v5959_v35, %v701_v14 }
 0x2bd   : > { %v2239_v16 = vmul.f32 %v2232_v58, %v6266_v28 }
 0x2be   : > { %v2200_v39 = vadd.f32 %v2197_v20, %v2184_v4  ;;  %v2207_v46 = vadd.f32 %v2204_v62, %v2201_v57  ;;  %v709_v62 = vstv %s3290_s26  ;;  %v705_v42 = vadd.f32 %v702_v36, %v697_v50  ;;  %v7933_v50 = vld [vmem:[#allocation8_spill] sm:$0xff]  ;;  %s3305_s26 = sld [smem:[#allocation2 + $0xb01]] }
 0x2bf   : > { %v2193_v3 = vpop.permute.xlu1 %2192 }
 0x2c0   : > { %v2199_v24 = vmul.f32 %v2193_v3, %v6174_v18  ;;  %v2206_v1 = vadd.f32 %v2203_v21, %v2200_v39  ;;  %v2254_v61 = vpop.permute.xlu0 %2253  ;;  %v710_v39 = vmul.f32 %v6001_v0, %v709_v62  ;;  %v706_v21 = vadd.f32 %v703_v6, %v698_v48  ;;  %v7934_v48 = vld [vmem:[#allocation54_spill] sm:$0xff] }
 0x2c1   : > { %v711_v3 = vmul.f32 %v6018_v54, %v709_v62 }
 0x2c2   : > { %v2202_v53 = vadd.f32 %v2199_v24, %v2186_v38  ;;  %v2221_v19 = vadd.f32 %v2218_v47, %v2206_v1  ;;  %v7931_v38 = vld [vmem:[#allocation19_spill] sm:$0xff]  ;;  %v7932_v47 = vld [vmem:[#allocation14_spill] sm:$0xff] }
 0x2c3   : > { %v2212_v31 = vpop.permute.xlu1 %2211  ;;  %v2262_v24 = vmul.f32 %v2254_v61, %v7931_v38  ;;  %v2249_v61 = vmul.f32 %v6195_v63, %v6222_v15 }
 0x2c4   : > { %v2219_v8 = vmul.f32 %v2212_v31, %v6256_v25  ;;  %v2208_v44 = vadd.f32 %v2205_v32, %v2202_v53  ;;  %v2258_v31 = vpop.permute.xlu0 %2257 }
 0x2c6   : > { %v2222_v40 = vadd.f32 %v2219_v8, %v2207_v46  ;;  %v717_v46 = vstv %s3291_s27  ;;  %v2223_v1 = vadd.f32 %v2220_v59, %v2208_v44  ;;  %s3303_s27 = sld [smem:[#allocation2 + $0xa83]] }
 0x2c7   : > { %v2230_v4 = vpop.permute.xlu1 %2229  ;;  %v718_v36 = vmul.f32 %v7933_v50, %v717_v46  ;;  %v719_v6 = vmul.f32 %v7934_v48, %v717_v46 }
 0x2c8   : > { %v2238_v20 = vmul.f32 %v2230_v4, %v6155_v34  ;;  %v2242_v57 = vadd.f32 %v2239_v16, %v2222_v40  ;;  %v713_v16 = vadd.f32 %v710_v39, %v705_v42  ;;  %v714_v40 = vadd.f32 %v711_v3, %v706_v21 }
 0x2ca   : > { %v2241_v58 = vadd.f32 %v2238_v20, %v2221_v19  ;;  %v2251_v53 = vadd.f32 %v6260_v52, %v2242_v57  ;;  %v2264_v52 = vmul.f32 %v2258_v31, %v6237_v37  ;;  %v6365_v57 = vadd.f32 %v718_v36, %v713_v16  ;;  %v7936_v31 = vld [vmem:[#allocation10_spill] sm:$0xff]  ;;  %v7938_v16 = vld [vmem:[#allocation53_spill] sm:$0xff] }
 0x2cb   : > { %v2234_v32 = vpop.permute.xlu1 %2233  ;;  %v6367_v42 = vadd.f32 %v719_v6, %v714_v40  ;;  %v720_v36 = vmul.f32 %v7938_v16, %v717_v46 }
 0x2cc   : > { %v2240_v17 = vmul.f32 %v2234_v32, %v6206_v55  ;;  %v2250_v8 = vadd.f32 %v7932_v47, %v2241_v58  ;;  %v2286_v63 = vrot.slane %v6365_v57, 7 }
 0x2cd   : > { %v2287_v3 = vrot.slane %v6367_v42, 7 }
 0x2ce   : > { %v2243_v4 = vadd.f32 %v2240_v17, %v2223_v1  ;;  %v2265_v19 = vadd.f32 %v2262_v24, %v2250_v8  ;;  %v7935_v24 = vld [vmem:[#allocation9_spill] sm:$0xff]  ;;  %v704_v1 = vmul.f32 %v7936_v31, %v701_v14  ;;  %v2362_v14 = vrot.slane %v6365_v57, 1 }
 0x2cf   : > { %v2256_v20 = vpop.permute.xlu1 %2255  ;;  %v2288_v58 = vsel %vm871_vm0, %v2286_v63, %v2287_v3  ;;  %v699_v32 = vmul.f32 %v7935_v24, %v696_v41  ;;  %v7937_v17 = vld [vmem:[#allocation13_spill] sm:$0xff] }
 0x2d0   : > { %v2263_v44 = vmul.f32 %v2256_v20, %v6272_v2  ;;  %v2252_v59 = vadd.f32 %v2249_v61, %v2243_v4  ;;  %2271 = vrot.lane.b32.xlu1 %v2265_v19, %s3579_s29  ;;  %v712_v47 = vmul.f32 %v7937_v17, %v709_v62  ;;  %v2363_v62 = vrot.slane %v6367_v42, 1 }
 0x2d2   : > { %v2266_v39 = vadd.f32 %v2263_v44, %v2251_v53  ;;  %v2267_v21 = vadd.f32 %v2264_v52, %v2252_v59  ;;  %v707_v53 = vadd.f32 %v704_v1, %v699_v32  ;;  %v6404_v40 = vsel %vm1500_vm1, %v2362_v14, %v2363_v62 }
 0x2d3   : > { %v2304_v32 = vmul.f32 %v2286_v63, %v6094_v49 }
 0x2d4   : > { %2273 = vrot.lane.b32.xlu0 %v2266_v39, %s3579_s29  ;;  %2275 = vrot.lane.b32.xlu1 %v2267_v21, %s3579_s29  ;;  %v715_v8 = vadd.f32 %v712_v47, %v707_v53 }
 0x2d6   : > { %v6388_v41 = vadd.f32 %v720_v36, %v715_v8  ;;  %v2305_v8 = vmul.f32 %v2288_v58, %v6215_v9 }
 0x2d8   : > { %2289 = vrot.lane.b32.xlu0 %v2286_v63, %s3578_s7  ;;  %2291 = vrot.lane.b32.xlu1 %v2288_v58, %s3578_s7  ;;  %v6397_v46 = vrot.slane %v6388_v41, 1 }
 0x2da   : > { %v6408_v6 = vsel %vm1500_vm1, %v2363_v62, %v6397_v46 }
 0x2dc   : > { %2293 = vrot.lane.b32.xlu0 %v2287_v3, %s3578_s7  ;;  %2310 = vrot.lane.b32.xlu1 %v2286_v63, %s3579_s29 }
 0x2e0   : > { %2312 = vrot.lane.b32.xlu0 %v2288_v58, %s3579_s29  ;;  %2314 = vrot.lane.b32.xlu1 %v2287_v3, %s3579_s29  ;;  %v2341_v58 = vmul.f32 %v6128_v29, %v6365_v57 }
 0x2e4   : > { %2326 = vrot.lane.b32.xlu0 %v6365_v57, %s3578_s7  ;;  %2328 = vrot.lane.b32.xlu1 %v6367_v42, %s3578_s7 }
 0x2e8   : > { %2330 = vrot.lane.b32.xlu0 %v6388_v41, %s3578_s7  ;;  %2347 = vrot.lane.b32.xlu1 %v6365_v57, %s3579_s29 }
 0x2ec   : > { %2349 = vrot.lane.b32.xlu0 %v6367_v42, %s3579_s29  ;;  %2351 = vrot.lane.b32.xlu1 %v6388_v41, %s3579_s29 }
 0x2f0   : > { %2367 = vrot.lane.b32.xlu0 %v6404_v40, %s3578_s7  ;;  %2369 = vrot.lane.b32.xlu1 %v6408_v6, %s3578_s7 }
 0x2f4   : > { %2371 = vrot.lane.b32.xlu0 %v6397_v46, %s3578_s7  ;;  %2391 = vrot.lane.b32.xlu1 %v6404_v40, %s3579_s29 }
 0x2f8   : > { %2393 = vrot.lane.b32.xlu0 %v6408_v6, %s3579_s29  ;;  %2395 = vrot.lane.b32.xlu1 %v6397_v46, %s3579_s29 }
 0x342   : > { %v2272_v4 = vpop.permute.xlu1 %2271 }
 0x343   : > { %3312 = vst.msk [vmem:[%s6315_s23 + $0xf] sm:$0xfe] %vm2140_vm2, %v2272_v4 }
 0x346   : > { %v2276_v19 = vpop.permute.xlu1 %2275  ;;  %v2274_v61 = vpop.permute.xlu0 %2273 }
 0x347   : > { %3314 = vst.msk [vmem:[%s6315_s23 + $0x1f] sm:$0x1] %vm2144_vm3, %v2276_v19 }
 0x348   : > { %3313 = vst.msk [vmem:[%s6315_s23 + $0x17] sm:$0xff] %vm2142_vm4, %v2274_v61  ;;  %v2306_v61 = vmul.f32 %v2287_v3, %v6161_v45 }
 0x34a   : > { %v2292_v52 = vpop.permute.xlu1 %2291  ;;  %v2290_v20 = vpop.permute.xlu0 %2289 }
 0x34b   : > { %v2298_v39 = vmul.f32 %v2290_v20, %v6090_v26  ;;  %v2299_v21 = vmul.f32 %v2292_v52, %v6212_v43 }
 0x34d   : > { %v2307_v14 = vadd.f32 %v2304_v32, %v2298_v39  ;;  %v2308_v62 = vadd.f32 %v2305_v8, %v2299_v21 }
 0x34e   : > { %v2311_v44 = vpop.permute.xlu1 %2310  ;;  %v2294_v59 = vpop.permute.xlu0 %2293 }
 0x34f   : > { %v2319_v1 = vmul.f32 %v2311_v44, %v6098_v33  ;;  %v2300_v4 = vmul.f32 %v2294_v59, %v6158_v22  ;;  %v2342_v59 = vmul.f32 %v6240_v27, %v6367_v42 }
 0x351   : > { %v2322_v19 = vadd.f32 %v2319_v1, %v2307_v14  ;;  %v6443_v1 = vstv %s3292_s28  ;;  %s3306_s28 = sld [smem:[#allocation2 + $0xb02]] }
 0x352   : > { %v2315_v53 = vpop.permute.xlu1 %2314  ;;  %v2313_v47 = vpop.permute.xlu0 %2312  ;;  %v726_v42 = vmul.f32 %v5948_v13, %v6443_v1 }
 0x353   : > { %v2320_v36 = vmul.f32 %v2313_v47, %v6218_v60  ;;  %v2321_v63 = vmul.f32 %v2315_v53, %v6164_v12  ;;  %v2309_v47 = vadd.f32 %v2306_v61, %v2300_v4  ;;  %v6445_v53 = vstv %s3293_s30  ;;  %s3308_s30 = sld [smem:[#allocation2 + $0xb80]] }
 0x355   : > { %v2323_v44 = vadd.f32 %v2320_v36, %v2308_v62  ;;  %v2324_v8 = vadd.f32 %v2321_v63, %v2309_v47  ;;  %v727_v63 = vmul.f32 %v5983_v56, %v6443_v1 }
 0x356   : > { %v2329_v52 = vpop.permute.xlu1 %2328  ;;  %v2327_v20 = vpop.permute.xlu0 %2326 }
 0x357   : > { %v2336_v33 = vmul.f32 %v2329_v52, %v6233_v7  ;;  %v2335_v49 = vmul.f32 %v2327_v20, %v6109_v51 }
 0x359   : > { %v2339_v39 = vadd.f32 %v2336_v33, %v2323_v44  ;;  %v2338_v21 = vadd.f32 %v2335_v49, %v2322_v19  ;;  %v2343_v49 = vmul.f32 %v6182_v30, %v6388_v41  ;;  %v731_v19 = vmul.f32 %v5959_v35, %v6445_v53 }
 0x35a   : > { %v2348_v3 = vpop.permute.xlu1 %2347  ;;  %v2331_v32 = vpop.permute.xlu0 %2330  ;;  %v732_v44 = vmul.f32 %v5988_v23, %v6445_v53  ;;  %v738_v41 = vstv %s3294_s3  ;;  %s3309_s3 = sld [smem:[#allocation2 + $0xb81]] }
 0x35b   : > { %v2344_v36 = vadd.f32 %v2341_v58, %v2338_v21  ;;  %v2337_v14 = vmul.f32 %v2331_v32, %v6174_v18  ;;  %v2345_v62 = vadd.f32 %v2342_v59, %v2339_v39  ;;  %v2356_v61 = vmul.f32 %v2348_v3, %v6140_v10 }
 0x35c   : > { %v734_v13 = vadd.f32 %v731_v19, %v726_v42  ;;  %v735_v32 = vadd.f32 %v732_v44, %v727_v63  ;;  %v740_v56 = vmul.f32 %v6018_v54, %v738_v41 }
 0x35d   : > { %v2340_v57 = vadd.f32 %v2337_v14, %v2324_v8  ;;  %v2359_v21 = vadd.f32 %v2356_v61, %v2344_v36  ;;  %v739_v8 = vmul.f32 %v6001_v0, %v738_v41  ;;  %v746_v14 = vstv %s3295_s4  ;;  %s6666_s4 = sld [smem:[#allocation2 + $0xb03]] }
 0x35e   : > { %v2352_v33 = vpop.permute.xlu1 %2351  ;;  %v2350_v4 = vpop.permute.xlu0 %2349  ;;  %v743_v54 = vadd.f32 %v740_v56, %v735_v32  ;;  %v747_v44 = vmul.f32 %v7933_v50, %v746_v14 }
 0x35f   : > { %v2346_v52 = vadd.f32 %v2343_v49, %v2340_v57  ;;  %v2357_v20 = vmul.f32 %v2350_v4, %v6256_v25  ;;  %v2358_v58 = vmul.f32 %v2352_v33, %v6192_v11  ;;  %v7939_v57 = vld [vmem:[#allocation58_spill] sm:$0xff]  ;;  %v2386_v49 = vmul.f32 %v6408_v6, %v6246_v5 }
 0x360   : > { %v2385_v23 = vmul.f32 %v6404_v40, %v7939_v57  ;;  %v742_v63 = vadd.f32 %v739_v8, %v734_v13  ;;  %v748_v40 = vmul.f32 %v7934_v48, %v746_v14  ;;  %v2387_v6 = vmul.f32 %v6397_v46, %v6222_v15 }
 0x361   : > { %v2360_v59 = vadd.f32 %v2357_v20, %v2345_v62  ;;  %v2361_v36 = vadd.f32 %v2358_v58, %v2346_v52 }
 0x362   : > { %v2370_v47 = vpop.permute.xlu1 %2369  ;;  %v2368_v39 = vpop.permute.xlu0 %2367  ;;  %v6478_v13 = vadd.f32 %v747_v44, %v742_v63 }
 0x363   : > { %v2377_v35 = vmul.f32 %v2370_v47, %v6266_v28  ;;  %v2376_v3 = vmul.f32 %v2368_v39, %v6155_v34 }
 0x364   : > { %v2424_v46 = vrot.slane %v6478_v13, 7 }
 0x365   : > { %v2380_v33 = vadd.f32 %v2377_v35, %v2360_v59  ;;  %v2379_v4 = vadd.f32 %v2376_v3, %v2359_v21  ;;  %v6480_v3 = vadd.f32 %v748_v40, %v743_v54 }
 0x366   : > { %v2392_v62 = vpop.permute.xlu1 %2391  ;;  %v2372_v42 = vpop.permute.xlu0 %2371 }
 0x367   : > { %v2388_v19 = vadd.f32 %v2385_v23, %v2379_v4  ;;  %v2400_v61 = vmul.f32 %v2392_v62, %v7931_v38  ;;  %v2378_v20 = vmul.f32 %v2372_v42, %v6206_v55  ;;  %v2389_v0 = vadd.f32 %v2386_v49, %v2380_v33 }
 0x368   : > { %v2425_v56 = vrot.slane %v6480_v3, 7  ;;  %v728_v49 = vmul.f32 %v7935_v24, %v6443_v1  ;;  %v733_v33 = vmul.f32 %v7936_v31, %v6445_v53  ;;  %v749_v42 = vmul.f32 %v7938_v16, %v746_v14 }
 0x369   : > { %v2403_v47 = vadd.f32 %v2400_v61, %v2388_v19  ;;  %v2381_v39 = vadd.f32 %v2378_v20, %v2361_v36  ;;  %v741_v36 = vmul.f32 %v7937_v17, %v738_v41  ;;  %v2501_v53 = vrot.slane %v6480_v3, 1 }
 0x36a   : > { %v2396_v52 = vpop.permute.xlu1 %2395  ;;  %v2394_v58 = vpop.permute.xlu0 %2393  ;;  %v2426_v23 = vsel %vm871_vm0, %v2424_v46, %v2425_v56  ;;  %v736_v4 = vadd.f32 %v733_v33, %v728_v49  ;;  %v2500_v14 = vrot.slane %v6478_v13, 1 }
 0x36b   : > { %v2390_v21 = vadd.f32 %v2387_v6, %v2381_v39  ;;  %v2402_v59 = vmul.f32 %v2396_v52, %v6237_v37  ;;  %v2401_v35 = vmul.f32 %v2394_v58, %v6272_v2  ;;  %2409 = vrot.lane.b32.xlu0 %v2403_v47, %s3579_s29  ;;  %v7940_v52 = vld [vmem:[#allocation67_spill] sm:$0xff] }
 0x36c   : > { %v744_v62 = vadd.f32 %v741_v36, %v736_v4  ;;  %v6518_v61 = vsel %vm1500_vm1, %v2500_v14, %v2501_v53  ;;  %v2442_v58 = vmul.f32 %v2424_v46, %v7940_v52 }
 0x36d   : > { %v2405_v32 = vadd.f32 %v2402_v59, %v2390_v21  ;;  %v2404_v8 = vadd.f32 %v2401_v35, %v2389_v0  ;;  %v7941_v21 = vld [vmem:[#allocation66_spill] sm:$0xff] }
 0x36e   : > { %v752_v1 = vadd.f32 %v749_v42, %v744_v62  ;;  %v2444_v62 = vmul.f32 %v2425_v56, %v6161_v45 }
 0x36f   : > { %2413 = vrot.lane.b32.xlu0 %v2405_v32, %s3579_s29  ;;  %2411 = vrot.lane.b32.xlu1 %v2404_v8, %s3579_s29  ;;  %v2443_v8 = vmul.f32 %v2426_v23, %v6215_v9 }
 0x370   : > { %v6507_v41 = vrot.slane %v752_v1, 1 }
 0x372   : > { %v6515_v19 = vsel %vm1500_vm1, %v2501_v53, %v6507_v41 }
 0x373   : > { %2429 = vrot.lane.b32.xlu0 %v2426_v23, %s3578_s7  ;;  %2427 = vrot.lane.b32.xlu1 %v2424_v46, %s3578_s7 }
 0x377   : > { %2448 = vrot.lane.b32.xlu0 %v2424_v46, %s3579_s29  ;;  %2431 = vrot.lane.b32.xlu1 %v2425_v56, %s3578_s7 }
 0x37b   : > { %2452 = vrot.lane.b32.xlu0 %v2425_v56, %s3579_s29  ;;  %2450 = vrot.lane.b32.xlu1 %v2426_v23, %s3579_s29 }
 0x37f   : > { %2466 = vrot.lane.b32.xlu0 %v6480_v3, %s3578_s7  ;;  %2464 = vrot.lane.b32.xlu1 %v6478_v13, %s3578_s7 }
 0x383   : > { %2485 = vrot.lane.b32.xlu0 %v6478_v13, %s3579_s29  ;;  %2468 = vrot.lane.b32.xlu1 %v752_v1, %s3578_s7 }
 0x387   : > { %2489 = vrot.lane.b32.xlu0 %v752_v1, %s3579_s29  ;;  %2487 = vrot.lane.b32.xlu1 %v6480_v3, %s3579_s29 }
 0x38b   : > { %2507 = vrot.lane.b32.xlu0 %v6515_v19, %s3578_s7  ;;  %2505 = vrot.lane.b32.xlu1 %v6518_v61, %s3578_s7 }
 0x38f   : > { %2529 = vrot.lane.b32.xlu0 %v6518_v61, %s3579_s29  ;;  %2509 = vrot.lane.b32.xlu1 %v6507_v41, %s3578_s7 }
 0x393   : > { %2533 = vrot.lane.b32.xlu0 %v6507_v41, %s3579_s29  ;;  %2531 = vrot.lane.b32.xlu1 %v6515_v19, %s3579_s29 }
 0x3dd   : > { %v2410_v20 = vpop.permute.xlu0 %2409 }
 0x3de   : > { %3315 = vst.msk [vmem:[%s6315_s23 + $0x1f] sm:$0xfe] %vm2140_vm2, %v2410_v20 }
 0x3e1   : > { %v2412_v0 = vpop.permute.xlu1 %2411  ;;  %v2414_v63 = vpop.permute.xlu0 %2413 }
 0x3e2   : > { %3316 = vst.msk [vmem:[%s6315_s23 + $0x27] sm:$0xff] %vm2142_vm4, %v2412_v0 }
 0x3e3   : > { %3317 = vst.msk [vmem:[%s6315_s23 + $0x2f] sm:$0x1] %vm2144_vm3, %v2414_v63  ;;  %v2479_v63 = vmul.f32 %v6128_v29, %v6478_v13 }
 0x3e5   : > { %v2428_v54 = vpop.permute.xlu1 %2427  ;;  %v2430_v44 = vpop.permute.xlu0 %2429 }
 0x3e6   : > { %v2436_v39 = vmul.f32 %v2428_v54, %v6090_v26  ;;  %v2437_v6 = vmul.f32 %v2430_v44, %v6212_v43 }
 0x3e8   : > { %v2445_v33 = vadd.f32 %v2442_v58, %v2436_v39  ;;  %v2446_v4 = vadd.f32 %v2443_v8, %v2437_v6  ;;  %v6555_v8 = vstv %s3296_s5  ;;  %s6679_s5 = sld [smem:[#allocation2 + $0xb82]] }
 0x3e9   : > { %v2432_v40 = vpop.permute.xlu1 %2431  ;;  %v2449_v47 = vpop.permute.xlu0 %2448 }
 0x3ea   : > { %v2457_v59 = vmul.f32 %v2449_v47, %v7941_v21  ;;  %v2438_v36 = vmul.f32 %v2432_v40, %v6158_v22  ;;  %v2480_v47 = vmul.f32 %v6240_v27, %v6480_v3 }
 0x3ec   : > { %v2460_v42 = vadd.f32 %v2457_v59, %v2445_v33  ;;  %v2447_v54 = vadd.f32 %v2444_v62, %v2438_v36 }
 0x3ed   : > { %v2451_v35 = vpop.permute.xlu1 %2450  ;;  %v2453_v32 = vpop.permute.xlu0 %2452 }
 0x3ee   : > { %v2458_v49 = vmul.f32 %v2451_v35, %v6218_v60  ;;  %v2459_v20 = vmul.f32 %v2453_v32, %v6164_v12  ;;  %v2481_v32 = vmul.f32 %v6182_v30, %v752_v1 }
 0x3f0   : > { %v2461_v46 = vadd.f32 %v2458_v49, %v2446_v4  ;;  %v2462_v6 = vadd.f32 %v2459_v20, %v2447_v54  ;;  %v6557_v49 = vstv %s3297_s6  ;;  %s3311_s6 = sld [smem:[#allocation2 + $0xb83]] }
 0x3f1   : > { %v2465_v53 = vpop.permute.xlu1 %2464  ;;  %v2467_v14 = vpop.permute.xlu0 %2466 }
 0x3f2   : > { %v2473_v0 = vmul.f32 %v2465_v53, %v6109_v51  ;;  %v2474_v23 = vmul.f32 %v2467_v14, %v6233_v7  ;;  %v6567_v14 = vld [vmem:[%s3677_s16 + $0x18] sm:$0xff] }
 0x3f3   : > { %v760_v1 = vmul.f32 %v6567_v14, %v6557_v49 }
 0x3f4   : > { %v2476_v44 = vadd.f32 %v2473_v0, %v2460_v42  ;;  %v2477_v40 = vadd.f32 %v2474_v23, %v2461_v46  ;;  %v6562_v42 = vld [vmem:[%s3677_s16] sm:$0xff]  ;;  %v6572_v46 = vld [vmem:[%s3677_s16 + $0x8] sm:$0xff] }
 0x3f5   : > { %v2469_v56 = vpop.permute.xlu1 %2468  ;;  %v2486_v39 = vpop.permute.xlu0 %2485  ;;  %v755_v53 = vmul.f32 %v6562_v42, %v6555_v8  ;;  %v756_v20 = vmul.f32 %v6572_v46, %v6555_v8  ;;  %v6577_v0 = vld [vmem:[%s3677_s16 + $0x20] sm:$0xff] }
 0x3f6   : > { %v2475_v58 = vmul.f32 %v2469_v56, %v6174_v18  ;;  %v2482_v59 = vadd.f32 %v2479_v63, %v2476_v44  ;;  %v2483_v35 = vadd.f32 %v2480_v47, %v2477_v40  ;;  %v2494_v4 = vmul.f32 %v2486_v39, %v6140_v10  ;;  %v6589_v10 = vld [vmem:[%s3677_s16 + $0x38] sm:$0xff] }
 0x3f7   : > { %v761_v23 = vmul.f32 %v6577_v0, %v6557_v49  ;;  %v767_v63 = vstv %s3298_s8  ;;  %v775_v47 = vstv %s3299_s14 }
 0x3f8   : > { %v2478_v13 = vadd.f32 %v2475_v58, %v2462_v6  ;;  %v2497_v56 = vadd.f32 %v2494_v4, %v2482_v59  ;;  %v769_v30 = vmul.f32 %v6589_v10, %v767_v63  ;;  %v2523_v59 = vmul.f32 %v6518_v61, %v7939_v57 }
 0x3f9   : > { %v2488_v3 = vpop.permute.xlu1 %2487  ;;  %v2490_v33 = vpop.permute.xlu0 %2489  ;;  %v2525_v61 = vmul.f32 %v6507_v41, %v6222_v15 }
 0x3fa   : > { %v2495_v36 = vmul.f32 %v2488_v3, %v6256_v25  ;;  %v2484_v62 = vadd.f32 %v2481_v32, %v2478_v13  ;;  %v2496_v54 = vmul.f32 %v2490_v33, %v6192_v11  ;;  %v763_v13 = vadd.f32 %v760_v1, %v755_v53  ;;  %v6585_v32 = vld [vmem:[%s3677_s16 + $0x30] sm:$0xff] }
 0x3fb   : > { %v768_v3 = vmul.f32 %v6585_v32, %v767_v63  ;;  %v764_v25 = vadd.f32 %v761_v23, %v756_v20  ;;  %v2524_v33 = vmul.f32 %v6515_v19, %v6246_v5  ;;  %v777_v19 = vmul.f32 %v7934_v48, %v775_v47 }
 0x3fc   : > { %v2498_v39 = vadd.f32 %v2495_v36, %v2483_v35  ;;  %v2499_v36 = vadd.f32 %v2496_v54, %v2484_v62 }
 0x3fd   : > { %v2506_v44 = vpop.permute.xlu1 %2505  ;;  %v2508_v40 = vpop.permute.xlu0 %2507  ;;  %v772_v11 = vadd.f32 %v769_v30, %v764_v25 }
 0x3fe   : > { %v2514_v6 = vmul.f32 %v2506_v44, %v6155_v34  ;;  %v2515_v58 = vmul.f32 %v2508_v40, %v6266_v28  ;;  %v771_v34 = vadd.f32 %v768_v3, %v763_v13  ;;  %v776_v28 = vmul.f32 %v7933_v50, %v775_v47 }
 0x3ff   : > { %v6607_v50 = vadd.f32 %v777_v19, %v772_v11  ;;  %v762_v11 = vmul.f32 %v7936_v31, %v6557_v49  ;;  %v778_v31 = vmul.f32 %v7938_v16, %v775_v47  ;;  %v6642_v49 = vstv %s3301_s22  ;;  %s3580_s22 = smov [#allocation5]  }
 0x400   : > { %v2517_v35 = vadd.f32 %v2514_v6, %v2497_v56  ;;  %v2518_v4 = vadd.f32 %v2515_v58, %v2498_v39  ;;  %v6605_v58 = vadd.f32 %v776_v28, %v771_v34  ;;  %v757_v34 = vmul.f32 %v7935_v24, %v6555_v8 }
 0x401   : > { %v2510_v44 = vpop.permute.xlu1 %2509  ;;  %v2530_v53 = vpop.permute.xlu0 %2529  ;;  %v6610_v48 = vrot.slane %v6607_v50, 7  ;;  %v770_v28 = vmul.f32 %v7937_v17, %v767_v63  ;;  %v6640_v8 = vstv %s3300_s17  ;;  %v789_v16 = vmul.f32 %v6567_v14, %v6642_v49 }
 0x402   : > { %v2516_v1 = vmul.f32 %v2510_v44, %v6206_v55  ;;  %v2526_v40 = vadd.f32 %v2523_v59, %v2517_v35  ;;  %v2538_v20 = vmul.f32 %v2530_v53, %v7931_v38  ;;  %v2527_v23 = vadd.f32 %v2524_v33, %v2518_v4 }
 0x403   : > { %v6615_v41 = vrot.slane %v6605_v58, 7  ;;  %v784_v63 = vmul.f32 %v6562_v42, %v6640_v8  ;;  %v6654_v47 = vstv %s3302_s24  ;;  %v785_v13 = vmul.f32 %v6572_v46, %v6640_v8  ;;  %s3511_s24 = sshll.u32 %s3580_s22, 4  ;;  %s3512_s24 = int_to_ptr.vmem [resolvable:$false] %s3511_s24 }
 0x404   : > { %v2519_v5 = vadd.f32 %v2516_v1, %v2499_v36  ;;  %v2541_v18 = vadd.f32 %v2538_v20, %v2526_v40  ;;  %v790_v3 = vmul.f32 %v6577_v0, %v6642_v49  ;;  %v6664_v33 = vstv %s3304_s25  ;;  %s3513_s25 = scalar_lea.vmem %s3512_s24, 4096 }
 0x405   : > { %v2532_v62 = vpop.permute.xlu1 %2531  ;;  %v2534_v54 = vpop.permute.xlu0 %2533  ;;  %v792_v59 = vadd.f32 %v789_v16, %v784_v63  ;;  %v797_v35 = vmul.f32 %v6585_v32, %v6654_v47  ;;  %v6670_v4 = vstv %s3305_s26  ;;  %v2638_v36 = vrot.slane %v6605_v58, 1 }
 0x406   : > { %v2539_v56 = vmul.f32 %v2532_v62, %v6272_v2  ;;  %v2528_v39 = vadd.f32 %v2525_v61, %v2519_v5  ;;  %v2540_v6 = vmul.f32 %v2534_v54, %v6237_v37  ;;  %2547 = vrot.lane.b32.xlu1 %v2541_v18, %s3579_s29  ;;  %v6620_v18 = vsel %vm871_vm0, %v6615_v41, %v6610_v48 }
 0x407   : > { %v765_v5 = vadd.f32 %v762_v11, %v757_v34  ;;  %v2639_v44 = vrot.slane %v6607_v50, 1  ;;  %v6677_v1 = vstv %s3303_s27  ;;  %v793_v40 = vadd.f32 %v790_v3, %v785_v13 }
 0x408   : > { %v2542_v30 = vadd.f32 %v2539_v56, %v2527_v23  ;;  %v2543_v25 = vadd.f32 %v2540_v6, %v2528_v39  ;;  %v798_v20 = vmul.f32 %v6589_v10, %v6654_v47  ;;  %v813_v23 = vmul.f32 %v6562_v42, %v6664_v33  ;;  %v3486_v39 = vld [vmem:[%s3677_s16 + $0x48] sm:$0xff] }
 0x409   : > { %v773_v24 = vadd.f32 %v770_v28, %v765_v5  ;;  %v818_v19 = vmul.f32 %v6567_v14, %v6670_v4  ;;  %v6691_v61 = vstv %s3306_s28  ;;  %v814_v62 = vmul.f32 %v6572_v46, %v6664_v33  ;;  %v3487_v28 = vld [vmem:[%s3677_s16 + $0x50] sm:$0xff] }
 0x40a   : > { %2549 = vrot.lane.b32.xlu0 %v2542_v30, %s3579_s29  ;;  %2551 = vrot.lane.b32.xlu1 %v2543_v25, %s3579_s29  ;;  %v819_v54 = vmul.f32 %v6577_v0, %v6670_v4  ;;  %v800_v56 = vadd.f32 %v797_v35, %v792_v59  ;;  %v805_v6 = vmul.f32 %v3486_v39, %v6677_v1  ;;  %v6706_v34 = vstv %s3308_s30 }
 0x40b   : > { %v6648_v17 = vadd.f32 %v778_v31, %v773_v24  ;;  %v6700_v30 = vsel %vm1500_vm1, %v2638_v36, %v2639_v44  ;;  %v6708_v11 = vstv %s3309_s3  ;;  %v801_v5 = vadd.f32 %v798_v20, %v793_v40 }
 0x40c   : > { %v806_v24 = vmul.f32 %v3487_v28, %v6677_v1  ;;  %v826_v31 = vmul.f32 %v6585_v32, %v6691_v61  ;;  %v821_v63 = vadd.f32 %v818_v19, %v813_v23  ;;  %v6719_v16 = vstv %s6666_s4 }
 0x40d   : > { %v6675_v53 = vrot.slane %v6648_v17, 1  ;;  %v822_v13 = vadd.f32 %v819_v54, %v814_v62  ;;  %v827_v3 = vmul.f32 %v6589_v10, %v6691_v61  ;;  %v6723_v59 = vadd.f32 %v805_v6, %v800_v56 }
 0x40e   : > { %2565 = vrot.lane.b32.xlu0 %v6615_v41, %s3578_s7  ;;  %2567 = vrot.lane.b32.xlu1 %v6620_v18, %s3578_s7  ;;  %v842_v35 = vmul.f32 %v6562_v42, %v6706_v34  ;;  %v847_v36 = vmul.f32 %v6567_v14, %v6708_v11  ;;  %v6736_v40 = vadd.f32 %v806_v24, %v801_v5  ;;  %v6752_v24 = vstv %s3311_s6 }
 0x40f   : > { %v6704_v25 = vsel %vm1500_vm1, %v2639_v44, %v6675_v53  ;;  %v6730_v44 = vstv %s6679_s5  ;;  %v834_v20 = vmul.f32 %v3486_v39, %v6719_v16  ;;  %v835_v23 = vmul.f32 %v3487_v28, %v6719_v16 }
 0x410   : > { %v829_v19 = vadd.f32 %v826_v31, %v821_v63  ;;  %v830_v62 = vadd.f32 %v827_v3, %v822_v13  ;;  %v843_v42 = vmul.f32 %v6572_v46, %v6706_v34  ;;  %v848_v14 = vmul.f32 %v6577_v0, %v6708_v11 }
 0x411   : > { %v6745_v54 = vrot.slane %v6723_v59, 7  ;;  %v850_v56 = vadd.f32 %v847_v36, %v842_v35  ;;  %v855_v6 = vmul.f32 %v6585_v32, %v6730_v44  ;;  %v6750_v5 = vrot.slane %v6736_v40, 7 }
 0x412   : > { %2569 = vrot.lane.b32.xlu0 %v6610_v48, %s3578_s7  ;;  %2586 = vrot.lane.b32.xlu1 %v6615_v41, %s3579_s29  ;;  %v6758_v46 = vadd.f32 %v834_v20, %v829_v19  ;;  %v6760_v0 = vadd.f32 %v835_v23, %v830_v62  ;;  %v851_v31 = vadd.f32 %v848_v14, %v843_v42  ;;  %v3488_v14 = vld [vmem:[%s3677_s16 + $0x10] sm:$0x3] }
 0x413   : > { %v856_v63 = vmul.f32 %v6589_v10, %v6730_v44  ;;  %v858_v32 = vadd.f32 %v855_v6, %v850_v56  ;;  %v863_v13 = vmul.f32 %v3486_v39, %v6752_v24  ;;  %v6768_v3 = vsel %vm871_vm0, %v6745_v54, %v6750_v5  ;;  %v3489_v6 = vld [vmem:[%s3677_s16 + $0x28] sm:$0x3] }
 0x414   : > { %7942 = vst [vmem:[#allocation21_spill] sm:$0xff] %v6760_v0  ;;  %v6771_v35 = vrot.slane %v6760_v0, 7  ;;  %v6778_v36 = vrot.slane %v6758_v46, 7  ;;  %v864_v39 = vmul.f32 %v3487_v28, %v6752_v24  ;;  %v786_v56 = vmul.f32 %v3488_v14, %v6640_v8 }
 0x415   : > { %v859_v10 = vadd.f32 %v856_v63, %v851_v31  ;;  %v6781_v20 = vadd.f32 %v863_v13, %v858_v32  ;;  %v791_v31 = vmul.f32 %v3489_v6, %v6642_v49  ;;  %v3490_v32 = vld [vmem:[%s3677_s16 + $0x40] sm:$0x3]  ;;  %v820_v37 = vmul.f32 %v3489_v6, %v6670_v4 }
 0x416   : > { %2588 = vrot.lane.b32.xlu0 %v6620_v18, %s3579_s29  ;;  %2590 = vrot.lane.b32.xlu1 %v6610_v48, %s3579_s29  ;;  %v6786_v23 = vsel %vm871_vm0, %v6778_v36, %v6771_v35  ;;  %v799_v13 = vmul.f32 %v3490_v32, %v6654_v47  ;;  %v828_v47 = vmul.f32 %v3490_v32, %v6691_v61 }
 0x417   : > { %7943 = vst [vmem:[#allocation25_spill] sm:$0xff] %v6781_v20  ;;  %v6792_v19 = vadd.f32 %v864_v39, %v859_v10  ;;  %v6795_v62 = vrot.slane %v6781_v20, 7  ;;  %v794_v63 = vadd.f32 %v791_v31, %v786_v56  ;;  %v3491_v10 = vld [vmem:[%s3677_s16 + $0x58] sm:$0x3]  ;;  %v815_v39 = vmul.f32 %v3488_v14, %v6664_v33  ;;  %s3338_s16 = sshll.u32 %s3619_s13, 11  ;;  %s7163_s13 = scalar_lea.sflag [#allocation3], %s150_s21 }
 0x418   : > { %v807_v49 = vmul.f32 %v3491_v10, %v6677_v1  ;;  %v836_v4 = vmul.f32 %v3491_v10, %v6719_v16  ;;  %v2776_v16 = vrot.slane %v6723_v59, 1  ;;  %s7153_s14 = scalar_lea.hbm %s7206_s2, %s3338_s16 }
 0x419   : > { %7944 = vst [vmem:[#allocation65_spill] sm:$0xff] %v6792_v19  ;;  %v6798_v28 = vrot.slane %v6792_v19, 7  ;;  %v802_v8 = vadd.f32 %v799_v13, %v794_v63  ;;  %v823_v31 = vadd.f32 %v820_v37, %v815_v39  ;;  %v844_v63 = vmul.f32 %v3488_v14, %v6706_v34 }
 0x41a   : > { %2602 = vrot.lane.b32.xlu0 %v6605_v58, %s3578_s7  ;;  %2604 = vrot.lane.b32.xlu1 %v6607_v50, %s3578_s7  ;;  %v849_v13 = vmul.f32 %v3489_v6, %v6708_v11  ;;  %v865_v34 = vmul.f32 %v3491_v10, %v6752_v24 }
 0x41b   : > { %v6807_v42 = vsel %vm871_vm0, %v6795_v62, %v6798_v28  ;;  %v6844_v56 = vadd.f32 %v807_v49, %v802_v8  ;;  %v831_v33 = vadd.f32 %v828_v47, %v823_v31  ;;  %v2915_v8 = vrot.slane %v6760_v0, 1 }
 0x41c   : > { %7945 = vst [vmem:[#allocation22_spill] sm:$0xff] %v6807_v42  ;;  %v852_v1 = vadd.f32 %v849_v13, %v844_v63  ;;  %v3052_v63 = vrot.slane %v6781_v20, 1  ;;  %v3053_v13 = vrot.slane %v6792_v19, 1 }
 0x41d   : > { %v6858_v37 = vadd.f32 %v836_v4, %v831_v33 }
 0x41e   : > { %2606 = vrot.lane.b32.xlu0 %v6648_v17, %s3578_s7  ;;  %2623 = vrot.lane.b32.xlu1 %v6605_v58, %s3579_s29 }
 0x41f   : > { %7946 = vst [vmem:[#allocation87_spill] sm:$0xff] %v6858_v37  ;;  %v6908_v10 = vrot.slane %v6858_v37, 1 }
 0x421   : > { %7948 = vst [vmem:[#allocation24_spill] sm:$0xff] %v6908_v10  ;;  %v6923_v31 = vsel %vm1500_vm1, %v2915_v8, %v6908_v10 }
 0x422   : > { %2625 = vrot.lane.b32.xlu0 %v6607_v50, %s3579_s29  ;;  %2627 = vrot.lane.b32.xlu1 %v6648_v17, %s3579_s29  ;;  %7950 = vst [vmem:[#allocation92_spill] sm:$0xff] %v6923_v31 }
 0x426   : > { %2643 = vrot.lane.b32.xlu0 %v6700_v30, %s3578_s7  ;;  %2645 = vrot.lane.b32.xlu1 %v6704_v25, %s3578_s7 }
 0x42a   : > { %2647 = vrot.lane.b32.xlu0 %v6675_v53, %s3578_s7  ;;  %2667 = vrot.lane.b32.xlu1 %v6700_v30, %s3579_s29 }
 0x42e   : > { %2669 = vrot.lane.b32.xlu0 %v6704_v25, %s3579_s29  ;;  %2703 = vrot.lane.b32.xlu1 %v6745_v54, %s3578_s7 }
 0x432   : > { %2705 = vrot.lane.b32.xlu0 %v6768_v3, %s3578_s7  ;;  %2707 = vrot.lane.b32.xlu1 %v6750_v5, %s3578_s7 }
 0x436   : > { %2841 = vrot.lane.b32.xlu0 %v6778_v36, %s3578_s7  ;;  %2843 = vrot.lane.b32.xlu1 %v6786_v23, %s3578_s7 }
 0x43a   : > { %2845 = vrot.lane.b32.xlu0 %v6771_v35, %s3578_s7  ;;  %2979 = vrot.lane.b32.xlu1 %v6795_v62, %s3578_s7 }
 0x43e   : > { %2981 = vrot.lane.b32.xlu0 %v6807_v42, %s3578_s7  ;;  %2983 = vrot.lane.b32.xlu1 %v6798_v28, %s3578_s7 }
 0x442   : > { %2724 = vrot.lane.b32.xlu0 %v6745_v54, %s3579_s29  ;;  %2726 = vrot.lane.b32.xlu1 %v6768_v3, %s3579_s29 }
 0x446   : > { %2728 = vrot.lane.b32.xlu0 %v6750_v5, %s3579_s29  ;;  %2862 = vrot.lane.b32.xlu1 %v6778_v36, %s3579_s29 }
 0x44a   : > { %2864 = vrot.lane.b32.xlu0 %v6786_v23, %s3579_s29  ;;  %2866 = vrot.lane.b32.xlu1 %v6771_v35, %s3579_s29 }
 0x44e   : > { %3000 = vrot.lane.b32.xlu0 %v6795_v62, %s3579_s29  ;;  %3002 = vrot.lane.b32.xlu1 %v6807_v42, %s3579_s29  ;;  %v857_v42 = vmul.f32 %v3490_v32, %v6730_v44  ;;  %v2777_v44 = vrot.slane %v6736_v40, 1  ;;  %v2914_v32 = vrot.slane %v6758_v46, 1 }
 0x450   : > { %v860_v61 = vadd.f32 %v857_v42, %v852_v1  ;;  %v6890_v24 = vsel %vm1500_vm1, %v2776_v16, %v2777_v44  ;;  %v6893_v42 = vrot.slane %v6844_v56, 1  ;;  %v6919_v47 = vsel %vm1500_vm1, %v2914_v32, %v2915_v8 }
 0x451   : > { %7949 = vst [vmem:[#allocation90_spill] sm:$0xff] %v6919_v47  ;;  %v6932_v1 = vsel %vm1500_vm1, %v3052_v63, %v3053_v13 }
 0x452   : > { %3004 = vrot.lane.b32.xlu0 %v6798_v28, %s3579_s29  ;;  %2740 = vrot.lane.b32.xlu1 %v6723_v59, %s3578_s7  ;;  %v6865_v11 = vadd.f32 %v865_v34, %v860_v61  ;;  %v6903_v6 = vsel %vm1500_vm1, %v2777_v44, %v6893_v42  ;;  %v2582_v44 = vmul.f32 %v6610_v48, %v6161_v45 }
 0x453   : > { %v2581_v48 = vmul.f32 %v6620_v18, %v6215_v9 }
 0x454   : > { %7947 = vst [vmem:[#allocation28_spill] sm:$0xff] %v6865_v11  ;;  %v6935_v61 = vrot.slane %v6865_v11, 1 }
 0x456   : > { %2742 = vrot.lane.b32.xlu0 %v6736_v40, %s3578_s7  ;;  %2744 = vrot.lane.b32.xlu1 %v6844_v56, %s3578_s7  ;;  %7951 = vst [vmem:[#allocation91_spill] sm:$0xff] %v6935_v61  ;;  %v6946_v32 = vsel %vm1500_vm1, %v3053_v13, %v6935_v61  ;;  %v2580_v13 = vmul.f32 %v6615_v41, %v7940_v52 }
 0x457   : > { %7952 = vst [vmem:[#allocation38_spill] sm:$0xff] %v6946_v32 }
 0x45a   : > { %2878 = vrot.lane.b32.xlu0 %v6758_v46, %s3578_s7  ;;  %2880 = vrot.lane.b32.xlu1 %v6760_v0, %s3578_s7 }
 0x45e   : > { %2882 = vrot.lane.b32.xlu0 %v6858_v37, %s3578_s7  ;;  %3016 = vrot.lane.b32.xlu1 %v6781_v20, %s3578_s7 }
 0x462   : > { %3018 = vrot.lane.b32.xlu0 %v6792_v19, %s3578_s7  ;;  %3020 = vrot.lane.b32.xlu1 %v6865_v11, %s3578_s7 }
 0x466   : > { %2761 = vrot.lane.b32.xlu0 %v6723_v59, %s3579_s29  ;;  %2763 = vrot.lane.b32.xlu1 %v6736_v40, %s3579_s29 }
 0x46a   : > { %2765 = vrot.lane.b32.xlu0 %v6844_v56, %s3579_s29  ;;  %2899 = vrot.lane.b32.xlu1 %v6758_v46, %s3579_s29 }
 0x46e   : > { %2901 = vrot.lane.b32.xlu0 %v6760_v0, %s3579_s29  ;;  %2903 = vrot.lane.b32.xlu1 %v6858_v37, %s3579_s29 }
 0x472   : > { %3037 = vrot.lane.b32.xlu0 %v6781_v20, %s3579_s29  ;;  %3039 = vrot.lane.b32.xlu1 %v6792_v19, %s3579_s29 }
 0x476   : > { %3041 = vrot.lane.b32.xlu0 %v6865_v11, %s3579_s29  ;;  %2781 = vrot.lane.b32.xlu1 %v6890_v24, %s3578_s7 }
 0x478   : > { %v2548_v14 = vpop.permute.xlu1 %2547 }
 0x479   : > { %3318 = vst.msk [vmem:[%s6315_s23 + $0x2f] sm:$0xfe] %vm2140_vm2, %v2548_v14 }
 0x47a   : > { %2783 = vrot.lane.b32.xlu0 %v6903_v6, %s3578_s7  ;;  %2785 = vrot.lane.b32.xlu1 %v6893_v42, %s3578_s7 }
 0x47c   : > { %v2552_v49 = vpop.permute.xlu1 %2551  ;;  %v2550_v39 = vpop.permute.xlu0 %2549 }
 0x47d   : > { %3320 = vst.msk [vmem:[%s6315_s23 + $0x3f] sm:$0x1] %vm2144_vm3, %v2552_v49 }
 0x47e   : > { %3319 = vst.msk [vmem:[%s6315_s23 + $0x37] sm:$0xff] %vm2142_vm4, %v2550_v39  ;;  %2919 = vrot.lane.b32.xlu0 %v6919_v47, %s3578_s7  ;;  %2921 = vrot.lane.b32.xlu1 %v6923_v31, %s3578_s7 }
 0x480   : > { %v2568_v33 = vpop.permute.xlu1 %2567  ;;  %v2566_v4 = vpop.permute.xlu0 %2565 }
 0x481   : > { %v2575_v8 = vmul.f32 %v2568_v33, %v6212_v43  ;;  %v2574_v49 = vmul.f32 %v2566_v4, %v6090_v26 }
 0x482   : > { %2923 = vrot.lane.b32.xlu0 %v6908_v10, %s3578_s7  ;;  %3057 = vrot.lane.b32.xlu1 %v6932_v1, %s3578_s7 }
 0x483   : > { %v2584_v33 = vadd.f32 %v2581_v48, %v2575_v8  ;;  %v2583_v4 = vadd.f32 %v2580_v13, %v2574_v49  ;;  %v2617_v8 = vmul.f32 %v6128_v29, %v6605_v58 }
 0x484   : > { %v2587_v34 = vpop.permute.xlu1 %2586  ;;  %v2570_v16 = vpop.permute.xlu0 %2569 }
 0x485   : > { %v2576_v14 = vmul.f32 %v2570_v16, %v6158_v22  ;;  %v2595_v11 = vmul.f32 %v2587_v34, %v7941_v21 }
 0x486   : > { %3059 = vrot.lane.b32.xlu0 %v6946_v32, %s3578_s7  ;;  %3061 = vrot.lane.b32.xlu1 %v6935_v61, %s3578_s7  ;;  %s3126_s7 = sshll.u32 %s6315_s23, 4  ;;  %s7155_s7 = int_to_ptr.vmem [resolvable:$true] %s3126_s7 }
 0x487   : > { %v2585_v39 = vadd.f32 %v2582_v44, %v2576_v14  ;;  %v2598_v37 = vadd.f32 %v2595_v11, %v2583_v4  ;;  %s3507_s17 = scalar_lea.vmem %s7155_s7, 2048  ;;  %p3514_p13 = scmp.lt.s32.totalorder %s7155_s7, %s3512_s24 }
 0x488   : > { %v2591_v63 = vpop.permute.xlu1 %2590  ;;  %v2589_v16 = vpop.permute.xlu0 %2588  ;;  %p3508_p9 = scmp.ne.s32.totalorder %s7155_s7, %s3507_s17  ;;  %p3515_p0 = scmp.lt.s32.totalorder %s3513_s25, %s3507_s17 }
 0x489   : > { %v2597_v19 = vmul.f32 %v2591_v63, %v6164_v12  ;;  %v2596_v20 = vmul.f32 %v2589_v16, %v6218_v60 }
 0x48a   : > { %2671 = vrot.lane.b32.xlu0 %v6675_v53, %s3579_s29  ;;  %2805 = vrot.lane.b32.xlu1 %v6890_v24, %s3579_s29  ;;  %p3509_p10 = pnand %p3508_p9, %p3636_p5  ;;  %p3516_p1 = por %p3515_p0, %p3514_p13 }
 0x48b   : > { %v2600_v18 = vadd.f32 %v2597_v19, %v2585_v39  ;;  %v2599_v0 = vadd.f32 %v2596_v20, %v2584_v33  ;;  %v2618_v19 = vmul.f32 %v6240_v27, %v6607_v50  ;;  %v7953_v39 = vld [vmem:[#allocation17_spill] sm:$0xff] }
 0x48c   : > { %v2605_v44 = vpop.permute.xlu1 %2604  ;;  %v2603_v14 = vpop.permute.xlu0 %2602  ;;  %p3510_p12 = pneg %p3509_p10 }
 0x48d   : > { %v2612_v41 = vmul.f32 %v2605_v44, %v6233_v7  ;;  %v2611_v34 = vmul.f32 %v2603_v14, %v6109_v51  ;;  %v7955_v44 = vld [vmem:[#allocation11_spill] sm:$0xff] }
 0x48e   : > { %2807 = vrot.lane.b32.xlu0 %v6903_v6, %s3579_s29  ;;  %2809 = vrot.lane.b32.xlu1 %v6893_v42, %s3579_s29  ;;  %p3517_p2 = pnand %p3516_p1, %p3510_p12 }
 0x48f   : > { %v2615_v63 = vadd.f32 %v2612_v41, %v2599_v0  ;;  %v2614_v16 = vadd.f32 %v2611_v34, %v2598_v37  ;;  %v7954_v37 = vld [vmem:[#allocation18_spill] sm:$0xff] }
 0x490   : > { %v2624_v11 = vpop.permute.xlu1 %2623  ;;  %v2607_v20 = vpop.permute.xlu0 %2606  ;;  %v2619_v33 = vmul.f32 %v7954_v37, %v6648_v17  ;;  %v7956_v41 = vld [vmem:[#allocation62_spill] sm:$0xff] }
 0x491   : > { %v2620_v49 = vadd.f32 %v2617_v8, %v2614_v16  ;;  %v2613_v48 = vmul.f32 %v2607_v20, %v7953_v39  ;;  %v2621_v13 = vadd.f32 %v2618_v19, %v2615_v63  ;;  %v2632_v50 = vmul.f32 %v2624_v11, %v7955_v44  ;;  %v7957_v16 = vld [vmem:[#allocation43_spill] sm:$0xff] }
 0x492   : > { %2943 = vrot.lane.b32.xlu0 %v6919_v47, %s3579_s29  ;;  %2945 = vrot.lane.b32.xlu1 %v6923_v31, %s3579_s29  ;;  %v7959_v47 = vld [vmem:[#allocation15_spill] sm:$0xff] }
 0x493   : > { %v2616_v0 = vadd.f32 %v2613_v48, %v2600_v18  ;;  %v2635_v20 = vadd.f32 %v2632_v50, %v2620_v49  ;;  %v7958_v48 = vld [vmem:[#allocation20_spill] sm:$0xff] }
 0x494   : > { %v2628_v58 = vpop.permute.xlu1 %2627  ;;  %v2626_v4 = vpop.permute.xlu0 %2625 }
 0x495   : > { %v2622_v14 = vadd.f32 %v2619_v33, %v2616_v0  ;;  %v2634_v34 = vmul.f32 %v2628_v58, %v7956_v41  ;;  %v2633_v8 = vmul.f32 %v2626_v4, %v7957_v16  ;;  %v2661_v0 = vmul.f32 %v6700_v30, %v7939_v57  ;;  %v7960_v33 = vld [vmem:[#allocation12_spill] sm:$0xff] }
 0x496   : > { %2947 = vrot.lane.b32.xlu0 %v6908_v10, %s3579_s29  ;;  %3081 = vrot.lane.b32.xlu1 %v6932_v1, %s3579_s29  ;;  %v2662_v58 = vmul.f32 %v6704_v25, %v7960_v33  ;;  %v2718_v25 = vmul.f32 %v6745_v54, %v7940_v52  ;;  %v2719_v54 = vmul.f32 %v6768_v3, %v6215_v9 }
 0x497   : > { %v2637_v63 = vadd.f32 %v2634_v34, %v2622_v14  ;;  %v2636_v17 = vadd.f32 %v2633_v8, %v2621_v13 }
 0x498   : > { %v2646_v18 = vpop.permute.xlu1 %2645  ;;  %v2644_v19 = vpop.permute.xlu0 %2643 }
 0x499   : > { %v2653_v31 = vmul.f32 %v2646_v18, %v7958_v48  ;;  %v2652_v11 = vmul.f32 %v2644_v19, %v7959_v47 }
 0x49a   : > { %3083 = vrot.lane.b32.xlu0 %v6946_v32, %s3579_s29  ;;  %3085 = vrot.lane.b32.xlu1 %v6935_v61, %s3579_s29  ;;  %v2663_v61 = vmul.f32 %v6675_v53, %v6222_v15  ;;  %v2720_v53 = vmul.f32 %v6750_v5, %v6161_v45  ;;  %v2856_v5 = vmul.f32 %v6778_v36, %v7940_v52 }
 0x49b   : > { %v2656_v4 = vadd.f32 %v2653_v31, %v2636_v17  ;;  %v2655_v14 = vadd.f32 %v2652_v11, %v2635_v20 }
 0x49c   : > { %v2668_v49 = vpop.permute.xlu1 %2667  ;;  %v2648_v13 = vpop.permute.xlu0 %2647 }
 0x49d   : > { %v2664_v50 = vadd.f32 %v2661_v0, %v2655_v14  ;;  %v2676_v34 = vmul.f32 %v2668_v49, %v7931_v38  ;;  %v2654_v8 = vmul.f32 %v2648_v13, %v6206_v55  ;;  %v2665_v18 = vadd.f32 %v2662_v58, %v2656_v4 }
 0x49e   : > { %v2857_v13 = vmul.f32 %v6786_v23, %v6215_v9 }
 0x49f   : > { %v2679_v19 = vadd.f32 %v2676_v34, %v2664_v50  ;;  %v2657_v32 = vadd.f32 %v2654_v8, %v2637_v63 }
 0x4a0   : > { %v2704_v10 = vpop.permute.xlu1 %2703  ;;  %v2670_v30 = vpop.permute.xlu0 %2669 }
 0x4a1   : > { %v2712_v31 = vmul.f32 %v2704_v10, %v6090_v26  ;;  %v2677_v20 = vmul.f32 %v2670_v30, %v6272_v2  ;;  %2685 = vrot.lane.b32.xlu0 %v2679_v19, %s3579_s29  ;;  %v7008_v17 = vadd.f32 %v2663_v61, %v2657_v32  ;;  %v2994_v30 = vmul.f32 %v6795_v62, %v7940_v52 }
 0x4a3   : > { %v2721_v11 = vadd.f32 %v2718_v25, %v2712_v31  ;;  %v2680_v0 = vadd.f32 %v2677_v20, %v2665_v18  ;;  %v2858_v31 = vmul.f32 %v6771_v35, %v6161_v45 }
 0x4a4   : > { %v2708_v58 = vpop.permute.xlu1 %2707  ;;  %v2706_v63 = vpop.permute.xlu0 %2705 }
 0x4a5   : > { %v2714_v4 = vmul.f32 %v2708_v58, %v6158_v22  ;;  %v2713_v10 = vmul.f32 %v2706_v63, %v6212_v43  ;;  %2687 = vrot.lane.b32.xlu1 %v2680_v0, %s3579_s29  ;;  %v2996_v63 = vmul.f32 %v6798_v28, %v6161_v45 }
 0x4a7   : > { %v2723_v14 = vadd.f32 %v2720_v53, %v2714_v4  ;;  %v2722_v49 = vadd.f32 %v2719_v54, %v2713_v10  ;;  %v7961_v4 = vld [vmem:[#allocation22_spill] sm:$0xff] }
 0x4a8   : > { %v2844_v61 = vpop.permute.xlu1 %2843  ;;  %v2842_v32 = vpop.permute.xlu0 %2841  ;;  %v2995_v54 = vmul.f32 %v7961_v4, %v6215_v9 }
 0x4a9   : > { %v2851_v50 = vmul.f32 %v2844_v61, %v6212_v43  ;;  %v2850_v34 = vmul.f32 %v2842_v32, %v6090_v26 }
 0x4ab   : > { %v2860_v8 = vadd.f32 %v2857_v13, %v2851_v50  ;;  %v2859_v3 = vadd.f32 %v2856_v5, %v2850_v34 }
 0x4ac   : > { %v2980_v18 = vpop.permute.xlu1 %2979  ;;  %v2846_v19 = vpop.permute.xlu0 %2845 }
 0x4ad   : > { %v2988_v25 = vmul.f32 %v2980_v18, %v6090_v26  ;;  %v2852_v23 = vmul.f32 %v2846_v19, %v6158_v22 }
 0x4af   : > { %v2997_v20 = vadd.f32 %v2994_v30, %v2988_v25  ;;  %v2861_v0 = vadd.f32 %v2858_v31, %v2852_v23 }
 0x4b0   : > { %v2984_v58 = vpop.permute.xlu1 %2983  ;;  %v2982_v36 = vpop.permute.xlu0 %2981 }
 0x4b1   : > { %v2990_v53 = vmul.f32 %v2984_v58, %v6158_v22  ;;  %v2989_v52 = vmul.f32 %v2982_v36, %v6212_v43 }
 0x4b3   : > { %v2999_v26 = vadd.f32 %v2996_v63, %v2990_v53  ;;  %v2998_v62 = vadd.f32 %v2995_v54, %v2989_v52  ;;  %v2755_v63 = vmul.f32 %v6128_v29, %v6723_v59 }
 0x4b4   : > { %v2727_v10 = vpop.permute.xlu1 %2726  ;;  %v2725_v35 = vpop.permute.xlu0 %2724 }
 0x4b5   : > { %v2734_v61 = vmul.f32 %v2727_v10, %v6218_v60  ;;  %v2733_v43 = vmul.f32 %v2725_v35, %v7941_v21 }
 0x4b7   : > { %v2737_v32 = vadd.f32 %v2734_v61, %v2722_v49  ;;  %v2736_v49 = vadd.f32 %v2733_v43, %v2721_v11  ;;  %v2756_v61 = vmul.f32 %v6240_v27, %v6736_v40  ;;  %v7962_v40 = vld [vmem:[#allocation21_spill] sm:$0xff] }
 0x4b8   : > { %v2863_v13 = vpop.permute.xlu1 %2862  ;;  %v2729_v50 = vpop.permute.xlu0 %2728 }
 0x4b9   : > { %v2871_v5 = vmul.f32 %v2863_v13, %v7941_v21  ;;  %v2735_v58 = vmul.f32 %v2729_v50, %v6164_v12  ;;  %v2757_v13 = vmul.f32 %v7954_v37, %v6844_v56 }
 0x4bb   : > { %v2874_v34 = vadd.f32 %v2871_v5, %v2859_v3  ;;  %v2738_v54 = vadd.f32 %v2735_v58, %v2723_v14 }
 0x4bc   : > { %v2867_v45 = vpop.permute.xlu1 %2866  ;;  %v2865_v28 = vpop.permute.xlu0 %2864 }
 0x4bd   : > { %v2873_v22 = vmul.f32 %v2867_v45, %v6164_v12 }
 0x4bf   : > { %v2876_v18 = vadd.f32 %v2873_v22, %v2861_v0  ;;  %v2872_v0 = vmul.f32 %v2865_v28, %v6218_v60 }
 0x4c0   : > { %v3003_v9 = vpop.permute.xlu1 %3002  ;;  %v3001_v19 = vpop.permute.xlu0 %3000 }
 0x4c1   : > { %v3010_v30 = vmul.f32 %v3003_v9, %v6218_v60  ;;  %v2875_v50 = vadd.f32 %v2872_v0, %v2860_v8  ;;  %v3009_v59 = vmul.f32 %v3001_v19, %v7941_v21 }
 0x4c3   : > { %v3013_v25 = vadd.f32 %v3010_v30, %v2998_v62  ;;  %v2894_v30 = vmul.f32 %v6240_v27, %v7962_v40  ;;  %v3012_v56 = vadd.f32 %v3009_v59, %v2997_v20 }
 0x4c4   : > { %v2741_v31 = vpop.permute.xlu1 %2740  ;;  %v3005_v23 = vpop.permute.xlu0 %3004 }
 0x4c5   : > { %v2749_v36 = vmul.f32 %v2741_v31, %v6109_v51  ;;  %v3011_v8 = vmul.f32 %v3005_v23, %v6164_v12 }
 0x4c7   : > { %v2752_v3 = vadd.f32 %v2749_v36, %v2736_v49 }
 0x4c8   : > { %v2745_v53 = vpop.permute.xlu1 %2744  ;;  %v2743_v4 = vpop.permute.xlu0 %2742 }
 0x4c9   : > { %v2751_v52 = vmul.f32 %v2745_v53, %v7953_v39  ;;  %v2750_v62 = vmul.f32 %v2743_v4, %v6233_v7  ;;  %v2758_v10 = vadd.f32 %v2755_v63, %v2752_v3  ;;  %v3014_v4 = vadd.f32 %v3011_v8, %v2999_v26 }
 0x4cb   : > { %v2754_v35 = vadd.f32 %v2751_v52, %v2738_v54  ;;  %v2753_v11 = vadd.f32 %v2750_v62, %v2737_v32  ;;  %v2893_v32 = vmul.f32 %v6128_v29, %v6758_v46  ;;  %v7964_v46 = vld [vmem:[#allocation25_spill] sm:$0xff] }
 0x4cc   : > { %v2881_v60 = vpop.permute.xlu1 %2880  ;;  %v2879_v5 = vpop.permute.xlu0 %2878  ;;  %v3031_v53 = vmul.f32 %v6128_v29, %v7964_v46 }
 0x4cd   : > { %v2888_v14 = vmul.f32 %v2881_v60, %v6233_v7  ;;  %v2887_v45 = vmul.f32 %v2879_v5, %v6109_v51  ;;  %v2759_v28 = vadd.f32 %v2756_v61, %v2753_v11  ;;  %v2760_v22 = vadd.f32 %v2757_v13, %v2754_v35  ;;  %v7965_v11 = vld [vmem:[#allocation65_spill] sm:$0xff]  ;;  %v7966_v61 = vld [vmem:[#allocation28_spill] sm:$0xff] }
 0x4ce   : > { %v3033_v13 = vmul.f32 %v7954_v37, %v7966_v61  ;;  %v7968_v61 = vld [vmem:[#allocation92_spill] sm:$0xff] }
 0x4cf   : > { %v2891_v9 = vadd.f32 %v2888_v14, %v2875_v50  ;;  %v2890_v43 = vadd.f32 %v2887_v45, %v2874_v34  ;;  %v7963_v34 = vld [vmem:[#allocation87_spill] sm:$0xff] }
 0x4d0   : > { %v3017_v21 = vpop.permute.xlu1 %3016  ;;  %v2883_v19 = vpop.permute.xlu0 %2882  ;;  %v2895_v0 = vmul.f32 %v7954_v37, %v7963_v34 }
 0x4d1   : > { %v3025_v31 = vmul.f32 %v3017_v21, %v6109_v51  ;;  %v2889_v49 = vmul.f32 %v2883_v19, %v7953_v39  ;;  %v2896_v58 = vadd.f32 %v2893_v32, %v2890_v43  ;;  %v2897_v36 = vadd.f32 %v2894_v30, %v2891_v9 }
 0x4d2   : > { %v2799_v30 = vmul.f32 %v6890_v24, %v7939_v57  ;;  %v2801_v24 = vmul.f32 %v6893_v42, %v6222_v15  ;;  %v2938_v42 = vmul.f32 %v7968_v61, %v7960_v33 }
 0x4d3   : > { %v3028_v3 = vadd.f32 %v3025_v31, %v3012_v56  ;;  %v2892_v63 = vadd.f32 %v2889_v49, %v2876_v18  ;;  %v3032_v18 = vmul.f32 %v6240_v27, %v7965_v11 }
 0x4d4   : > { %v3021_v20 = vpop.permute.xlu1 %3020  ;;  %v3019_v54 = vpop.permute.xlu0 %3018 }
 0x4d5   : > { %v3027_v12 = vmul.f32 %v3021_v20, %v7953_v39  ;;  %v3026_v23 = vmul.f32 %v3019_v54, %v6233_v7  ;;  %v2898_v51 = vadd.f32 %v2895_v0, %v2892_v63  ;;  %v3034_v52 = vadd.f32 %v3031_v53, %v3028_v3 }
 0x4d6   : > { %v2800_v0 = vmul.f32 %v6903_v6, %v7960_v33  ;;  %v7967_v6 = vld [vmem:[#allocation90_spill] sm:$0xff] }
 0x4d7   : > { %v3030_v62 = vadd.f32 %v3027_v12, %v3014_v4  ;;  %v3029_v35 = vadd.f32 %v3026_v23, %v3013_v25 }
 0x4d8   : > { %v2764_v50 = vpop.permute.xlu1 %2763  ;;  %v2762_v59 = vpop.permute.xlu0 %2761 }
 0x4d9   : > { %v3035_v29 = vadd.f32 %v3032_v18, %v3029_v35  ;;  %v3036_v26 = vadd.f32 %v3033_v13, %v3030_v62  ;;  %v2770_v9 = vmul.f32 %v2762_v59, %v7955_v44  ;;  %v2771_v25 = vmul.f32 %v2764_v50, %v7957_v16 }
 0x4da   : > { %v2937_v18 = vmul.f32 %v7967_v6, %v7939_v57 }
 0x4db   : > { %v2773_v27 = vadd.f32 %v2770_v9, %v2758_v10  ;;  %v2774_v8 = vadd.f32 %v2771_v25, %v2759_v28  ;;  %v3075_v25 = vmul.f32 %v6932_v1, %v7939_v57  ;;  %v7971_v1 = vld [vmem:[#allocation91_spill] sm:$0xff] }
 0x4dc   : > { %v2900_v60 = vpop.permute.xlu1 %2899  ;;  %v2766_v5 = vpop.permute.xlu0 %2765 }
 0x4dd   : > { %v2772_v40 = vmul.f32 %v2766_v5, %v7956_v41  ;;  %v2908_v21 = vmul.f32 %v2900_v60, %v7955_v44 }
 0x4df   : > { %v2775_v3 = vadd.f32 %v2772_v40, %v2760_v22  ;;  %v2911_v28 = vadd.f32 %v2908_v21, %v2896_v58 }
 0x4e0   : > { %v2904_v14 = vpop.permute.xlu1 %2903  ;;  %v2902_v39 = vpop.permute.xlu0 %2901 }
 0x4e1   : > { %v2909_v19 = vmul.f32 %v2902_v39, %v7957_v16  ;;  %v2910_v4 = vmul.f32 %v2904_v14, %v7956_v41 }
 0x4e3   : > { %v2912_v20 = vadd.f32 %v2909_v19, %v2897_v36  ;;  %v2913_v50 = vadd.f32 %v2910_v4, %v2898_v51  ;;  %v7969_v51 = vld [vmem:[#allocation24_spill] sm:$0xff]  ;;  %v3077_v19 = vmul.f32 %v7971_v1, %v6222_v15 }
 0x4e4   : > { %v3040_v45 = vpop.permute.xlu1 %3039  ;;  %v3038_v7 = vpop.permute.xlu0 %3037  ;;  %v2939_v40 = vmul.f32 %v7969_v51, %v6222_v15 }
 0x4e5   : > { %v3046_v54 = vmul.f32 %v3038_v7, %v7955_v44  ;;  %v3047_v36 = vmul.f32 %v3040_v45, %v7957_v16 }
 0x4e7   : > { %v3049_v44 = vadd.f32 %v3046_v54, %v3034_v52  ;;  %v3050_v16 = vadd.f32 %v3047_v36, %v3035_v29 }
 0x4e8   : > { %v2782_v43 = vpop.permute.xlu1 %2781  ;;  %v3042_v32 = vpop.permute.xlu0 %3041 }
 0x4e9   : > { %v2790_v37 = vmul.f32 %v2782_v43, %v7959_v47  ;;  %v3048_v59 = vmul.f32 %v3042_v32, %v7956_v41 }
 0x4eb   : > { %v2793_v56 = vadd.f32 %v2790_v37, %v2773_v27  ;;  %v3051_v52 = vadd.f32 %v3048_v59, %v3036_v26  ;;  %v7972_v26 = vld [vmem:[#allocation16_spill] sm:$0xff] }
 0x4ec   : > { %v2786_v31 = vpop.permute.xlu1 %2785  ;;  %v2784_v49 = vpop.permute.xlu0 %2783 }
 0x4ed   : > { %v2792_v63 = vmul.f32 %v2786_v31, %v6206_v55  ;;  %v2791_v10 = vmul.f32 %v2784_v49, %v7958_v48  ;;  %v2802_v34 = vadd.f32 %v2799_v30, %v2793_v56  ;;  %v7970_v56 = vld [vmem:[#allocation38_spill] sm:$0xff] }
 0x4ef   : > { %v2795_v46 = vadd.f32 %v2792_v63, %v2775_v3  ;;  %v2794_v53 = vadd.f32 %v2791_v10, %v2774_v8  ;;  %v3076_v8 = vmul.f32 %v7970_v56, %v7960_v33 }
 0x4f0   : > { %v2922_v22 = vpop.permute.xlu1 %2921  ;;  %v2920_v12 = vpop.permute.xlu0 %2919 }
 0x4f1   : > { %v2929_v23 = vmul.f32 %v2922_v22, %v7958_v48  ;;  %v2928_v62 = vmul.f32 %v2920_v12, %v7959_v47  ;;  %v2804_v35 = vadd.f32 %v2801_v24, %v2795_v46  ;;  %v2803_v11 = vadd.f32 %v2800_v0, %v2794_v53 }
 0x4f3   : > { %v2932_v58 = vadd.f32 %v2929_v23, %v2912_v20  ;;  %v2931_v13 = vadd.f32 %v2928_v62, %v2911_v28 }
 0x4f4   : > { %v3058_v60 = vpop.permute.xlu1 %3057  ;;  %v2924_v5 = vpop.permute.xlu0 %2923 }
 0x4f5   : > { %v3066_v14 = vmul.f32 %v3058_v60, %v7959_v47  ;;  %v2930_v39 = vmul.f32 %v2924_v5, %v6206_v55  ;;  %v2941_v7 = vadd.f32 %v2938_v42, %v2932_v58  ;;  %v2940_v9 = vadd.f32 %v2937_v18, %v2931_v13 }
 0x4f7   : > { %v3069_v43 = vadd.f32 %v3066_v14, %v3049_v44  ;;  %v2933_v27 = vadd.f32 %v2930_v39, %v2913_v50 }
 0x4f8   : > { %v3062_v45 = vpop.permute.xlu1 %3061  ;;  %v3060_v41 = vpop.permute.xlu0 %3059 }
 0x4f9   : > { %v3068_v32 = vmul.f32 %v3062_v45, %v6206_v55  ;;  %v3067_v47 = vmul.f32 %v3060_v41, %v7958_v48  ;;  %v3078_v37 = vadd.f32 %v3075_v25, %v3069_v43  ;;  %v2942_v30 = vadd.f32 %v2939_v40, %v2933_v27 }
 0x4fb   : > { %v3071_v21 = vadd.f32 %v3068_v32, %v3051_v52  ;;  %v3070_v57 = vadd.f32 %v3067_v47, %v3050_v16 }
 0x4fc   : > { %v2806_v31 = vpop.permute.xlu1 %2805  ;;  %v2672_v49 = vpop.permute.xlu0 %2671 }
 0x4fd   : > { %v2814_v29 = vmul.f32 %v2806_v31, %v7931_v38  ;;  %v2678_v3 = vmul.f32 %v2672_v49, %v7972_v26  ;;  %v3080_v63 = vadd.f32 %v3077_v19, %v3071_v21  ;;  %v3079_v55 = vadd.f32 %v3076_v8, %v3070_v57 }
 0x4ff   : > { %v2817_v10 = vadd.f32 %v2814_v29, %v2802_v34  ;;  %v2681_v48 = vadd.f32 %v2678_v3, %v7008_v17 }
 0x500   : > { %v2810_v0 = vpop.permute.xlu1 %2809  ;;  %v2808_v46 = vpop.permute.xlu0 %2807 }
 0x501   : > { %v2816_v33 = vmul.f32 %v2810_v0, %v7972_v26  ;;  %v2815_v53 = vmul.f32 %v2808_v46, %v6272_v2  ;;  %2823 = vrot.lane.b32.xlu1 %v2817_v10, %s3579_s29  ;;  %2689 = vrot.lane.b32.xlu0 %v2681_v48, %s3579_s29 }
 0x503   : > { %v2819_v15 = vadd.f32 %v2816_v33, %v2804_v35  ;;  %v2818_v24 = vadd.f32 %v2815_v53, %v2803_v11 }
 0x504   : > { %v2946_v28 = vpop.permute.xlu1 %2945  ;;  %v2944_v4 = vpop.permute.xlu0 %2943 }
 0x505   : > { %v2953_v20 = vmul.f32 %v2946_v28, %v6272_v2  ;;  %v2952_v34 = vmul.f32 %v2944_v4, %v7931_v38  ;;  %2827 = vrot.lane.b32.xlu1 %v2819_v15, %s3579_s29  ;;  %2825 = vrot.lane.b32.xlu0 %v2818_v24, %s3579_s29 }
 0x507   : > { %v2956_v17 = vadd.f32 %v2953_v20, %v2941_v7  ;;  %v2955_v54 = vadd.f32 %v2952_v34, %v2940_v9 }
 0x508   : > { %v3082_v22 = vpop.permute.xlu1 %3081  ;;  %v2948_v12 = vpop.permute.xlu0 %2947 }
 0x509   : > { %v3090_v23 = vmul.f32 %v3082_v22, %v7931_v38  ;;  %v2954_v62 = vmul.f32 %v2948_v12, %v7972_v26  ;;  %2963 = vrot.lane.b32.xlu1 %v2956_v17, %s3579_s29  ;;  %2961 = vrot.lane.b32.xlu0 %v2955_v54, %s3579_s29 }
 0x50b   : > { %v3093_v35 = vadd.f32 %v3090_v23, %v3078_v37  ;;  %v2957_v11 = vadd.f32 %v2954_v62, %v2942_v30 }
 0x50c   : > { %v3086_v6 = vpop.permute.xlu1 %3085  ;;  %v3084_v18 = vpop.permute.xlu0 %3083 }
 0x50d   : > { %v3092_v61 = vmul.f32 %v3086_v6, %v7972_v26  ;;  %v3091_v42 = vmul.f32 %v3084_v18, %v6272_v2  ;;  %3099 = vrot.lane.b32.xlu1 %v3093_v35, %s3579_s29  ;;  %2965 = vrot.lane.b32.xlu0 %v2957_v11, %s3579_s29 }
 0x50f   : > { %v3095_v38 = vadd.f32 %v3092_v61, %v3080_v63  ;;  %v3094_v58 = vadd.f32 %v3091_v42, %v3079_v55 }
 0x511   : > { %3103 = vrot.lane.b32.xlu1 %v3095_v38, %s3579_s29  ;;  %3101 = vrot.lane.b32.xlu0 %v3094_v58, %s3579_s29 }
 0x513   : > { %v2686_v13 = vpop.permute.xlu0 %2685 }
 0x514   : > { %3321 = vst.msk [vmem:[%s6315_s23 + $0x3f] sm:$0xfe] %vm2140_vm2, %v2686_v13 }
 0x517   : > { %v2688_v2 = vpop.permute.xlu1 %2687 }
 0x518   : > { %3322 = vst.msk [vmem:[%s6315_s23 + $0x47] sm:$0xff] %vm2142_vm4, %v2688_v2 }
 0x573   : > { %v2824_v50 = vpop.permute.xlu1 %2823  ;;  %v2690_v36 = vpop.permute.xlu0 %2689 }
 0x574   : > { %3324 = vst.msk [vmem:[%s6315_s23 + $0x4f] sm:$0xfe] %vm2140_vm2, %v2824_v50 }
 0x575   : > { %3323 = vst.msk [vmem:[%s6315_s23 + $0x4f] sm:$0x1] %vm2144_vm3, %v2690_v36 }
 0x577   : > { %v2828_v44 = vpop.permute.xlu1 %2827  ;;  %v2826_v59 = vpop.permute.xlu0 %2825 }
 0x578   : > { %3326 = vst.msk [vmem:[%s6315_s23 + $0x5f] sm:$0x1] %vm2144_vm3, %v2828_v44 }
 0x579   : > { %3325 = vst.msk [vmem:[%s6315_s23 + $0x57] sm:$0xff] %vm2142_vm4, %v2826_v59 }
 0x57b   : > { %v2964_v60 = vpop.permute.xlu1 %2963  ;;  %v2962_v5 = vpop.permute.xlu0 %2961 }
 0x57c   : > { %3328 = vst.msk [vmem:[%s6315_s23 + $0x67] sm:$0xff] %vm2142_vm4, %v2964_v60 }
 0x57d   : > { %3327 = vst.msk [vmem:[%s6315_s23 + $0x5f] sm:$0xfe] %vm2140_vm2, %v2962_v5 }
 0x57f   : > { %v3100_v14 = vpop.permute.xlu1 %3099  ;;  %v2966_v39 = vpop.permute.xlu0 %2965 }
 0x580   : > { %3330 = vst.msk [vmem:[%s6315_s23 + $0x6f] sm:$0xfe] %vm2140_vm2, %v3100_v14 }
 0x581   : > { %3329 = vst.msk [vmem:[%s6315_s23 + $0x6f] sm:$0x1] %vm2144_vm3, %v2966_v39 }
 0x583   : > { %v3104_v7 = vpop.permute.xlu1 %3103  ;;  %v3102_v9 = vpop.permute.xlu0 %3101 }
 0x584   : > { %3332 = vst.msk [vmem:[%s6315_s23 + $0x7f] sm:$0x1] %vm2144_vm3, %v3104_v7 }
 0x585   : > { %3331 = vst.msk [vmem:[%s6315_s23 + $0x77] sm:$0xff] %vm2142_vm4, %v3102_v9 }
 0x586   : > { %3520 = shalt.err (!%p3517_p2)
}
 0x587   : > { %s3521_s21 = scalar_lea.hbm %s7153_s14, 2048  ;;  %s3525_s27 = scalar_lea.hbm %s7206_s2, 4096 }
 0x588   : > { %p3522_p3 = scmp.ne.s32.totalorder %s7153_s14, %s3521_s21  ;;  %p3526_p8 = scmp.lt.u32.totalorder %s7153_s14, %s7206_s2 }
 0x589   : > { %p3527_p11 = scmp.lt.u32.totalorder %s3525_s27, %s3521_s21  ;;  %p3529_p10 = scmp.lt.u32.totalorder %s3521_s21, %s7153_s14 }
 0x58a   : > { %p3523_p4 = pnand %p3522_p3, %p3636_p5 }
 0x58b   : > { %p3528_p9 = por %p3527_p11, %p3526_p8 }
 0x58c   : > { %p3524_p7 = pneg %p3523_p4 }
 0x58d   : > { %p3530_p12 = por %p3529_p10, %p3528_p9 }
 0x58f   : > { %p3531_p13 = pnand %p3530_p12, %p3524_p7 }
 0x591   : > { %3534 = shalt.err (!%p3531_p13)
}
 0x592   : > { %s3581_s3 = smov 128   ;;  %s3582_s4 = smov 8  }
 0x593   : > { %3344 = dma.vmem_to_hbm [thread:$0]  (%p3636_p5), %s7155_s7, 2048, %s7153_s14, %s7163_s13, %s3581_s3, %s3581_s3, %s3582_s4  }
 0x594 PF: > { %p3356_p0 = scmp.ge.s32.totalorder %s3573_s12, 2  ;;  %s3141_s5 = sand.u32 1, %s3561_s9  }
 0x595   : > { %s3142_s6 = scalar_lea.sflag [#allocation3], %s3141_s5 }
 0x596   : > { %p3351_p1 = pnand %p3356_p0, %p3640_p6 }
 0x598   : > { %3556 = dma.done.wait (!%p3351_p1), %s3142_s6, 2048  }
 0x599   : > { %3558 = vsyncadd (!%p3351_p1), %s3142_s6, 4294965248  ;;  %p13_p2 = scmp.ge.s32.totalorder %s3623_s15, 4   ;;  %s7973_s9 = smov %s3565_s10 }
 0x59a   : > { %s7974_s10 = smov %s3569_s11  ;;  %s7975_s11 = smov %s3634_s18 }
 0x59b   : > { %s7976_s12 = smov %s3623_s15  ;;  %15 = sbr.rel (!%p13_p2) target bundleno = 4 (0x4), region = 78 }
 0x5a2   :  { %3147 = vsyncpa [#allocation3], 1 }
 0x5a3   :  { %3149 = vsyncpa [#allocation3 + $0x1], 1 }
 0x5a4   :  { %3150 = vsyncpa [#allocation4], 1 }
 0x5a5   :  { %3152 = vsyncpa [#allocation4 + $0x1], 1 }

</bundles_post_ra>
